<compile_context>
chip_gen: v7x
topology: tpu7x:2x2x1
jax: 0.10.0
libtpu: 0.0.40
codegen_flags: <defaults>
</compile_context>

<pallas_src>
import functools

import jax
import jax.numpy as jnp
from jax.experimental import pallas as pl
from jax.experimental.pallas import tpu as pltpu

LANE = 128
VMEM_LIMIT = 32 * 1024 * 1024   # <= physical VMEM on v5e/v6e (128 MiB) and v7x (64 MiB)


def _rup(n, m=LANE):
    return ((n + m - 1) // m) * m


def _pad2(x, r, c):
    return jnp.pad(x, ((0, r - x.shape[0]), (0, c - x.shape[1])))


def _pick_bt(B, cap=256):
    """Batch tile: as large as possible (MXU M-dim), but >=2 tiles when B allows
    (keeps both v7x TensorCores busy); tiles stay multiples of 8 sublanes."""
    if B >= 16 and B % 16 == 0:
        bt = min(cap, B // 2)
        bt -= bt % 8
        while bt > 8 and B % bt:
            bt -= 8
        if bt >= 8 and B % bt == 0:
            return bt
    return B   # single tile == full batch dim (always a legal block shape)


# --------------------------------------------------------------------------
# 1. Unidirectional GRU (headline / paragraph encoders): whole recurrence for
#    one batch tile in ONE grid step, final hidden only.
# --------------------------------------------------------------------------
def _gru_final_kernel(x_ref, len_ref, wihT_ref, bih_ref, whhT_ref, bhh_ref,
                      hfin_ref, h_scr, *, Hp, L):
    f32, bf16 = jnp.float32, jnp.bfloat16
    lens = len_ref[...]                       # [bt, 1] int32, resident (no per-step DMA)
    h_scr[...] = jnp.zeros_like(h_scr)

    def step(t, c):
        h = h_scr[...]                        # [bt, Hp] f32
        # input projection fused in-kernel -> no f32 xg HBM staging round trip
        xg = jnp.dot(x_ref[t], wihT_ref[...],
                     preferred_element_type=f32) + bih_ref[...]
        g = jnp.dot(h.astype(bf16), whhT_ref[...],
                    preferred_element_type=f32) + bhh_ref[...]
        r = jax.nn.sigmoid(xg[:, 0:Hp] + g[:, 0:Hp])
        z = jax.nn.sigmoid(xg[:, Hp:2 * Hp] + g[:, Hp:2 * Hp])
        n = jnp.tanh(xg[:, 2 * Hp:3 * Hp] + r * g[:, 2 * Hp:3 * Hp])
        h_new = (1.0 - z) * n + z * h
        m = (lens > t).astype(f32)            # packed-sequence masked update
        h_scr[...] = m * h_new + (1.0 - m) * h
        return c

    jax.lax.fori_loop(0, L, step, 0, unroll=(L <= 16))
    hfin_ref[...] = h_scr[...]


def pallas_gru_final(x_tm, lengths, gp):
    """x_tm: [L, B, Ip] bf16 time-major.  Returns final hidden [B, Hp] f32."""
    L, B, Ip = x_tm.shape
    Hp = gp['Hp']
    bt = _pick_bt(B)
    nb = B // bt
    lens = lengths.reshape(B, 1).astype(jnp.int32)
    return pl.pallas_call(
        functools.partial(_gru_final_kernel, Hp=Hp, L=L),
        grid=(nb,),
        in_specs=[
            pl.BlockSpec((L, bt, Ip), lambda i: (0, i, 0)),
            pl.BlockSpec((bt, 1), lambda i: (i, 0)),
            # TODO(synk): on v7x at production Hp, single-buffer these
            # grid-invariant weights (pipeline_mode) if VMEM gets tight.
            pl.BlockSpec(gp['wihT'].shape, lambda i: (0, 0)),
            pl.BlockSpec(gp['bih'].shape, lambda i: (0, 0)),
            pl.BlockSpec(gp['whhT'].shape, lambda i: (0, 0)),
            pl.BlockSpec(gp['bhh'].shape, lambda i: (0, 0)),
        ],
        out_specs=pl.BlockSpec((bt, Hp), lambda i: (i, 0)),
        out_shape=jax.ShapeDtypeStruct((B, Hp), jnp.float32),
        scratch_shapes=[pltpu.VMEM((bt, Hp), jnp.float32)],
        compiler_params=pltpu.CompilerParams(
            dimension_semantics=("parallel",),
            vmem_limit_bytes=VMEM_LIMIT),
    )(x_tm, lens, gp['wihT'], gp['bih'], gp['whhT'], gp['bhh'])


# --------------------------------------------------------------------------
# 2. Fused bidirectional GRU (inter-paragraph SequenceEncoder): both directions
#    in one kernel (concatenated gate axes), all per-step outputs, whole
#    recurrence in one grid step per batch tile.
# --------------------------------------------------------------------------
def _bigru_kernel(x_ref, len_ref, wihT_ref, bih_ref, whhT_ref, bhh_ref,
                  outf_ref, outb_ref, xgf_scr, xgb_scr, hf_scr, hb_scr, *, Hp, L):
    f32, bf16 = jnp.float32, jnp.bfloat16
    H3 = 3 * Hp
    lens = len_ref[...]                       # [bt, 1] int32

    # pass 1: input projection for BOTH directions, all steps (stays in VMEM).
    def proj(t, c):
        xg = jnp.dot(x_ref[t], wihT_ref[...],
                     preferred_element_type=f32) + bih_ref[...]       # [bt, 6Hp]
        xgf_scr[t] = xg[:, 0:H3]
        xgb_scr[t] = xg[:, H3:2 * H3]
        return c

    jax.lax.fori_loop(0, L, proj, 0, unroll=(L <= 16))

    hf_scr[...] = jnp.zeros_like(hf_scr)
    hb_scr[...] = jnp.zeros_like(hb_scr)

    def gates(xg, g, h):
        r = jax.nn.sigmoid(xg[:, 0:Hp] + g[:, 0:Hp])
        z = jax.nn.sigmoid(xg[:, Hp:2 * Hp] + g[:, Hp:2 * Hp])
        n = jnp.tanh(xg[:, 2 * Hp:3 * Hp] + r * g[:, 2 * Hp:3 * Hp])
        return (1.0 - z) * n + z * h

    def step(t, c):
        tb = L - 1 - t
        h_f = hf_scr[...]
        h_b = hb_scr[...]
        h_cat = jnp.concatenate([h_f, h_b], axis=1).astype(bf16)      # [bt, 2Hp]
        g = jnp.dot(h_cat, whhT_ref[...],
                    preferred_element_type=f32) + bhh_ref[...]        # [bt, 6Hp]
        hf_new = gates(xgf_scr[t], g[:, 0:H3], h_f)
        hb_new = gates(xgb_scr[tb], g[:, H3:2 * H3], h_b)
        m_f = (lens > t).astype(f32)
        m_b = (lens > tb).astype(f32)
        outf_ref[t] = m_f * hf_new            # zeros at invalid steps == pad_packed
        outb_ref[tb] = m_b * hb_new
        hf_scr[...] = m_f * hf_new + (1.0 - m_f) * h_f
        hb_scr[...] = m_b * hb_new + (1.0 - m_b) * h_b
        return c

    jax.lax.fori_loop(0, L, step, 0, unroll=(L <= 16))


def pallas_bigru(x_tm, lengths, gp):
    """x_tm: [L, B, Ip] bf16 time-major.  Returns (out_fwd, out_bwd) [L, B, Hp] f32."""
    L, B, Ip = x_tm.shape
    Hp = gp['Hp']
    bt = _pick_bt(B)
    nb = B // bt
    lens = lengths.reshape(B, 1).astype(jnp.int32)
    return pl.pallas_call(
        functools.partial(_bigru_kernel, Hp=Hp, L=L),
        grid=(nb,),
        in_specs=[
            pl.BlockSpec((L, bt, Ip), lambda i: (0, i, 0)),
            pl.BlockSpec((bt, 1), lambda i: (i, 0)),
            pl.BlockSpec(gp['wihT'].shape, lambda i: (0, 0)),
            pl.BlockSpec(gp['bih'].shape, lambda i: (0, 0)),
            pl.BlockSpec(gp['whhT'].shape, lambda i: (0, 0)),
            pl.BlockSpec(gp['bhh'].shape, lambda i: (0, 0)),
        ],
        out_specs=[
            pl.BlockSpec((L, bt, Hp), lambda i: (0, i, 0)),
            pl.BlockSpec((L, bt, Hp), lambda i: (0, i, 0)),
        ],
        out_shape=[
            jax.ShapeDtypeStruct((L, B, Hp), jnp.float32),
            jax.ShapeDtypeStruct((L, B, Hp), jnp.float32),
        ],
        scratch_shapes=[
            pltpu.VMEM((L, bt, 3 * Hp), jnp.float32),
            pltpu.VMEM((L, bt, 3 * Hp), jnp.float32),
            pltpu.VMEM((bt, Hp), jnp.float32),
            pltpu.VMEM((bt, Hp), jnp.float32),
        ],
        compiler_params=pltpu.CompilerParams(
            dimension_semantics=("parallel",),
            vmem_limit_bytes=VMEM_LIMIT),
    )(x_tm, lens, gp['wihT'], gp['bih'], gp['whhT'], gp['bhh'])


# --------------------------------------------------------------------------
# 3. ParaEdgeLearner: sigmoid(v_para^T A h_headline + b).  The per-doc
#    broadcast is a VPU row broadcast (no 0/1 selection matmul).
# --------------------------------------------------------------------------
def _edge_kernel(vp_ref, hh_ref, aT_ref, b_ref, o_ref):
    t = jnp.dot(hh_ref[...].astype(jnp.bfloat16), aT_ref[...],
                preferred_element_type=jnp.float32)                   # [N, Hp]
    e = jnp.sum(vp_ref[...] * t[:, None, :], axis=-1) + b_ref[...]    # [N, S]
    o_ref[...] = jax.nn.sigmoid(e)


# --------------------------------------------------------------------------
# 4. Fused per-document GCN (K layers, residual+relu) + fusion linear +
#    GlobalLocalFusion pooling + 2-layer MLP + final bilinear.
#    Grid over documents (parallel axis), tiny (1+S, 1+S) star adjacency.
# --------------------------------------------------------------------------
def _gcn_tail_kernel(a_ref, x_ref, m_ref, gwT_ref, gb_ref, wfT_ref, bf_ref,
                     w1aT_ref, w1bT_ref, w1cT_ref, b1_ref, w2T_ref, b2_ref,
                     oA_ref, ob_ref, logit_ref, *, K, S1):
    f32, bf16 = jnp.float32, jnp.bfloat16
    a = a_ref[0]                                     # [S1, S1] normalized star adjacency
    x = x_ref[0]                                     # [S1, Gp] node features (this doc)
    m = m_ref[0]                                     # [S1, 1]  validity (row 0 = headline)

    # K GCN layers + residual + relu; fusion linear concat folded into K matmuls
    fpre = jnp.zeros((S1, bf_ref.shape[-1]), f32)
    for k in range(K):                               # static K -> unrolled
        xw = jnp.dot(x.astype(bf16), gwT_ref[k], preferred_element_type=f32)
        agg = jnp.dot(a, xw, preferred_element_type=f32) + gb_ref[k]   # f32 adjacency
        x = jnp.maximum(agg + x, 0.0)
        fpre = fpre + jnp.dot(x.astype(bf16), wfT_ref[k], preferred_element_type=f32)
    h = jnp.maximum(fpre + bf_ref[...], 0.0)         # relu(fusion linear)  [S1, Fp]

    # GlobalLocalFusionBlock pooling over the (1+S) rows of this doc
    g_mean = jnp.sum(h * m, axis=0, keepdims=True) / float(S1)                # [1, Fp]
    g_max = jnp.max(jnp.where(m > 0.0, h, -jnp.inf), axis=0, keepdims=True)   # [1, Fp]

    # MLP layer 1: the 3*Fp concat is folded into three weight blocks; the
    # per-doc g1 term is broadcast over rows by the VPU (no selection matmul)
    g1 = (jnp.dot(g_mean.astype(bf16), w1bT_ref[...], preferred_element_type=f32)
          + jnp.dot(g_max.astype(bf16), w1cT_ref[...], preferred_element_type=f32)
          + b1_ref[...])                                                      # [1, Fp]
    z = jnp.maximum(
        jnp.dot(h.astype(bf16), w1aT_ref[...], preferred_element_type=f32) + g1, 0.0)

    # MLP layer 2 (headline row + S paragraph rows in one matmul)
    mlp = jnp.maximum(
        jnp.dot(z.astype(bf16), w2T_ref[...], preferred_element_type=f32)
        + b2_ref[...], 0.0)                                                   # [S1, Mp]
    mh = mlp[0:1]
    mp = mlp[1:S1]

    # final bilinear: logits_s = m_head^T A m_para_s + b
    t = jnp.dot(mh.astype(bf16), oA_ref[...], preferred_element_type=f32)     # [1, Mp]
    logit_ref[0] = jnp.sum(mp * t, axis=-1, keepdims=True) + ob_ref[...]      # [S, 1]


# --------------------------------------------------------------------------
# Parameter preparation (done ONCE): pad features to 128-lane multiples,
# pre-transpose weights, pre-cast matmul weights to bf16, and pre-fuse the
# bidirectional inter-GRU weights (concatenated gates + block-diag hidden).
# --------------------------------------------------------------------------
def _prep_gru(w_ih, w_hh, b_ih, b_hh):
    H3, I = w_ih.shape
    H = H3 // 3
    Hp, Ip = _rup(H), _rup(I)

    def pad_w(w, in_dim, in_pad):
        w3 = w.reshape(3, H, in_dim)
        w3 = jnp.pad(w3, ((0, 0), (0, Hp - H), (0, in_pad - in_dim)))
        return w3.reshape(3 * Hp, in_pad)

    def pad_b(b):
        b3 = jnp.pad(b.reshape(3, H), ((0, 0), (0, Hp - H)))
        return b3.reshape(1, 3 * Hp).astype(jnp.float32)

    return {
        'wihT': pad_w(w_ih, I, Ip).T.astype(jnp.bfloat16),        # [Ip, 3Hp]
        'whhT': pad_w(w_hh, H, Hp).T.astype(jnp.bfloat16),        # [Hp, 3Hp]
        'bih': pad_b(b_ih),
        'bhh': pad_b(b_hh),
        'H': H, 'Hp': Hp,
    }


def prepare_params(raw):
    e_dim = raw['embed'].shape[1]
    h_dim = raw['head_gru'][1].shape[1]
    g_dim = raw['gnn'][0][0].shape[0]
    K = len(raw['gnn'])
    f_dim = raw['fusion'][0].shape[0]
    m_dim = raw['mlp'][1][0].shape[0]
    Ep, Hp, Gp, Fp, Mp = _rup(e_dim), _rup(h_dim), _rup(g_dim), _rup(f_dim), _rup(m_dim)
    # the reference module's residual add (x + GCNConv(x)) already requires this
    assert h_dim == g_dim, "residual GCN requires gnn_dim == headline_para_dim"

    p = {}
    p['embed'] = jnp.pad(raw['embed'],
                         ((0, 0), (0, Ep - e_dim))).astype(jnp.bfloat16)
    p['head_gru'] = _prep_gru(*raw['head_gru'])
    p['para_gru'] = _prep_gru(*raw['para_gru'])

    # fused bidirectional inter-GRU: gate axes concatenated, block-diag hidden
    pf = _prep_gru(*raw['inter_fwd'])
    pb = _prep_gru(*raw['inter_bwd'])
    zero_h = jnp.zeros_like(pf['whhT'])
    p['inter'] = {
        'wihT': jnp.concatenate([pf['wihT'], pb['wihT']], axis=1),      # [Ip, 6Hp]
        'bih': jnp.concatenate([pf['bih'], pb['bih']], axis=1),         # [1, 6Hp]
        'whhT': jnp.concatenate(
            [jnp.concatenate([pf['whhT'], zero_h], axis=1),
             jnp.concatenate([zero_h, pb['whhT']], axis=1)], axis=0),   # [2Hp, 6Hp]
        'bhh': jnp.concatenate([pf['bhh'], pb['bhh']], axis=1),
        'Hp': pf['Hp'],
    }

    # ParaEdgeLearner bilinear: e = v_para^T A h_head + b  -> store A^T
    p['edge_AT'] = _pad2(raw['edge_A'][0].T, Hp, Hp).astype(jnp.bfloat16)
    p['edge_b'] = raw['edge_b'].reshape(1, 1).astype(jnp.float32)
    # GNN (stacked per-layer weights; all layers [Gp, Gp] in padded space)
    p['gnn_wT'] = jnp.stack(
        [_pad2(w, Gp, Gp).T for (w, _) in raw['gnn']]).astype(jnp.bfloat16)
    p['gnn_b'] = jnp.stack(
        [jnp.pad(b, (0, Gp - g_dim)).reshape(1, Gp) for (_, b) in raw['gnn']]
    ).astype(jnp.float32)
    # fusion linear, split along its concatenated (K*g_dim) input dim
    Wf, bfv = raw['fusion']
    p['fusion_wT'] = jnp.stack(
        [_pad2(Wf[:, k * g_dim:(k + 1) * g_dim], Fp, Gp).T for k in range(K)]
    ).astype(jnp.bfloat16)
    p['fusion_b'] = jnp.pad(bfv, (0, Fp - f_dim)).reshape(1, Fp).astype(jnp.float32)
    # MLP, layer 1 split along its concatenated (3*f_dim) input dim
    (W1, b1), (W2, b2) = raw['mlp']
    for name, j in (('w1aT', 0), ('w1bT', 1), ('w1cT', 2)):
        p[name] = _pad2(W1[:, j * f_dim:(j + 1) * f_dim], Fp, Fp).T.astype(jnp.bfloat16)
    p['b1'] = jnp.pad(b1, (0, Fp - f_dim)).reshape(1, Fp).astype(jnp.float32)
    p['w2T'] = _pad2(W2, Mp, Fp).T.astype(jnp.bfloat16)
    p['b2'] = jnp.pad(b2, (0, Mp - m_dim)).reshape(1, Mp).astype(jnp.float32)
    p['out_A'] = _pad2(raw['out_A'][0], Mp, Mp).astype(jnp.bfloat16)
    p['out_b'] = raw['out_b'].reshape(1, 1).astype(jnp.float32)
    dims = dict(Ep=Ep, Hp=Hp, Gp=Gp, Fp=Fp, Mp=Mp, K=K,
                h_dim=h_dim, h2=raw['inter_fwd'][1].shape[1])
    return p, dims


# --------------------------------------------------------------------------
# Model forward (glue in JAX, compute in Pallas)
# --------------------------------------------------------------------------
def ghde_forward(params, dims, inputs):
    emb = params['embed']
    Hp, K, h2 = dims['Hp'], dims['K'], dims['h2']
    N, S, L = inputs['paras'].shape
    NS = N * S
    S1 = S + 1

    para_lengths = inputs['para_lengths']
    para_mask_f = (para_lengths != 0).astype(jnp.float32)             # [N, S]

    # embedding lookups directly in time-major layout, bf16 (halves GRU input DMA)
    x_head_tm = emb[inputs['headline'].T]                             # [Lh, N, Ep]
    x_para_tm = emb[inputs['paras'].reshape(NS, L).T]                 # [L, NS, Ep]
    # TODO(synk): at production L*B, gather embedding rows in-kernel via
    # scalar-prefetched token ids + manual DMA instead of materializing in HBM.

    # HeadlineEncoder / BodyEncoder: final hiddens, whole recurrence per launch
    h_headline = pallas_gru_final(x_head_tm, inputs['headline_lengths'],
                                  params['head_gru'])                 # [N, Hp]
    h_para_flat = pallas_gru_final(x_para_tm, para_lengths.reshape(NS),
                                   params['para_gru'])                # [NS, Hp]

    # SequenceEncoder: fused bidirectional GRU over paragraphs
    h_para_tm = (h_para_flat.reshape(N, S, Hp)
                 .transpose(1, 0, 2).astype(jnp.bfloat16))            # [S, N, Hp]
    out_f, out_b = pallas_bigru(h_para_tm, inputs['num_para_in_body'],
                                params['inter'])                      # [S, N, Hpi] x2
    v_tm = jnp.concatenate([out_f[..., :h2], out_b[..., :h2]], axis=-1)   # [S, N, 2h2]
    v_para = jnp.pad(v_tm.transpose(1, 0, 2),
                     ((0, 0), (0, 0), (0, Hp - 2 * h2)))              # [N, S, Hp]

    # ParaEdgeLearner
    edge_weight_matrix = pl.pallas_call(
        _edge_kernel,
        out_shape=jax.ShapeDtypeStruct((N, S), jnp.float32),
    )(v_para, h_headline, params['edge_AT'], params['edge_b'])        # [N, S]

    # Per-doc star graph: build tiny [N, 1+S, 1+S] symmetric-normalized
    # adjacencies with broadcasts only (no dense global scatter / matrix).
    w_sym = edge_weight_matrix * para_mask_f                          # [N, S]
    deg = jnp.concatenate([1.0 + jnp.sum(w_sym, axis=1, keepdims=True),
                           1.0 + w_sym], axis=1)                      # [N, S1]
    dis = jax.lax.rsqrt(deg)
    w_ext = jnp.concatenate([jnp.zeros((N, 1), jnp.float32), w_sym], axis=1)
    e0 = jax.nn.one_hot(0, S1, dtype=jnp.float32)
    A = (jnp.eye(S1, dtype=jnp.float32)[None]
         + e0[None, :, None] * w_ext[:, None, :]
         + w_ext[:, :, None] * e0[None, None, :])                     # [N, S1, S1]
    A_norm = A * dis[:, :, None] * dis[:, None, :]

    x_nodes = jnp.concatenate([h_headline[:, None, :], v_para], axis=1)   # [N, S1, Hp]
    mask_s1 = jnp.concatenate([jnp.ones((N, 1), jnp.float32), para_mask_f],
                              axis=1)[..., None]                      # [N, S1, 1]

    # fused per-doc GCN + fusion linear + pooling + MLP + bilinear: one launch,
    # parallel grid over documents (both v7x TensorCores busy)
    logits3 = pl.pallas_call(
        functools.partial(_gcn_tail_kernel, K=K, S1=S1),
        grid=(N,),
        in_specs=[
            pl.BlockSpec((1, S1, S1), lambda i: (i, 0, 0)),
            pl.BlockSpec((1, S1, Hp), lambda i: (i, 0, 0)),
            pl.BlockSpec((1, S1, 1), lambda i: (i, 0, 0)),
            pl.BlockSpec(params['gnn_wT'].shape, lambda i: (0, 0, 0)),
            pl.BlockSpec(params['gnn_b'].shape, lambda i: (0, 0, 0)),
            pl.BlockSpec(params['fusion_wT'].shape, lambda i: (0, 0, 0)),
            pl.BlockSpec(params['fusion_b'].shape, lambda i: (0, 0)),
            pl.BlockSpec(params['w1aT'].shape, lambda i: (0, 0)),
            pl.BlockSpec(params['w1bT'].shape, lambda i: (0, 0)),
            pl.BlockSpec(params['w1cT'].shape, lambda i: (0, 0)),
            pl.BlockSpec(params['b1'].shape, lambda i: (0, 0)),
            pl.BlockSpec(params['w2T'].shape, lambda i: (0, 0)),
            pl.BlockSpec(params['b2'].shape, lambda i: (0, 0)),
            pl.BlockSpec(params['out_A'].shape, lambda i: (0, 0)),
            pl.BlockSpec(params['out_b'].shape, lambda i: (0, 0)),
        ],
        out_specs=pl.BlockSpec((1, S, 1), lambda i: (i, 0, 0)),
        out_shape=jax.ShapeDtypeStruct((N, S, 1), jnp.float32),
        compiler_params=pltpu.CompilerParams(
            dimension_semantics=("parallel",),
            vmem_limit_bytes=VMEM_LIMIT),
    )(A_norm, x_nodes, mask_s1,
      params['gnn_wT'], params['gnn_b'], params['fusion_wT'], params['fusion_b'],
      params['w1aT'], params['w1bT'], params['w1cT'], params['b1'],
      params['w2T'], params['b2'], params['out_A'], params['out_b'])

    para_logits = logits3[..., 0]                                     # [N, S]
    # matches the reference: a document with no valid paragraph gives -inf
    masked = jnp.where(para_lengths == 0, -jnp.inf, para_logits)
    doc_logits = jnp.max(masked, axis=1)

    return {'doc_logits': doc_logits,
            'para_logits': para_logits,
            'para_edge_weights': edge_weight_matrix}


# --------------------------------------------------------------------------
# Deterministic parameter init (torch-layout raw params)
# --------------------------------------------------------------------------
def init_params(key, vocab, e_dim, h_dim, g_dim, K, f_dim, m_dim):
    keys = iter(jax.random.split(key, 64))

    def w(shape, scale=0.1):
        return scale * jax.random.normal(next(keys), shape, jnp.float32)

    def gru_params(in_dim, hid):
        return (w((3 * hid, in_dim)), w((3 * hid, hid)), w((3 * hid,)), w((3 * hid,)))

    params = {
        'embed': w((vocab, e_dim), 1.0),
        'head_gru': gru_params(e_dim, h_dim),
        'para_gru': gru_params(e_dim, h_dim),
        'inter_fwd': gru_params(h_dim, h_dim // 2),
        'inter_bwd': gru_params(h_dim, h_dim // 2),
        'edge_A': w((1, h_dim, h_dim)),
        'edge_b': w((1,)),
        'fusion': (w((f_dim, K * g_dim)), w((f_dim,))),
        'mlp': ((w((f_dim, 3 * f_dim)), w((f_dim,))), (w((m_dim, f_dim)), w((m_dim,)))),
        'out_A': w((1, m_dim, m_dim)),
        'out_b': w((1,)),
    }
    gnn = []
    in_f = h_dim
    for _ in range(K):
        gnn.append((w((g_dim, in_f)), w((g_dim,))))
        in_f = g_dim
    params['gnn'] = gnn
    return params


if __name__ == "__main__":
    key = jax.random.PRNGKey(0)
    k_param, k_head, k_para = jax.random.split(key, 3)

    # Small shapes consistent with the module's forward
    N, S, L, Lh = 2, 4, 8, 8
    vocab, e_dim, h_dim, g_dim, K, f_dim, m_dim = 50, 32, 32, 32, 3, 32, 32

    raw = init_params(k_param, vocab, e_dim, h_dim, g_dim, K, f_dim, m_dim)
    params, dims = prepare_params(raw)

    inputs = {
        'headline': jax.random.randint(k_head, (N, Lh), 0, vocab),
        'headline_lengths': jnp.array([Lh, 5], jnp.int32),
        'paras': jax.random.randint(k_para, (N, S, L), 0, vocab),
        'para_lengths': jnp.array([[5, 3, 8, 0], [4, 2, 0, 0]], jnp.int32),
        'num_para_in_body': jnp.array([3, 2], jnp.int32),
    }

    out = ghde_forward(params, dims, inputs)
    out = jax.tree_util.tree_map(jax.block_until_ready, out)

    assert out['doc_logits'].shape == (N,)
    assert out['para_logits'].shape == (N, S)
    assert out['para_edge_weights'].shape == (N, S)
    assert bool(jnp.all(jnp.isfinite(out['doc_logits'])))
    assert bool(jnp.all(jnp.isfinite(out['para_logits'])))
    print("KERNEL_OK")
</pallas_src>

<mosaic_0001>
module attributes {stable_mosaic.version = 11 : i64} {
  func.func @_gru_final_kernel(%arg0: i32, %arg1: memref<8x2x128xbf16, #tpu.memory_space<vmem>>, %arg2: memref<2x1xi32, #tpu.memory_space<vmem>>, %arg3: memref<128x384xbf16, #tpu.memory_space<vmem>>, %arg4: memref<1x384xf32, #tpu.memory_space<vmem>>, %arg5: memref<128x384xbf16, #tpu.memory_space<vmem>>, %arg6: memref<1x384xf32, #tpu.memory_space<vmem>>, %arg7: memref<2x128xf32, #tpu.memory_space<vmem>>, %arg8: memref<2x128xf32, #tpu.memory_space<vmem>>) attributes {dimension_semantics = [#tpu.dimension_semantics<parallel>], iteration_bounds = array<i64: 1>, scalar_prefetch = 0 : i64, scratch_operands = 1 : i64, tpu.core_type = #tpu.core_type<tc>, window_params = [{transform_indices = @transform_0, window_bounds = array<i64: 8, 2, 128>}, {transform_indices = @transform_1, window_bounds = array<i64: 2, 1>}, {pipeline_mode = #tpu.pipeline_mode<synchronous>, transform_indices = @transform_2, window_bounds = array<i64: 128, 384>}, {pipeline_mode = #tpu.pipeline_mode<synchronous>, transform_indices = @transform_3, window_bounds = array<i64: 1, 384>}, {pipeline_mode = #tpu.pipeline_mode<synchronous>, transform_indices = @transform_4, window_bounds = array<i64: 128, 384>}, {pipeline_mode = #tpu.pipeline_mode<synchronous>, transform_indices = @transform_5, window_bounds = array<i64: 1, 384>}, {transform_indices = @transform_6, window_bounds = array<i64: 2, 128>}]} {
    %c0 = arith.constant 0 : index
    %c0_0 = arith.constant 0 : index
    %0 = vector.load %arg2[%c0, %c0_0] : memref<2x1xi32, #tpu.memory_space<vmem>>, vector<2x1xi32>
    %cst = arith.constant 0.000000e+00 : f32
    %1 = vector.broadcast %cst : f32 to vector<2x128xf32>
    %c0_1 = arith.constant 0 : index
    %c0_2 = arith.constant 0 : index
    %2 = vector.load %arg8[%c0_1, %c0_2] : memref<2x128xf32, #tpu.memory_space<vmem>>, vector<2x128xf32>
    tpu.vector_store %arg8[%c0_1, %c0_2], %1 {strides = array<i32>} : memref<2x128xf32, #tpu.memory_space<vmem>>, vector<2x128xf32>,
    %c0_i32 = arith.constant 0 : i32
    %c0_3 = arith.constant 0 : index
    %c0_4 = arith.constant 0 : index
    %3 = vector.load %arg8[%c0_3, %c0_4] : memref<2x128xf32, #tpu.memory_space<vmem>>, vector<2x128xf32>
    %4 = arith.index_cast %c0_i32 : i32 to index
    %c0_5 = arith.constant 0 : index
    %c0_6 = arith.constant 0 : index
    %5 = vector.load %arg1[%4, %c0_5, %c0_6] : memref<8x2x128xbf16, #tpu.memory_space<vmem>>, vector<1x2x128xbf16>
    %6 = vector.shape_cast %5 : vector<1x2x128xbf16> to vector<2x128xbf16>
    %c0_7 = arith.constant 0 : index
    %c0_8 = arith.constant 0 : index
    %7 = vector.load %arg3[%c0_7, %c0_8] : memref<128x384xbf16, #tpu.memory_space<vmem>>, vector<128x384xbf16>
    %cst_9 = arith.constant dense<0.000000e+00> : vector<2x384xf32>
    %8 = tpu.matmul %6, %7, %cst_9 {dimension_numbers = #tpu.dot_dimension_numbers<[1], [0], [0], [1], [0, 0, 1, 1], [], []>} : vector<2x128xbf16>, vector<128x384xbf16>, vector<2x384xf32> -> vector<2x384xf32>
    %c0_10 = arith.constant 0 : index
    %c0_11 = arith.constant 0 : index
    %9 = vector.load %arg4[%c0_10, %c0_11] : memref<1x384xf32, #tpu.memory_space<vmem>>, vector<1x384xf32>
    %10 = vector.broadcast %9 : vector<1x384xf32> to vector<2x384xf32>
    %11 = arith.addf %8, %10 : vector<2x384xf32>
    %12 = arith.truncf %3 : vector<2x128xf32> to vector<2x128xbf16>
    %c0_12 = arith.constant 0 : index
    %c0_13 = arith.constant 0 : index
    %13 = vector.load %arg5[%c0_12, %c0_13] : memref<128x384xbf16, #tpu.memory_space<vmem>>, vector<128x384xbf16>
    %cst_14 = arith.constant dense<0.000000e+00> : vector<2x384xf32>
    %14 = tpu.matmul %12, %13, %cst_14 {dimension_numbers = #tpu.dot_dimension_numbers<[1], [0], [0], [1], [0, 0, 1, 1], [], []>} : vector<2x128xbf16>, vector<128x384xbf16>, vector<2x384xf32> -> vector<2x384xf32>
    %c0_15 = arith.constant 0 : index
    %c0_16 = arith.constant 0 : index
    %15 = vector.load %arg6[%c0_15, %c0_16] : memref<1x384xf32, #tpu.memory_space<vmem>>, vector<1x384xf32>
    %16 = vector.broadcast %15 : vector<1x384xf32> to vector<2x384xf32>
    %17 = arith.addf %14, %16 : vector<2x384xf32>
    %18 = vector.extract_strided_slice %11 {offsets = [0, 0], sizes = [2, 128], strides = [1, 1]} : vector<2x384xf32> to vector<2x128xf32>
    %19 = vector.extract_strided_slice %17 {offsets = [0, 0], sizes = [2, 128], strides = [1, 1]} : vector<2x384xf32> to vector<2x128xf32>
    %20 = arith.addf %18, %19 : vector<2x128xf32>
    %21 = arith.negf %20 : vector<2x128xf32>
    %22 = math.exp %21 : vector<2x128xf32>
    %cst_17 = arith.constant 1.000000e+00 : f32
    %23 = vector.broadcast %cst_17 : f32 to vector<2x128xf32>
    %24 = arith.addf %23, %22 : vector<2x128xf32>
    %25 = arith.divf %23, %24 : vector<2x128xf32>
    %26 = vector.extract_strided_slice %11 {offsets = [0, 128], sizes = [2, 128], strides = [1, 1]} : vector<2x384xf32> to vector<2x128xf32>
    %27 = vector.extract_strided_slice %17 {offsets = [0, 128], sizes = [2, 128], strides = [1, 1]} : vector<2x384xf32> to vector<2x128xf32>
    %28 = arith.addf %26, %27 : vector<2x128xf32>
    %29 = arith.negf %28 : vector<2x128xf32>
    %30 = math.exp %29 : vector<2x128xf32>
    %cst_18 = arith.constant 1.000000e+00 : f32
    %31 = vector.broadcast %cst_18 : f32 to vector<2x128xf32>
    %32 = arith.addf %31, %30 : vector<2x128xf32>
    %33 = arith.divf %31, %32 : vector<2x128xf32>
    %34 = vector.extract_strided_slice %11 {offsets = [0, 256], sizes = [2, 128], strides = [1, 1]} : vector<2x384xf32> to vector<2x128xf32>
    %35 = vector.extract_strided_slice %17 {offsets = [0, 256], sizes = [2, 128], strides = [1, 1]} : vector<2x384xf32> to vector<2x128xf32>
    %36 = arith.mulf %25, %35 : vector<2x128xf32>
    %37 = arith.addf %34, %36 : vector<2x128xf32>
    %38 = math.tanh %37 : vector<2x128xf32>
    %cst_19 = arith.constant 1.000000e+00 : f32
    %39 = vector.broadcast %cst_19 : f32 to vector<2x128xf32>
    %40 = arith.subf %39, %33 : vector<2x128xf32>
    %41 = arith.mulf %40, %38 : vector<2x128xf32>
    %42 = arith.mulf %33, %3 : vector<2x128xf32>
    %43 = arith.addf %41, %42 : vector<2x128xf32>
    %44 = vector.broadcast %c0_i32 : i32 to vector<2x1xi32>
    %45 = arith.cmpi sgt, %0, %44 : vector<2x1xi32>
    %46 = arith.extui %45 : vector<2x1xi1> to vector<2x1xi32>
    %47 = arith.sitofp %46 : vector<2x1xi32> to vector<2x1xf32>
    %48 = vector.broadcast %47 : vector<2x1xf32> to vector<2x128xf32>
    %49 = arith.mulf %48, %43 : vector<2x128xf32>
    %cst_20 = arith.constant 1.000000e+00 : f32
    %50 = vector.broadcast %cst_20 : f32 to vector<2x1xf32>
    %51 = arith.subf %50, %47 : vector<2x1xf32>
    %52 = vector.broadcast %51 : vector<2x1xf32> to vector<2x128xf32>
    %53 = arith.mulf %52, %3 : vector<2x128xf32>
    %54 = arith.addf %49, %53 : vector<2x128xf32>
    %c0_21 = arith.constant 0 : index
    %c0_22 = arith.constant 0 : index
    %55 = vector.load %arg8[%c0_21, %c0_22] : memref<2x128xf32, #tpu.memory_space<vmem>>, vector<2x128xf32>
    tpu.vector_store %arg8[%c0_21, %c0_22], %54 {strides = array<i32>} : memref<2x128xf32, #tpu.memory_space<vmem>>, vector<2x128xf32>,
    %c1_i32 = arith.constant 1 : i32
    %c0_23 = arith.constant 0 : index
    %c0_24 = arith.constant 0 : index
    %56 = vector.load %arg8[%c0_23, %c0_24] : memref<2x128xf32, #tpu.memory_space<vmem>>, vector<2x128xf32>
    %57 = arith.index_cast %c1_i32 : i32 to index
    %c0_25 = arith.constant 0 : index
    %c0_26 = arith.constant 0 : index
    %58 = vector.load %arg1[%57, %c0_25, %c0_26] : memref<8x2x128xbf16, #tpu.memory_space<vmem>>, vector<1x2x128xbf16>
    %59 = vector.shape_cast %58 : vector<1x2x128xbf16> to vector<2x128xbf16>
    %c0_27 = arith.constant 0 : index
    %c0_28 = arith.constant 0 : index
    %60 = vector.load %arg3[%c0_27, %c0_28] : memref<128x384xbf16, #tpu.memory_space<vmem>>, vector<128x384xbf16>
    %cst_29 = arith.constant dense<0.000000e+00> : vector<2x384xf32>
    %61 = tpu.matmul %59, %60, %cst_29 {dimension_numbers = #tpu.dot_dimension_numbers<[1], [0], [0], [1], [0, 0, 1, 1], [], []>} : vector<2x128xbf16>, vector<128x384xbf16>, vector<2x384xf32> -> vector<2x384xf32>
    %c0_30 = arith.constant 0 : index
    %c0_31 = arith.constant 0 : index
    %62 = vector.load %arg4[%c0_30, %c0_31] : memref<1x384xf32, #tpu.memory_space<vmem>>, vector<1x384xf32>
    %63 = vector.broadcast %62 : vector<1x384xf32> to vector<2x384xf32>
    %64 = arith.addf %61, %63 : vector<2x384xf32>
    %65 = arith.truncf %56 : vector<2x128xf32> to vector<2x128xbf16>
    %c0_32 = arith.constant 0 : index
    %c0_33 = arith.constant 0 : index
    %66 = vector.load %arg5[%c0_32, %c0_33] : memref<128x384xbf16, #tpu.memory_space<vmem>>, vector<128x384xbf16>
    %cst_34 = arith.constant dense<0.000000e+00> : vector<2x384xf32>
    %67 = tpu.matmul %65, %66, %cst_34 {dimension_numbers = #tpu.dot_dimension_numbers<[1], [0], [0], [1], [0, 0, 1, 1], [], []>} : vector<2x128xbf16>, vector<128x384xbf16>, vector<2x384xf32> -> vector<2x384xf32>
    %c0_35 = arith.constant 0 : index
    %c0_36 = arith.constant 0 : index
    %68 = vector.load %arg6[%c0_35, %c0_36] : memref<1x384xf32, #tpu.memory_space<vmem>>, vector<1x384xf32>
    %69 = vector.broadcast %68 : vector<1x384xf32> to vector<2x384xf32>
    %70 = arith.addf %67, %69 : vector<2x384xf32>
    %71 = vector.extract_strided_slice %64 {offsets = [0, 0], sizes = [2, 128], strides = [1, 1]} : vector<2x384xf32> to vector<2x128xf32>
    %72 = vector.extract_strided_slice %70 {offsets = [0, 0], sizes = [2, 128], strides = [1, 1]} : vector<2x384xf32> to vector<2x128xf32>
    %73 = arith.addf %71, %72 : vector<2x128xf32>
    %74 = arith.negf %73 : vector<2x128xf32>
    %75 = math.exp %74 : vector<2x128xf32>
    %cst_37 = arith.constant 1.000000e+00 : f32
    %76 = vector.broadcast %cst_37 : f32 to vector<2x128xf32>
    %77 = arith.addf %76, %75 : vector<2x128xf32>
    %78 = arith.divf %76, %77 : vector<2x128xf32>
    %79 = vector.extract_strided_slice %64 {offsets = [0, 128], sizes = [2, 128], strides = [1, 1]} : vector<2x384xf32> to vector<2x128xf32>
    %80 = vector.extract_strided_slice %70 {offsets = [0, 128], sizes = [2, 128], strides = [1, 1]} : vector<2x384xf32> to vector<2x128xf32>
    %81 = arith.addf %79, %80 : vector<2x128xf32>
    %82 = arith.negf %81 : vector<2x128xf32>
    %83 = math.exp %82 : vector<2x128xf32>
    %cst_38 = arith.constant 1.000000e+00 : f32
    %84 = vector.broadcast %cst_38 : f32 to vector<2x128xf32>
    %85 = arith.addf %84, %83 : vector<2x128xf32>
    %86 = arith.divf %84, %85 : vector<2x128xf32>
    %87 = vector.extract_strided_slice %64 {offsets = [0, 256], sizes = [2, 128], strides = [1, 1]} : vector<2x384xf32> to vector<2x128xf32>
    %88 = vector.extract_strided_slice %70 {offsets = [0, 256], sizes = [2, 128], strides = [1, 1]} : vector<2x384xf32> to vector<2x128xf32>
    %89 = arith.mulf %78, %88 : vector<2x128xf32>
    %90 = arith.addf %87, %89 : vector<2x128xf32>
    %91 = math.tanh %90 : vector<2x128xf32>
    %cst_39 = arith.constant 1.000000e+00 : f32
    %92 = vector.broadcast %cst_39 : f32 to vector<2x128xf32>
    %93 = arith.subf %92, %86 : vector<2x128xf32>
    %94 = arith.mulf %93, %91 : vector<2x128xf32>
    %95 = arith.mulf %86, %56 : vector<2x128xf32>
    %96 = arith.addf %94, %95 : vector<2x128xf32>
    %97 = vector.broadcast %c1_i32 : i32 to vector<2x1xi32>
    %98 = arith.cmpi sgt, %0, %97 : vector<2x1xi32>
    %99 = arith.extui %98 : vector<2x1xi1> to vector<2x1xi32>
    %100 = arith.sitofp %99 : vector<2x1xi32> to vector<2x1xf32>
    %101 = vector.broadcast %100 : vector<2x1xf32> to vector<2x128xf32>
    %102 = arith.mulf %101, %96 : vector<2x128xf32>
    %cst_40 = arith.constant 1.000000e+00 : f32
    %103 = vector.broadcast %cst_40 : f32 to vector<2x1xf32>
    %104 = arith.subf %103, %100 : vector<2x1xf32>
    %105 = vector.broadcast %104 : vector<2x1xf32> to vector<2x128xf32>
    %106 = arith.mulf %105, %56 : vector<2x128xf32>
    %107 = arith.addf %102, %106 : vector<2x128xf32>
    %c0_41 = arith.constant 0 : index
    %c0_42 = arith.constant 0 : index
    %108 = vector.load %arg8[%c0_41, %c0_42] : memref<2x128xf32, #tpu.memory_space<vmem>>, vector<2x128xf32>
    tpu.vector_store %arg8[%c0_41, %c0_42], %107 {strides = array<i32>} : memref<2x128xf32, #tpu.memory_space<vmem>>, vector<2x128xf32>,
    %c2_i32 = arith.constant 2 : i32
    %c0_43 = arith.constant 0 : index
    %c0_44 = arith.constant 0 : index
    %109 = vector.load %arg8[%c0_43, %c0_44] : memref<2x128xf32, #tpu.memory_space<vmem>>, vector<2x128xf32>
    %110 = arith.index_cast %c2_i32 : i32 to index
    %c0_45 = arith.constant 0 : index
    %c0_46 = arith.constant 0 : index
    %111 = vector.load %arg1[%110, %c0_45, %c0_46] : memref<8x2x128xbf16, #tpu.memory_space<vmem>>, vector<1x2x128xbf16>
    %112 = vector.shape_cast %111 : vector<1x2x128xbf16> to vector<2x128xbf16>
    %c0_47 = arith.constant 0 : index
    %c0_48 = arith.constant 0 : index
    %113 = vector.load %arg3[%c0_47, %c0_48] : memref<128x384xbf16, #tpu.memory_space<vmem>>, vector<128x384xbf16>
    %cst_49 = arith.constant dense<0.000000e+00> : vector<2x384xf32>
    %114 = tpu.matmul %112, %113, %cst_49 {dimension_numbers = #tpu.dot_dimension_numbers<[1], [0], [0], [1], [0, 0, 1, 1], [], []>} : vector<2x128xbf16>, vector<128x384xbf16>, vector<2x384xf32> -> vector<2x384xf32>
    %c0_50 = arith.constant 0 : index
    %c0_51 = arith.constant 0 : index
    %115 = vector.load %arg4[%c0_50, %c0_51] : memref<1x384xf32, #tpu.memory_space<vmem>>, vector<1x384xf32>
    %116 = vector.broadcast %115 : vector<1x384xf32> to vector<2x384xf32>
    %117 = arith.addf %114, %116 : vector<2x384xf32>
    %118 = arith.truncf %109 : vector<2x128xf32> to vector<2x128xbf16>
    %c0_52 = arith.constant 0 : index
    %c0_53 = arith.constant 0 : index
    %119 = vector.load %arg5[%c0_52, %c0_53] : memref<128x384xbf16, #tpu.memory_space<vmem>>, vector<128x384xbf16>
    %cst_54 = arith.constant dense<0.000000e+00> : vector<2x384xf32>
    %120 = tpu.matmul %118, %119, %cst_54 {dimension_numbers = #tpu.dot_dimension_numbers<[1], [0], [0], [1], [0, 0, 1, 1], [], []>} : vector<2x128xbf16>, vector<128x384xbf16>, vector<2x384xf32> -> vector<2x384xf32>
    %c0_55 = arith.constant 0 : index
    %c0_56 = arith.constant 0 : index
    %121 = vector.load %arg6[%c0_55, %c0_56] : memref<1x384xf32, #tpu.memory_space<vmem>>, vector<1x384xf32>
    %122 = vector.broadcast %121 : vector<1x384xf32> to vector<2x384xf32>
    %123 = arith.addf %120, %122 : vector<2x384xf32>
    %124 = vector.extract_strided_slice %117 {offsets = [0, 0], sizes = [2, 128], strides = [1, 1]} : vector<2x384xf32> to vector<2x128xf32>
    %125 = vector.extract_strided_slice %123 {offsets = [0, 0], sizes = [2, 128], strides = [1, 1]} : vector<2x384xf32> to vector<2x128xf32>
    %126 = arith.addf %124, %125 : vector<2x128xf32>
    %127 = arith.negf %126 : vector<2x128xf32>
    %128 = math.exp %127 : vector<2x128xf32>
    %cst_57 = arith.constant 1.000000e+00 : f32
    %129 = vector.broadcast %cst_57 : f32 to vector<2x128xf32>
    %130 = arith.addf %129, %128 : vector<2x128xf32>
    %131 = arith.divf %129, %130 : vector<2x128xf32>
    %132 = vector.extract_strided_slice %117 {offsets = [0, 128], sizes = [2, 128], strides = [1, 1]} : vector<2x384xf32> to vector<2x128xf32>
    %133 = vector.extract_strided_slice %123 {offsets = [0, 128], sizes = [2, 128], strides = [1, 1]} : vector<2x384xf32> to vector<2x128xf32>
    %134 = arith.addf %132, %133 : vector<2x128xf32>
    %135 = arith.negf %134 : vector<2x128xf32>
    %136 = math.exp %135 : vector<2x128xf32>
    %cst_58 = arith.constant 1.000000e+00 : f32
    %137 = vector.broadcast %cst_58 : f32 to vector<2x128xf32>
    %138 = arith.addf %137, %136 : vector<2x128xf32>
    %139 = arith.divf %137, %138 : vector<2x128xf32>
    %140 = vector.extract_strided_slice %117 {offsets = [0, 256], sizes = [2, 128], strides = [1, 1]} : vector<2x384xf32> to vector<2x128xf32>
    %141 = vector.extract_strided_slice %123 {offsets = [0, 256], sizes = [2, 128], strides = [1, 1]} : vector<2x384xf32> to vector<2x128xf32>
    %142 = arith.mulf %131, %141 : vector<2x128xf32>
    %143 = arith.addf %140, %142 : vector<2x128xf32>
    %144 = math.tanh %143 : vector<2x128xf32>
    %cst_59 = arith.constant 1.000000e+00 : f32
    %145 = vector.broadcast %cst_59 : f32 to vector<2x128xf32>
    %146 = arith.subf %145, %139 : vector<2x128xf32>
    %147 = arith.mulf %146, %144 : vector<2x128xf32>
    %148 = arith.mulf %139, %109 : vector<2x128xf32>
    %149 = arith.addf %147, %148 : vector<2x128xf32>
    %150 = vector.broadcast %c2_i32 : i32 to vector<2x1xi32>
    %151 = arith.cmpi sgt, %0, %150 : vector<2x1xi32>
    %152 = arith.extui %151 : vector<2x1xi1> to vector<2x1xi32>
    %153 = arith.sitofp %152 : vector<2x1xi32> to vector<2x1xf32>
    %154 = vector.broadcast %153 : vector<2x1xf32> to vector<2x128xf32>
    %155 = arith.mulf %154, %149 : vector<2x128xf32>
    %cst_60 = arith.constant 1.000000e+00 : f32
    %156 = vector.broadcast %cst_60 : f32 to vector<2x1xf32>
    %157 = arith.subf %156, %153 : vector<2x1xf32>
    %158 = vector.broadcast %157 : vector<2x1xf32> to vector<2x128xf32>
    %159 = arith.mulf %158, %109 : vector<2x128xf32>
    %160 = arith.addf %155, %159 : vector<2x128xf32>
    %c0_61 = arith.constant 0 : index
    %c0_62 = arith.constant 0 : index
    %161 = vector.load %arg8[%c0_61, %c0_62] : memref<2x128xf32, #tpu.memory_space<vmem>>, vector<2x128xf32>
    tpu.vector_store %arg8[%c0_61, %c0_62], %160 {strides = array<i32>} : memref<2x128xf32, #tpu.memory_space<vmem>>, vector<2x128xf32>,
    %c3_i32 = arith.constant 3 : i32
    %c0_63 = arith.constant 0 : index
    %c0_64 = arith.constant 0 : index
    %162 = vector.load %arg8[%c0_63, %c0_64] : memref<2x128xf32, #tpu.memory_space<vmem>>, vector<2x128xf32>
    %163 = arith.index_cast %c3_i32 : i32 to index
    %c0_65 = arith.constant 0 : index
    %c0_66 = arith.constant 0 : index
    %164 = vector.load %arg1[%163, %c0_65, %c0_66] : memref<8x2x128xbf16, #tpu.memory_space<vmem>>, vector<1x2x128xbf16>
    %165 = vector.shape_cast %164 : vector<1x2x128xbf16> to vector<2x128xbf16>
    %c0_67 = arith.constant 0 : index
    %c0_68 = arith.constant 0 : index
    %166 = vector.load %arg3[%c0_67, %c0_68] : memref<128x384xbf16, #tpu.memory_space<vmem>>, vector<128x384xbf16>
    %cst_69 = arith.constant dense<0.000000e+00> : vector<2x384xf32>
    %167 = tpu.matmul %165, %166, %cst_69 {dimension_numbers = #tpu.dot_dimension_numbers<[1], [0], [0], [1], [0, 0, 1, 1], [], []>} : vector<2x128xbf16>, vector<128x384xbf16>, vector<2x384xf32> -> vector<2x384xf32>
    %c0_70 = arith.constant 0 : index
    %c0_71 = arith.constant 0 : index
    %168 = vector.load %arg4[%c0_70, %c0_71] : memref<1x384xf32, #tpu.memory_space<vmem>>, vector<1x384xf32>
    %169 = vector.broadcast %168 : vector<1x384xf32> to vector<2x384xf32>
    %170 = arith.addf %167, %169 : vector<2x384xf32>
    %171 = arith.truncf %162 : vector<2x128xf32> to vector<2x128xbf16>
    %c0_72 = arith.constant 0 : index
    %c0_73 = arith.constant 0 : index
    %172 = vector.load %arg5[%c0_72, %c0_73] : memref<128x384xbf16, #tpu.memory_space<vmem>>, vector<128x384xbf16>
    %cst_74 = arith.constant dense<0.000000e+00> : vector<2x384xf32>
    %173 = tpu.matmul %171, %172, %cst_74 {dimension_numbers = #tpu.dot_dimension_numbers<[1], [0], [0], [1], [0, 0, 1, 1], [], []>} : vector<2x128xbf16>, vector<128x384xbf16>, vector<2x384xf32> -> vector<2x384xf32>
    %c0_75 = arith.constant 0 : index
    %c0_76 = arith.constant 0 : index
    %174 = vector.load %arg6[%c0_75, %c0_76] : memref<1x384xf32, #tpu.memory_space<vmem>>, vector<1x384xf32>
    %175 = vector.broadcast %174 : vector<1x384xf32> to vector<2x384xf32>
    %176 = arith.addf %173, %175 : vector<2x384xf32>
    %177 = vector.extract_strided_slice %170 {offsets = [0, 0], sizes = [2, 128], strides = [1, 1]} : vector<2x384xf32> to vector<2x128xf32>
    %178 = vector.extract_strided_slice %176 {offsets = [0, 0], sizes = [2, 128], strides = [1, 1]} : vector<2x384xf32> to vector<2x128xf32>
    %179 = arith.addf %177, %178 : vector<2x128xf32>
    %180 = arith.negf %179 : vector<2x128xf32>
    %181 = math.exp %180 : vector<2x128xf32>
    %cst_77 = arith.constant 1.000000e+00 : f32
    %182 = vector.broadcast %cst_77 : f32 to vector<2x128xf32>
    %183 = arith.addf %182, %181 : vector<2x128xf32>
    %184 = arith.divf %182, %183 : vector<2x128xf32>
    %185 = vector.extract_strided_slice %170 {offsets = [0, 128], sizes = [2, 128], strides = [1, 1]} : vector<2x384xf32> to vector<2x128xf32>
    %186 = vector.extract_strided_slice %176 {offsets = [0, 128], sizes = [2, 128], strides = [1, 1]} : vector<2x384xf32> to vector<2x128xf32>
    %187 = arith.addf %185, %186 : vector<2x128xf32>
    %188 = arith.negf %187 : vector<2x128xf32>
    %189 = math.exp %188 : vector<2x128xf32>
    %cst_78 = arith.constant 1.000000e+00 : f32
    %190 = vector.broadcast %cst_78 : f32 to vector<2x128xf32>
    %191 = arith.addf %190, %189 : vector<2x128xf32>
    %192 = arith.divf %190, %191 : vector<2x128xf32>
    %193 = vector.extract_strided_slice %170 {offsets = [0, 256], sizes = [2, 128], strides = [1, 1]} : vector<2x384xf32> to vector<2x128xf32>
    %194 = vector.extract_strided_slice %176 {offsets = [0, 256], sizes = [2, 128], strides = [1, 1]} : vector<2x384xf32> to vector<2x128xf32>
    %195 = arith.mulf %184, %194 : vector<2x128xf32>
    %196 = arith.addf %193, %195 : vector<2x128xf32>
    %197 = math.tanh %196 : vector<2x128xf32>
    %cst_79 = arith.constant 1.000000e+00 : f32
    %198 = vector.broadcast %cst_79 : f32 to vector<2x128xf32>
    %199 = arith.subf %198, %192 : vector<2x128xf32>
    %200 = arith.mulf %199, %197 : vector<2x128xf32>
    %201 = arith.mulf %192, %162 : vector<2x128xf32>
    %202 = arith.addf %200, %201 : vector<2x128xf32>
    %203 = vector.broadcast %c3_i32 : i32 to vector<2x1xi32>
    %204 = arith.cmpi sgt, %0, %203 : vector<2x1xi32>
    %205 = arith.extui %204 : vector<2x1xi1> to vector<2x1xi32>
    %206 = arith.sitofp %205 : vector<2x1xi32> to vector<2x1xf32>
    %207 = vector.broadcast %206 : vector<2x1xf32> to vector<2x128xf32>
    %208 = arith.mulf %207, %202 : vector<2x128xf32>
    %cst_80 = arith.constant 1.000000e+00 : f32
    %209 = vector.broadcast %cst_80 : f32 to vector<2x1xf32>
    %210 = arith.subf %209, %206 : vector<2x1xf32>
    %211 = vector.broadcast %210 : vector<2x1xf32> to vector<2x128xf32>
    %212 = arith.mulf %211, %162 : vector<2x128xf32>
    %213 = arith.addf %208, %212 : vector<2x128xf32>
    %c0_81 = arith.constant 0 : index
    %c0_82 = arith.constant 0 : index
    %214 = vector.load %arg8[%c0_81, %c0_82] : memref<2x128xf32, #tpu.memory_space<vmem>>, vector<2x128xf32>
    tpu.vector_store %arg8[%c0_81, %c0_82], %213 {strides = array<i32>} : memref<2x128xf32, #tpu.memory_space<vmem>>, vector<2x128xf32>,
    %c4_i32 = arith.constant 4 : i32
    %c0_83 = arith.constant 0 : index
    %c0_84 = arith.constant 0 : index
    %215 = vector.load %arg8[%c0_83, %c0_84] : memref<2x128xf32, #tpu.memory_space<vmem>>, vector<2x128xf32>
    %216 = arith.index_cast %c4_i32 : i32 to index
    %c0_85 = arith.constant 0 : index
    %c0_86 = arith.constant 0 : index
    %217 = vector.load %arg1[%216, %c0_85, %c0_86] : memref<8x2x128xbf16, #tpu.memory_space<vmem>>, vector<1x2x128xbf16>
    %218 = vector.shape_cast %217 : vector<1x2x128xbf16> to vector<2x128xbf16>
    %c0_87 = arith.constant 0 : index
    %c0_88 = arith.constant 0 : index
    %219 = vector.load %arg3[%c0_87, %c0_88] : memref<128x384xbf16, #tpu.memory_space<vmem>>, vector<128x384xbf16>
    %cst_89 = arith.constant dense<0.000000e+00> : vector<2x384xf32>
    %220 = tpu.matmul %218, %219, %cst_89 {dimension_numbers = #tpu.dot_dimension_numbers<[1], [0], [0], [1], [0, 0, 1, 1], [], []>} : vector<2x128xbf16>, vector<128x384xbf16>, vector<2x384xf32> -> vector<2x384xf32>
    %c0_90 = arith.constant 0 : index
    %c0_91 = arith.constant 0 : index
    %221 = vector.load %arg4[%c0_90, %c0_91] : memref<1x384xf32, #tpu.memory_space<vmem>>, vector<1x384xf32>
    %222 = vector.broadcast %221 : vector<1x384xf32> to vector<2x384xf32>
    %223 = arith.addf %220, %222 : vector<2x384xf32>
    %224 = arith.truncf %215 : vector<2x128xf32> to vector<2x128xbf16>
    %c0_92 = arith.constant 0 : index
    %c0_93 = arith.constant 0 : index
    %225 = vector.load %arg5[%c0_92, %c0_93] : memref<128x384xbf16, #tpu.memory_space<vmem>>, vector<128x384xbf16>
    %cst_94 = arith.constant dense<0.000000e+00> : vector<2x384xf32>
    %226 = tpu.matmul %224, %225, %cst_94 {dimension_numbers = #tpu.dot_dimension_numbers<[1], [0], [0], [1], [0, 0, 1, 1], [], []>} : vector<2x128xbf16>, vector<128x384xbf16>, vector<2x384xf32> -> vector<2x384xf32>
    %c0_95 = arith.constant 0 : index
    %c0_96 = arith.constant 0 : index
    %227 = vector.load %arg6[%c0_95, %c0_96] : memref<1x384xf32, #tpu.memory_space<vmem>>, vector<1x384xf32>
    %228 = vector.broadcast %227 : vector<1x384xf32> to vector<2x384xf32>
    %229 = arith.addf %226, %228 : vector<2x384xf32>
    %230 = vector.extract_strided_slice %223 {offsets = [0, 0], sizes = [2, 128], strides = [1, 1]} : vector<2x384xf32> to vector<2x128xf32>
    %231 = vector.extract_strided_slice %229 {offsets = [0, 0], sizes = [2, 128], strides = [1, 1]} : vector<2x384xf32> to vector<2x128xf32>
    %232 = arith.addf %230, %231 : vector<2x128xf32>
    %233 = arith.negf %232 : vector<2x128xf32>
    %234 = math.exp %233 : vector<2x128xf32>
    %cst_97 = arith.constant 1.000000e+00 : f32
    %235 = vector.broadcast %cst_97 : f32 to vector<2x128xf32>
    %236 = arith.addf %235, %234 : vector<2x128xf32>
    %237 = arith.divf %235, %236 : vector<2x128xf32>
    %238 = vector.extract_strided_slice %223 {offsets = [0, 128], sizes = [2, 128], strides = [1, 1]} : vector<2x384xf32> to vector<2x128xf32>
    %239 = vector.extract_strided_slice %229 {offsets = [0, 128], sizes = [2, 128], strides = [1, 1]} : vector<2x384xf32> to vector<2x128xf32>
    %240 = arith.addf %238, %239 : vector<2x128xf32>
    %241 = arith.negf %240 : vector<2x128xf32>
    %242 = math.exp %241 : vector<2x128xf32>
    %cst_98 = arith.constant 1.000000e+00 : f32
    %243 = vector.broadcast %cst_98 : f32 to vector<2x128xf32>
    %244 = arith.addf %243, %242 : vector<2x128xf32>
    %245 = arith.divf %243, %244 : vector<2x128xf32>
    %246 = vector.extract_strided_slice %223 {offsets = [0, 256], sizes = [2, 128], strides = [1, 1]} : vector<2x384xf32> to vector<2x128xf32>
    %247 = vector.extract_strided_slice %229 {offsets = [0, 256], sizes = [2, 128], strides = [1, 1]} : vector<2x384xf32> to vector<2x128xf32>
    %248 = arith.mulf %237, %247 : vector<2x128xf32>
    %249 = arith.addf %246, %248 : vector<2x128xf32>
    %250 = math.tanh %249 : vector<2x128xf32>
    %cst_99 = arith.constant 1.000000e+00 : f32
    %251 = vector.broadcast %cst_99 : f32 to vector<2x128xf32>
    %252 = arith.subf %251, %245 : vector<2x128xf32>
    %253 = arith.mulf %252, %250 : vector<2x128xf32>
    %254 = arith.mulf %245, %215 : vector<2x128xf32>
    %255 = arith.addf %253, %254 : vector<2x128xf32>
    %256 = vector.broadcast %c4_i32 : i32 to vector<2x1xi32>
    %257 = arith.cmpi sgt, %0, %256 : vector<2x1xi32>
    %258 = arith.extui %257 : vector<2x1xi1> to vector<2x1xi32>
    %259 = arith.sitofp %258 : vector<2x1xi32> to vector<2x1xf32>
    %260 = vector.broadcast %259 : vector<2x1xf32> to vector<2x128xf32>
    %261 = arith.mulf %260, %255 : vector<2x128xf32>
    %cst_100 = arith.constant 1.000000e+00 : f32
    %262 = vector.broadcast %cst_100 : f32 to vector<2x1xf32>
    %263 = arith.subf %262, %259 : vector<2x1xf32>
    %264 = vector.broadcast %263 : vector<2x1xf32> to vector<2x128xf32>
    %265 = arith.mulf %264, %215 : vector<2x128xf32>
    %266 = arith.addf %261, %265 : vector<2x128xf32>
    %c0_101 = arith.constant 0 : index
    %c0_102 = arith.constant 0 : index
    %267 = vector.load %arg8[%c0_101, %c0_102] : memref<2x128xf32, #tpu.memory_space<vmem>>, vector<2x128xf32>
    tpu.vector_store %arg8[%c0_101, %c0_102], %266 {strides = array<i32>} : memref<2x128xf32, #tpu.memory_space<vmem>>, vector<2x128xf32>,
    %c5_i32 = arith.constant 5 : i32
    %c0_103 = arith.constant 0 : index
    %c0_104 = arith.constant 0 : index
    %268 = vector.load %arg8[%c0_103, %c0_104] : memref<2x128xf32, #tpu.memory_space<vmem>>, vector<2x128xf32>
    %269 = arith.index_cast %c5_i32 : i32 to index
    %c0_105 = arith.constant 0 : index
    %c0_106 = arith.constant 0 : index
    %270 = vector.load %arg1[%269, %c0_105, %c0_106] : memref<8x2x128xbf16, #tpu.memory_space<vmem>>, vector<1x2x128xbf16>
    %271 = vector.shape_cast %270 : vector<1x2x128xbf16> to vector<2x128xbf16>
    %c0_107 = arith.constant 0 : index
    %c0_108 = arith.constant 0 : index
    %272 = vector.load %arg3[%c0_107, %c0_108] : memref<128x384xbf16, #tpu.memory_space<vmem>>, vector<128x384xbf16>
    %cst_109 = arith.constant dense<0.000000e+00> : vector<2x384xf32>
    %273 = tpu.matmul %271, %272, %cst_109 {dimension_numbers = #tpu.dot_dimension_numbers<[1], [0], [0], [1], [0, 0, 1, 1], [], []>} : vector<2x128xbf16>, vector<128x384xbf16>, vector<2x384xf32> -> vector<2x384xf32>
    %c0_110 = arith.constant 0 : index
    %c0_111 = arith.constant 0 : index
    %274 = vector.load %arg4[%c0_110, %c0_111] : memref<1x384xf32, #tpu.memory_space<vmem>>, vector<1x384xf32>
    %275 = vector.broadcast %274 : vector<1x384xf32> to vector<2x384xf32>
    %276 = arith.addf %273, %275 : vector<2x384xf32>
    %277 = arith.truncf %268 : vector<2x128xf32> to vector<2x128xbf16>
    %c0_112 = arith.constant 0 : index
    %c0_113 = arith.constant 0 : index
    %278 = vector.load %arg5[%c0_112, %c0_113] : memref<128x384xbf16, #tpu.memory_space<vmem>>, vector<128x384xbf16>
    %cst_114 = arith.constant dense<0.000000e+00> : vector<2x384xf32>
    %279 = tpu.matmul %277, %278, %cst_114 {dimension_numbers = #tpu.dot_dimension_numbers<[1], [0], [0], [1], [0, 0, 1, 1], [], []>} : vector<2x128xbf16>, vector<128x384xbf16>, vector<2x384xf32> -> vector<2x384xf32>
    %c0_115 = arith.constant 0 : index
    %c0_116 = arith.constant 0 : index
    %280 = vector.load %arg6[%c0_115, %c0_116] : memref<1x384xf32, #tpu.memory_space<vmem>>, vector<1x384xf32>
    %281 = vector.broadcast %280 : vector<1x384xf32> to vector<2x384xf32>
    %282 = arith.addf %279, %281 : vector<2x384xf32>
    %283 = vector.extract_strided_slice %276 {offsets = [0, 0], sizes = [2, 128], strides = [1, 1]} : vector<2x384xf32> to vector<2x128xf32>
    %284 = vector.extract_strided_slice %282 {offsets = [0, 0], sizes = [2, 128], strides = [1, 1]} : vector<2x384xf32> to vector<2x128xf32>
    %285 = arith.addf %283, %284 : vector<2x128xf32>
    %286 = arith.negf %285 : vector<2x128xf32>
    %287 = math.exp %286 : vector<2x128xf32>
    %cst_117 = arith.constant 1.000000e+00 : f32
    %288 = vector.broadcast %cst_117 : f32 to vector<2x128xf32>
    %289 = arith.addf %288, %287 : vector<2x128xf32>
    %290 = arith.divf %288, %289 : vector<2x128xf32>
    %291 = vector.extract_strided_slice %276 {offsets = [0, 128], sizes = [2, 128], strides = [1, 1]} : vector<2x384xf32> to vector<2x128xf32>
    %292 = vector.extract_strided_slice %282 {offsets = [0, 128], sizes = [2, 128], strides = [1, 1]} : vector<2x384xf32> to vector<2x128xf32>
    %293 = arith.addf %291, %292 : vector<2x128xf32>
    %294 = arith.negf %293 : vector<2x128xf32>
    %295 = math.exp %294 : vector<2x128xf32>
    %cst_118 = arith.constant 1.000000e+00 : f32
    %296 = vector.broadcast %cst_118 : f32 to vector<2x128xf32>
    %297 = arith.addf %296, %295 : vector<2x128xf32>
    %298 = arith.divf %296, %297 : vector<2x128xf32>
    %299 = vector.extract_strided_slice %276 {offsets = [0, 256], sizes = [2, 128], strides = [1, 1]} : vector<2x384xf32> to vector<2x128xf32>
    %300 = vector.extract_strided_slice %282 {offsets = [0, 256], sizes = [2, 128], strides = [1, 1]} : vector<2x384xf32> to vector<2x128xf32>
    %301 = arith.mulf %290, %300 : vector<2x128xf32>
    %302 = arith.addf %299, %301 : vector<2x128xf32>
    %303 = math.tanh %302 : vector<2x128xf32>
    %cst_119 = arith.constant 1.000000e+00 : f32
    %304 = vector.broadcast %cst_119 : f32 to vector<2x128xf32>
    %305 = arith.subf %304, %298 : vector<2x128xf32>
    %306 = arith.mulf %305, %303 : vector<2x128xf32>
    %307 = arith.mulf %298, %268 : vector<2x128xf32>
    %308 = arith.addf %306, %307 : vector<2x128xf32>
    %309 = vector.broadcast %c5_i32 : i32 to vector<2x1xi32>
    %310 = arith.cmpi sgt, %0, %309 : vector<2x1xi32>
    %311 = arith.extui %310 : vector<2x1xi1> to vector<2x1xi32>
    %312 = arith.sitofp %311 : vector<2x1xi32> to vector<2x1xf32>
    %313 = vector.broadcast %312 : vector<2x1xf32> to vector<2x128xf32>
    %314 = arith.mulf %313, %308 : vector<2x128xf32>
    %cst_120 = arith.constant 1.000000e+00 : f32
    %315 = vector.broadcast %cst_120 : f32 to vector<2x1xf32>
    %316 = arith.subf %315, %312 : vector<2x1xf32>
    %317 = vector.broadcast %316 : vector<2x1xf32> to vector<2x128xf32>
    %318 = arith.mulf %317, %268 : vector<2x128xf32>
    %319 = arith.addf %314, %318 : vector<2x128xf32>
    %c0_121 = arith.constant 0 : index
    %c0_122 = arith.constant 0 : index
    %320 = vector.load %arg8[%c0_121, %c0_122] : memref<2x128xf32, #tpu.memory_space<vmem>>, vector<2x128xf32>
    tpu.vector_store %arg8[%c0_121, %c0_122], %319 {strides = array<i32>} : memref<2x128xf32, #tpu.memory_space<vmem>>, vector<2x128xf32>,
    %c6_i32 = arith.constant 6 : i32
    %c0_123 = arith.constant 0 : index
    %c0_124 = arith.constant 0 : index
    %321 = vector.load %arg8[%c0_123, %c0_124] : memref<2x128xf32, #tpu.memory_space<vmem>>, vector<2x128xf32>
    %322 = arith.index_cast %c6_i32 : i32 to index
    %c0_125 = arith.constant 0 : index
    %c0_126 = arith.constant 0 : index
    %323 = vector.load %arg1[%322, %c0_125, %c0_126] : memref<8x2x128xbf16, #tpu.memory_space<vmem>>, vector<1x2x128xbf16>
    %324 = vector.shape_cast %323 : vector<1x2x128xbf16> to vector<2x128xbf16>
    %c0_127 = arith.constant 0 : index
    %c0_128 = arith.constant 0 : index
    %325 = vector.load %arg3[%c0_127, %c0_128] : memref<128x384xbf16, #tpu.memory_space<vmem>>, vector<128x384xbf16>
    %cst_129 = arith.constant dense<0.000000e+00> : vector<2x384xf32>
    %326 = tpu.matmul %324, %325, %cst_129 {dimension_numbers = #tpu.dot_dimension_numbers<[1], [0], [0], [1], [0, 0, 1, 1], [], []>} : vector<2x128xbf16>, vector<128x384xbf16>, vector<2x384xf32> -> vector<2x384xf32>
    %c0_130 = arith.constant 0 : index
    %c0_131 = arith.constant 0 : index
    %327 = vector.load %arg4[%c0_130, %c0_131] : memref<1x384xf32, #tpu.memory_space<vmem>>, vector<1x384xf32>
    %328 = vector.broadcast %327 : vector<1x384xf32> to vector<2x384xf32>
    %329 = arith.addf %326, %328 : vector<2x384xf32>
    %330 = arith.truncf %321 : vector<2x128xf32> to vector<2x128xbf16>
    %c0_132 = arith.constant 0 : index
    %c0_133 = arith.constant 0 : index
    %331 = vector.load %arg5[%c0_132, %c0_133] : memref<128x384xbf16, #tpu.memory_space<vmem>>, vector<128x384xbf16>
    %cst_134 = arith.constant dense<0.000000e+00> : vector<2x384xf32>
    %332 = tpu.matmul %330, %331, %cst_134 {dimension_numbers = #tpu.dot_dimension_numbers<[1], [0], [0], [1], [0, 0, 1, 1], [], []>} : vector<2x128xbf16>, vector<128x384xbf16>, vector<2x384xf32> -> vector<2x384xf32>
    %c0_135 = arith.constant 0 : index
    %c0_136 = arith.constant 0 : index
    %333 = vector.load %arg6[%c0_135, %c0_136] : memref<1x384xf32, #tpu.memory_space<vmem>>, vector<1x384xf32>
    %334 = vector.broadcast %333 : vector<1x384xf32> to vector<2x384xf32>
    %335 = arith.addf %332, %334 : vector<2x384xf32>
    %336 = vector.extract_strided_slice %329 {offsets = [0, 0], sizes = [2, 128], strides = [1, 1]} : vector<2x384xf32> to vector<2x128xf32>
    %337 = vector.extract_strided_slice %335 {offsets = [0, 0], sizes = [2, 128], strides = [1, 1]} : vector<2x384xf32> to vector<2x128xf32>
    %338 = arith.addf %336, %337 : vector<2x128xf32>
    %339 = arith.negf %338 : vector<2x128xf32>
    %340 = math.exp %339 : vector<2x128xf32>
    %cst_137 = arith.constant 1.000000e+00 : f32
    %341 = vector.broadcast %cst_137 : f32 to vector<2x128xf32>
    %342 = arith.addf %341, %340 : vector<2x128xf32>
    %343 = arith.divf %341, %342 : vector<2x128xf32>
    %344 = vector.extract_strided_slice %329 {offsets = [0, 128], sizes = [2, 128], strides = [1, 1]} : vector<2x384xf32> to vector<2x128xf32>
    %345 = vector.extract_strided_slice %335 {offsets = [0, 128], sizes = [2, 128], strides = [1, 1]} : vector<2x384xf32> to vector<2x128xf32>
    %346 = arith.addf %344, %345 : vector<2x128xf32>
    %347 = arith.negf %346 : vector<2x128xf32>
    %348 = math.exp %347 : vector<2x128xf32>
    %cst_138 = arith.constant 1.000000e+00 : f32
    %349 = vector.broadcast %cst_138 : f32 to vector<2x128xf32>
    %350 = arith.addf %349, %348 : vector<2x128xf32>
    %351 = arith.divf %349, %350 : vector<2x128xf32>
    %352 = vector.extract_strided_slice %329 {offsets = [0, 256], sizes = [2, 128], strides = [1, 1]} : vector<2x384xf32> to vector<2x128xf32>
    %353 = vector.extract_strided_slice %335 {offsets = [0, 256], sizes = [2, 128], strides = [1, 1]} : vector<2x384xf32> to vector<2x128xf32>
    %354 = arith.mulf %343, %353 : vector<2x128xf32>
    %355 = arith.addf %352, %354 : vector<2x128xf32>
    %356 = math.tanh %355 : vector<2x128xf32>
    %cst_139 = arith.constant 1.000000e+00 : f32
    %357 = vector.broadcast %cst_139 : f32 to vector<2x128xf32>
    %358 = arith.subf %357, %351 : vector<2x128xf32>
    %359 = arith.mulf %358, %356 : vector<2x128xf32>
    %360 = arith.mulf %351, %321 : vector<2x128xf32>
    %361 = arith.addf %359, %360 : vector<2x128xf32>
    %362 = vector.broadcast %c6_i32 : i32 to vector<2x1xi32>
    %363 = arith.cmpi sgt, %0, %362 : vector<2x1xi32>
    %364 = arith.extui %363 : vector<2x1xi1> to vector<2x1xi32>
    %365 = arith.sitofp %364 : vector<2x1xi32> to vector<2x1xf32>
    %366 = vector.broadcast %365 : vector<2x1xf32> to vector<2x128xf32>
    %367 = arith.mulf %366, %361 : vector<2x128xf32>
    %cst_140 = arith.constant 1.000000e+00 : f32
    %368 = vector.broadcast %cst_140 : f32 to vector<2x1xf32>
    %369 = arith.subf %368, %365 : vector<2x1xf32>
    %370 = vector.broadcast %369 : vector<2x1xf32> to vector<2x128xf32>
    %371 = arith.mulf %370, %321 : vector<2x128xf32>
    %372 = arith.addf %367, %371 : vector<2x128xf32>
    %c0_141 = arith.constant 0 : index
    %c0_142 = arith.constant 0 : index
    %373 = vector.load %arg8[%c0_141, %c0_142] : memref<2x128xf32, #tpu.memory_space<vmem>>, vector<2x128xf32>
    tpu.vector_store %arg8[%c0_141, %c0_142], %372 {strides = array<i32>} : memref<2x128xf32, #tpu.memory_space<vmem>>, vector<2x128xf32>,
    %c7_i32 = arith.constant 7 : i32
    %c0_143 = arith.constant 0 : index
    %c0_144 = arith.constant 0 : index
    %374 = vector.load %arg8[%c0_143, %c0_144] : memref<2x128xf32, #tpu.memory_space<vmem>>, vector<2x128xf32>
    %375 = arith.index_cast %c7_i32 : i32 to index
    %c0_145 = arith.constant 0 : index
    %c0_146 = arith.constant 0 : index
    %376 = vector.load %arg1[%375, %c0_145, %c0_146] : memref<8x2x128xbf16, #tpu.memory_space<vmem>>, vector<1x2x128xbf16>
    %377 = vector.shape_cast %376 : vector<1x2x128xbf16> to vector<2x128xbf16>
    %c0_147 = arith.constant 0 : index
    %c0_148 = arith.constant 0 : index
    %378 = vector.load %arg3[%c0_147, %c0_148] : memref<128x384xbf16, #tpu.memory_space<vmem>>, vector<128x384xbf16>
    %cst_149 = arith.constant dense<0.000000e+00> : vector<2x384xf32>
    %379 = tpu.matmul %377, %378, %cst_149 {dimension_numbers = #tpu.dot_dimension_numbers<[1], [0], [0], [1], [0, 0, 1, 1], [], []>} : vector<2x128xbf16>, vector<128x384xbf16>, vector<2x384xf32> -> vector<2x384xf32>
    %c0_150 = arith.constant 0 : index
    %c0_151 = arith.constant 0 : index
    %380 = vector.load %arg4[%c0_150, %c0_151] : memref<1x384xf32, #tpu.memory_space<vmem>>, vector<1x384xf32>
    %381 = vector.broadcast %380 : vector<1x384xf32> to vector<2x384xf32>
    %382 = arith.addf %379, %381 : vector<2x384xf32>
    %383 = arith.truncf %374 : vector<2x128xf32> to vector<2x128xbf16>
    %c0_152 = arith.constant 0 : index
    %c0_153 = arith.constant 0 : index
    %384 = vector.load %arg5[%c0_152, %c0_153] : memref<128x384xbf16, #tpu.memory_space<vmem>>, vector<128x384xbf16>
    %cst_154 = arith.constant dense<0.000000e+00> : vector<2x384xf32>
    %385 = tpu.matmul %383, %384, %cst_154 {dimension_numbers = #tpu.dot_dimension_numbers<[1], [0], [0], [1], [0, 0, 1, 1], [], []>} : vector<2x128xbf16>, vector<128x384xbf16>, vector<2x384xf32> -> vector<2x384xf32>
    %c0_155 = arith.constant 0 : index
    %c0_156 = arith.constant 0 : index
    %386 = vector.load %arg6[%c0_155, %c0_156] : memref<1x384xf32, #tpu.memory_space<vmem>>, vector<1x384xf32>
    %387 = vector.broadcast %386 : vector<1x384xf32> to vector<2x384xf32>
    %388 = arith.addf %385, %387 : vector<2x384xf32>
    %389 = vector.extract_strided_slice %382 {offsets = [0, 0], sizes = [2, 128], strides = [1, 1]} : vector<2x384xf32> to vector<2x128xf32>
    %390 = vector.extract_strided_slice %388 {offsets = [0, 0], sizes = [2, 128], strides = [1, 1]} : vector<2x384xf32> to vector<2x128xf32>
    %391 = arith.addf %389, %390 : vector<2x128xf32>
    %392 = arith.negf %391 : vector<2x128xf32>
    %393 = math.exp %392 : vector<2x128xf32>
    %cst_157 = arith.constant 1.000000e+00 : f32
    %394 = vector.broadcast %cst_157 : f32 to vector<2x128xf32>
    %395 = arith.addf %394, %393 : vector<2x128xf32>
    %396 = arith.divf %394, %395 : vector<2x128xf32>
    %397 = vector.extract_strided_slice %382 {offsets = [0, 128], sizes = [2, 128], strides = [1, 1]} : vector<2x384xf32> to vector<2x128xf32>
    %398 = vector.extract_strided_slice %388 {offsets = [0, 128], sizes = [2, 128], strides = [1, 1]} : vector<2x384xf32> to vector<2x128xf32>
    %399 = arith.addf %397, %398 : vector<2x128xf32>
    %400 = arith.negf %399 : vector<2x128xf32>
    %401 = math.exp %400 : vector<2x128xf32>
    %cst_158 = arith.constant 1.000000e+00 : f32
    %402 = vector.broadcast %cst_158 : f32 to vector<2x128xf32>
    %403 = arith.addf %402, %401 : vector<2x128xf32>
    %404 = arith.divf %402, %403 : vector<2x128xf32>
    %405 = vector.extract_strided_slice %382 {offsets = [0, 256], sizes = [2, 128], strides = [1, 1]} : vector<2x384xf32> to vector<2x128xf32>
    %406 = vector.extract_strided_slice %388 {offsets = [0, 256], sizes = [2, 128], strides = [1, 1]} : vector<2x384xf32> to vector<2x128xf32>
    %407 = arith.mulf %396, %406 : vector<2x128xf32>
    %408 = arith.addf %405, %407 : vector<2x128xf32>
    %409 = math.tanh %408 : vector<2x128xf32>
    %cst_159 = arith.constant 1.000000e+00 : f32
    %410 = vector.broadcast %cst_159 : f32 to vector<2x128xf32>
    %411 = arith.subf %410, %404 : vector<2x128xf32>
    %412 = arith.mulf %411, %409 : vector<2x128xf32>
    %413 = arith.mulf %404, %374 : vector<2x128xf32>
    %414 = arith.addf %412, %413 : vector<2x128xf32>
    %415 = vector.broadcast %c7_i32 : i32 to vector<2x1xi32>
    %416 = arith.cmpi sgt, %0, %415 : vector<2x1xi32>
    %417 = arith.extui %416 : vector<2x1xi1> to vector<2x1xi32>
    %418 = arith.sitofp %417 : vector<2x1xi32> to vector<2x1xf32>
    %419 = vector.broadcast %418 : vector<2x1xf32> to vector<2x128xf32>
    %420 = arith.mulf %419, %414 : vector<2x128xf32>
    %cst_160 = arith.constant 1.000000e+00 : f32
    %421 = vector.broadcast %cst_160 : f32 to vector<2x1xf32>
    %422 = arith.subf %421, %418 : vector<2x1xf32>
    %423 = vector.broadcast %422 : vector<2x1xf32> to vector<2x128xf32>
    %424 = arith.mulf %423, %374 : vector<2x128xf32>
    %425 = arith.addf %420, %424 : vector<2x128xf32>
    %c0_161 = arith.constant 0 : index
    %c0_162 = arith.constant 0 : index
    %426 = vector.load %arg8[%c0_161, %c0_162] : memref<2x128xf32, #tpu.memory_space<vmem>>, vector<2x128xf32>
    tpu.vector_store %arg8[%c0_161, %c0_162], %425 {strides = array<i32>} : memref<2x128xf32, #tpu.memory_space<vmem>>, vector<2x128xf32>,
    %c8_i32 = arith.constant 8 : i32
    %c0_163 = arith.constant 0 : index
    %c0_164 = arith.constant 0 : index
    %427 = vector.load %arg8[%c0_163, %c0_164] : memref<2x128xf32, #tpu.memory_space<vmem>>, vector<2x128xf32>
    %c0_165 = arith.constant 0 : index
    %c0_166 = arith.constant 0 : index
    %428 = vector.load %arg7[%c0_165, %c0_166] : memref<2x128xf32, #tpu.memory_space<vmem>>, vector<2x128xf32>
    tpu.vector_store %arg7[%c0_165, %c0_166], %427 {strides = array<i32>} : memref<2x128xf32, #tpu.memory_space<vmem>>, vector<2x128xf32>,
    return
  }
  func.func @transform_0(%arg0: i32) -> (i32, i32, i32) {
    %c0_i32 = arith.constant 0 : i32
    %c0_i32_0 = arith.constant 0 : i32
    %c0_i32_1 = arith.constant 0 : i32
    return %c0_i32, %arg0, %c0_i32_0 : i32, i32, i32
  }
  func.func @transform_1(%arg0: i32) -> (i32, i32) {
    %c0_i32 = arith.constant 0 : i32
    %c0_i32_0 = arith.constant 0 : i32
    return %arg0, %c0_i32 : i32, i32
  }
  func.func @transform_2(%arg0: i32) -> (i32, i32) {
    %c0_i32 = arith.constant 0 : i32
    %c0_i32_0 = arith.constant 0 : i32
    %c0_i32_1 = arith.constant 0 : i32
    return %c0_i32, %c0_i32_0 : i32, i32
  }
  func.func @transform_3(%arg0: i32) -> (i32, i32) {
    %c0_i32 = arith.constant 0 : i32
    %c0_i32_0 = arith.constant 0 : i32
    %c0_i32_1 = arith.constant 0 : i32
    return %c0_i32, %c0_i32_0 : i32, i32
  }
  func.func @transform_4(%arg0: i32) -> (i32, i32) {
    %c0_i32 = arith.constant 0 : i32
    %c0_i32_0 = arith.constant 0 : i32
    %c0_i32_1 = arith.constant 0 : i32
    return %c0_i32, %c0_i32_0 : i32, i32
  }
  func.func @transform_5(%arg0: i32) -> (i32, i32) {
    %c0_i32 = arith.constant 0 : i32
    %c0_i32_0 = arith.constant 0 : i32
    %c0_i32_1 = arith.constant 0 : i32
    return %c0_i32, %c0_i32_0 : i32, i32
  }
  func.func @transform_6(%arg0: i32) -> (i32, i32) {
    %c0_i32 = arith.constant 0 : i32
    %c0_i32_0 = arith.constant 0 : i32
    return %arg0, %c0_i32 : i32, i32
  }
}

</mosaic_0001>

<bundles_post_ra>
// kernel: tpu_custom_call.1
= control target key start
LH: loop header
LB: loop body
LE: loop exit
PB: predicated region body
PF: predicated region fallthrough
CT: control target
= control target key end

     0   :  { %11 = vsyncpa [#allocation4], 0  ;;  %s6864_s0 = inlined_call_operand.hbm [shape: bf16[8,2,128], index: 0, kind: input, shape index: {}]   ;;  %s6865_s1 = inlined_call_operand.vmem [shape: s32[2,1], index: 1, kind: input, shape index: {}]   ;;  %s6866_s2 = inlined_call_operand.hbm [shape: bf16[128,384], index: 2, kind: input, shape index: {}]   ;;  %s6867_s3 = inlined_call_operand.vmem [shape: f32[1,384], index: 3, kind: input, shape index: {}]   ;;  %s6868_s4 = inlined_call_operand.hbm [shape: bf16[128,384], index: 4, kind: input, shape index: {}]   ;;  %s6869_s5 = inlined_call_operand.vmem [shape: f32[1,384], index: 5, kind: input, shape index: {}]   ;;  %s6870_s6 = inlined_call_operand.hbm [shape: f32[2,128], index: 6, kind: output, shape index: {}]  }
   0x1   :  { %12 = vsyncpa [#allocation7], 0 }
   0x2   :  { %13 = vsyncpa [#allocation5], 0  ;;  %s5954_s21 = smov [#allocation6]   ;;  %s5860_s25 = scalar_lea.hbm %s6866_s2, 3072 }
   0x3   :  { %s33_s22 = sshll.u32 %s5954_s21, 4  ;;  %p5861_p0 = scmp.ne.s32.totalorder %s6866_s2, %s5860_s25  ;;  %s34_s22 = int_to_ptr.vmem [resolvable:$true] %s33_s22 }
   0x4   :  { %p5864_p1 = scmp.lt.u32.totalorder %s5860_s25, %s6866_s2 }
   0x6   :  { %p5866_p2 = pnand %p5864_p1, %p5861_p0 }
   0x8   :  { %5869 = shalt.err (!%p5866_p2)
}
   0x9   :  { %s5870_s30 = scalar_lea.vmem %s34_s22, 3072  ;;  %p5875_p4 = scmp.lt.s32.totalorder %s34_s22, %s34_s22 }
   0xa   :  { %p5871_p3 = scmp.ne.s32.totalorder %s34_s22, %s5870_s30  ;;  %p5876_p5 = scmp.lt.s32.totalorder %s5870_s30, %s5870_s30 }
   0xc   :  { %p5877_p6 = por %p5876_p5, %p5875_p4 }
   0xe   :  { %p5878_p7 = pnand %p5877_p6, %p5871_p3 }
  0x10   :  { %5881 = shalt.err (!%p5878_p7)
}
  0x11   :  { %s5955_s7 = smov 192   ;;  %s5956_s8 = smov 12  }
  0x12   :  { %39 = dma.hbm_to_vmem [thread:$0]  %s6866_s2, 3072, %s34_s22, [#allocation7], %s5955_s7, %s5955_s7, %s5956_s8  }
  0x13   :  { %s5957_s11 = smov [#allocation3]   ;;  %s5882_s15 = scalar_lea.hbm %s6864_s0, 128 }
  0x14   :  { %s19_s12 = sshll.u32 %s5957_s11, 4  ;;  %p5883_p8 = scmp.ne.s32.totalorder %s6864_s0, %s5882_s15  ;;  %s20_s12 = int_to_ptr.vmem [resolvable:$true] %s19_s12 }
  0x15   :  { %p5886_p9 = scmp.lt.u32.totalorder %s5882_s15, %s6864_s0 }
  0x17   :  { %p5888_p10 = pnand %p5886_p9, %p5883_p8 }
  0x19   :  { %5891 = shalt.err (!%p5888_p10)
}
  0x1a   :  { %s5892_s20 = scalar_lea.vmem %s20_s12, 128  ;;  %p5897_p12 = scmp.lt.s32.totalorder %s20_s12, %s20_s12 }
  0x1b   :  { %p5893_p11 = scmp.ne.s32.totalorder %s20_s12, %s5892_s20  ;;  %p5898_p13 = scmp.lt.s32.totalorder %s5892_s20, %s5892_s20 }
  0x1d   :  { %p5899_p0 = por %p5898_p13, %p5897_p12 }
  0x1f   :  { %p5900_p1 = pnand %p5899_p0, %p5893_p11 }
  0x21   :  { %5903 = shalt.err (!%p5900_p1)
}
  0x22   :  { %s5958_s2 = smov 16   ;;  %s5959_s21 = smov 1  }
  0x23   :  { %25 = dma.hbm_to_vmem [thread:$0]  %s6864_s0, 128, %s20_s12, [#allocation4], %s5958_s2, %s5958_s2, %s5959_s21  }
  0x24   :  { %s5960_s24 = smov [#allocation8]   ;;  %s5904_s28 = scalar_lea.hbm %s6868_s4, 3072 }
  0x25   :  { %s47_s25 = sshll.u32 %s5960_s24, 4  ;;  %p5905_p2 = scmp.ne.s32.totalorder %s6868_s4, %s5904_s28  ;;  %s48_s25 = int_to_ptr.vmem [resolvable:$true] %s47_s25 }
  0x26   :  { %p5908_p3 = scmp.lt.u32.totalorder %s5904_s28, %s6868_s4 }
  0x28   :  { %p5910_p4 = pnand %p5908_p3, %p5905_p2 }
  0x2a   :  { %5913 = shalt.err (!%p5910_p4)
}
  0x2b   :  { %s5914_s11 = scalar_lea.vmem %s48_s25, 3072  ;;  %p5919_p6 = scmp.lt.s32.totalorder %s48_s25, %s48_s25 }
  0x2c   :  { %p5915_p5 = scmp.ne.s32.totalorder %s48_s25, %s5914_s11  ;;  %p5920_p7 = scmp.lt.s32.totalorder %s5914_s11, %s5914_s11 }
  0x2e   :  { %p5921_p8 = por %p5920_p7, %p5919_p6 }
  0x30   :  { %p5922_p9 = pnand %p5921_p8, %p5915_p5 }
  0x32   :  { %5925 = shalt.err (!%p5922_p9)
}
  0x33   :  { %53 = dma.hbm_to_vmem [thread:$0]  %s6868_s4, 3072, %s48_s25, [#allocation7], %s5955_s7, %s5955_s7, %s5956_s8  }
  0x34   :  { %5948 = dma.done.wait [#allocation4], 128  }
  0x35   :  { %5949 = vsyncadd [#allocation4], 4294967168 }
  0x36   :  { %5950 = dma.done.wait [#allocation7], 6144  }
  0x37   :  { %5951 = vsyncadd [#allocation7], 4294961152  ;;  %v5961_v0 = vmov 0.0   ;;  %v5962_v1 = vmov 0   ;;  %vm5963_vm0 = vmmov 0  }
  0x38   :  { %5109 = vmatprep.subr.bf16.mxu1 %v5961_v0  ;;  %67 = vst [vmem:[#allocation2] sm:$0x3] %v5961_v0  ;;  %279 = vmatprep.mubr.bf16.mxu0 %v5962_v1  ;;  %v6049_v2 = vld [vmem:[#allocation6 + $0x4] ss:$12 sps:$4 sm:$0xff]   ;;  %v6051_v3 = vld [vmem:[#allocation6] ss:$12 sps:$4 sm:$0xff]  }
  0x39   :  { %5125 = vmatprep.mubr.msk.bf16.mxu1 %vm5963_vm0, %v5961_v0  ;;  %5504 = vset.pattern.permute.xlu0 %v5962_v1  ;;  %v6054_v4 = vld [vmem:[#allocation6 + $0x1c] ss:$12 sps:$4 sm:$0xff]   ;;  %v6057_v5 = vld [vmem:[#allocation6 + $0x18] ss:$12 sps:$4 sm:$0xff]   ;;  %v6060_v6 = vld [vmem:[#allocation6 + $0x34] ss:$12 sps:$4 sm:$0xff]  }
  0x3a   :  { %5505 = vset.pattern.permute.xlu1 %v5962_v1  ;;  %247 = vmatprep.subr.bf16.mxu0 %v6049_v2  ;;  %v6063_v7 = vld [vmem:[#allocation6 + $0x30] ss:$12 sps:$4 sm:$0xff]   ;;  %v6066_v8 = vld [vmem:[#allocation6 + $0x4c] ss:$12 sps:$4 sm:$0xff]   ;;  %v5526_v9 = vld [vmem:[#allocation6 + $0x8] ss:$12 sps:$4 sm:$0xff]  }
  0x3b   :  { %248 = vmatpush1.bf16.msra.mxu0 %v6051_v3  ;;  %v6069_v10 = vld [vmem:[#allocation6 + $0x48] ss:$12 sps:$4 sm:$0xff]   ;;  %5110 = vmatpush3.bf16.msra.mxu1 %v5526_v9  ;;  %v6072_v11 = vld [vmem:[#allocation6 + $0x64] ss:$12 sps:$4 sm:$0xff]   ;;  %v5530_v12 = vld [vmem:[#allocation6 + $0x20] ss:$12 sps:$4 sm:$0xff]  }
  0x3c   :  { %249 = vmatprep.subr.bf16.mxu0 %v6054_v4  ;;  %5111 = vmatprep.subr.bf16.mxu1 %v5961_v0  ;;  %v6075_v13 = vld [vmem:[#allocation6 + $0x60] ss:$12 sps:$4 sm:$0xff]   ;;  %v5532_v14 = vld [vmem:[#allocation6 + $0x38] ss:$12 sps:$4 sm:$0xff]   ;;  %v6079_v15 = vld [vmem:[#allocation6 + $0x7c] ss:$12 sps:$4 sm:$0xff]  }
  0x3d   :  { %v6083_v16 = vld [vmem:[#allocation6 + $0x78] ss:$12 sps:$4 sm:$0xff]   ;;  %v5536_v17 = vld [vmem:[#allocation6 + $0x50] ss:$12 sps:$4 sm:$0xff]   ;;  %v6086_v18 = vld [vmem:[#allocation6 + $0x94] ss:$12 sps:$4 sm:$0xff]  }
  0x3e   :  { %v6089_v19 = vld [vmem:[#allocation6 + $0x90] ss:$12 sps:$4 sm:$0xff]   ;;  %v5540_v20 = vld [vmem:[#allocation6 + $0x68] ss:$12 sps:$4 sm:$0xff]   ;;  %v6093_v21 = vld [vmem:[#allocation6 + $0xac] ss:$12 sps:$4 sm:$0xff]  }
  0x3f   :  { %250 = vmatpush1.bf16.msra.mxu0 %v6057_v5  ;;  %5112 = vmatpush3.bf16.msra.mxu1 %v5530_v12  ;;  %v6096_v22 = vld [vmem:[#allocation6 + $0xa8] ss:$12 sps:$4 sm:$0xff]   ;;  %v5544_v23 = vld [vmem:[#allocation6 + $0x80] ss:$12 sps:$4 sm:$0xff]   ;;  %v6100_v24 = vld [vmem:[#allocation8 + $0x4] ss:$12 sps:$4 sm:$0xff]  }
  0x40   :  { %251 = vmatprep.subr.bf16.mxu0 %v6060_v6  ;;  %5113 = vmatprep.subr.bf16.mxu1 %v5961_v0  ;;  %v6103_v25 = vld [vmem:[#allocation8] ss:$12 sps:$4 sm:$0xff]   ;;  %v69_v26 = vld [vmem:[#allocation3] sm:$0x1]  ;;  %v6107_v28 = vld [vmem:[#allocation8 + $0x1c] ss:$12 sps:$4 sm:$0xff]  }
  0x41   :  { %v5548_v27 = vld [vmem:[#allocation6 + $0x98] ss:$12 sps:$4 sm:$0xff]   ;;  %v5552_v30 = vld [vmem:[#allocation6 + $0xb0] ss:$12 sps:$4 sm:$0xff]   ;;  %v6114_v31 = vld [vmem:[#allocation8 + $0x34] ss:$12 sps:$4 sm:$0xff]  }
  0x42   :  { %v6110_v29 = vld [vmem:[#allocation8 + $0x18] ss:$12 sps:$4 sm:$0xff]   ;;  %v6118_v32 = vld [vmem:[#allocation8 + $0x30] ss:$12 sps:$4 sm:$0xff]   ;;  %v6123_v33 = vld [vmem:[%s6865_s1] sm:$0x3] }
  0x43   :  { %252 = vmatpush1.bf16.msra.mxu0 %v6063_v7  ;;  %5114 = vmatpush3.bf16.msra.mxu1 %v5532_v14  ;;  %v5559_v34 = vld [vmem:[#allocation8 + $0x8] ss:$12 sps:$4 sm:$0xff]   ;;  %vm608_vm1 = vcmp.gt.s32.totalorder %v6123_v33, 0  ;;  %v6128_v35 = vld [vmem:[#allocation8 + $0x4c] ss:$12 sps:$4 sm:$0xff]   ;;  %vm1726_vm2 = vcmp.gt.s32.totalorder %v6123_v33, 2 }
  0x44   :  { %253 = vmatprep.subr.bf16.mxu0 %v6066_v8  ;;  %5115 = vmatprep.subr.bf16.mxu1 %v5961_v0  ;;  %v4607_v36 = vsel %vm608_vm1, 1.0, %v5961_v0  ;;  %v6133_v37 = vld [vmem:[#allocation8 + $0x48] ss:$12 sps:$4 sm:$0xff]   ;;  %vm2285_vm3 = vcmp.gt.s32.totalorder %v6123_v33, 3  ;;  %v6136_v39 = vld [vmem:[#allocation8 + $0x64] ss:$12 sps:$4 sm:$0xff]  }
  0x45   :  { %613 = vperm.xlu0 %5504, %v4607_v36   ;;  %v617_v38 = vsub.f32 1.0, %v4607_v36  ;;  %vm1167_vm4 = vcmp.gt.s32.totalorder %v6123_v33, 1  ;;  %v5563_v40 = vld [vmem:[#allocation8 + $0x20] ss:$12 sps:$4 sm:$0xff]   ;;  %v4709_v41 = vsel %vm1726_vm2, 1.0, %v5961_v0  ;;  %v4760_v44 = vsel %vm2285_vm3, 1.0, %v5961_v0 }
  0x46   :  { %v4658_v42 = vsel %vm1167_vm4, 1.0, %v5961_v0  ;;  %v1735_v43 = vsub.f32 1.0, %v4709_v41  ;;  %vm2844_vm5 = vcmp.gt.s32.totalorder %v6123_v33, 4  ;;  %v6146_v46 = vld [vmem:[#allocation8 + $0x60] ss:$12 sps:$4 sm:$0xff]   ;;  %v2294_v55 = vsub.f32 1.0, %v4760_v44 }
  0x47   :  { %254 = vmatpush1.bf16.msra.mxu0 %v6069_v10  ;;  %5116 = vmatpush3.bf16.msra.mxu1 %v5536_v17  ;;  %v1176_v45 = vsub.f32 1.0, %v4658_v42  ;;  %v5564_v47 = vld [vmem:[#allocation8 + $0x38] ss:$12 sps:$4 sm:$0xff]   ;;  %v6150_v48 = vld [vmem:[#allocation8 + $0x7c] ss:$12 sps:$4 sm:$0xff]   ;;  %v4811_v56 = vsel %vm2844_vm5, 1.0, %v5961_v0 }
  0x48   :  { %255 = vmatprep.subr.bf16.mxu0 %v6072_v11  ;;  %5117 = vmatprep.subr.bf16.mxu1 %v5961_v0  ;;  %v6155_v49 = vld [vmem:[#allocation8 + $0x78] ss:$12 sps:$4 sm:$0xff]   ;;  %v5565_v50 = vld [vmem:[#allocation8 + $0x50] ss:$12 sps:$4 sm:$0xff]   ;;  %v6157_v51 = vld [vmem:[#allocation8 + $0x94] ss:$12 sps:$4 sm:$0xff]  }
  0x49   :  { %620 = vperm.xlu0 %5504, %v617_v38   ;;  %1172 = vperm.xlu1 %5505, %v4658_v42   ;;  %v6162_v52 = vld [vmem:[#allocation8 + $0x90] ss:$12 sps:$4 sm:$0xff]   ;;  %v5566_v53 = vld [vmem:[#allocation8 + $0x68] ss:$12 sps:$4 sm:$0xff]   ;;  %v6164_v54 = vld [vmem:[#allocation8 + $0xac] ss:$12 sps:$4 sm:$0xff]  }
  0x4a   :  { %vm3403_vm6 = vcmp.gt.s32.totalorder %v6123_v33, 5  ;;  %v6173_v57 = vld [vmem:[#allocation8 + $0xa8] ss:$12 sps:$4 sm:$0xff]   ;;  %v5567_v59 = vld [vmem:[#allocation8 + $0x80] ss:$12 sps:$4 sm:$0xff]   ;;  %v2853_v60 = vsub.f32 1.0, %v4811_v56 }
  0x4b   :  { %256 = vmatpush1.bf16.msra.mxu0 %v6075_v13  ;;  %5118 = vmatpush3.bf16.msra.mxu1 %v5540_v20  ;;  %v6175_v58 = vld [vmem:[#allocation2] sm:$0x3]  ;;  %v4862_v61 = vsel %vm3403_vm6, 1.0, %v5961_v0  ;;  %vm3962_vm7 = vcmp.gt.s32.totalorder %v6123_v33, 6  ;;  %v5568_v62 = vld [vmem:[#allocation8 + $0x98] ss:$12 sps:$4 sm:$0xff]  }
  0x4c   :  { %257 = vmatprep.subr.bf16.mxu0 %v6079_v15  ;;  %5119 = vmatprep.subr.bf16.mxu1 %v5961_v0  ;;  %v328_v63 = vpack.c.bf16 %v6175_v58, %v6175_v58  ;;  %v3412_v9 = vsub.f32 1.0, %v4862_v61  ;;  %v4913_v12 = vsel %vm3962_vm7, 1.0, %v5961_v0  ;;  %vm4521_vm8 = vcmp.gt.s32.totalorder %v6123_v33, 7  ;;  %v5569_v14 = vld [vmem:[#allocation8 + $0xb0] ss:$12 sps:$4 sm:$0xff]  }
  0x4d   :  { %1731 = vperm.xlu0 %5504, %v4709_v41   ;;  %1179 = vperm.xlu1 %5505, %v1176_v45   ;;  %v3971_v17 = vsub.f32 1.0, %v4913_v12  ;;  %v4964_v20 = vsel %vm4521_vm8, 1.0, %v5961_v0  ;;  %v361_v33 = vld [vmem:[%s6869_s5] sm:$0x7] }
  0x4f   :  { %258 = vmatpush1.bf16.msra.mxu0 %v6083_v16  ;;  %5120 = vmatpush3.bf16.msra.mxu1 %v5544_v23  ;;  %v4530_v23 = vsub.f32 1.0, %v4964_v20 }
  0x50   :  { %259 = vmatprep.subr.bf16.mxu0 %v6086_v18  ;;  %5121 = vmatprep.subr.bf16.mxu1 %v5961_v0 }
  0x51   :  { %2290 = vperm.xlu0 %5504, %v4760_v44   ;;  %1738 = vperm.xlu1 %5505, %v1735_v43  }
  0x53   :  { %260 = vmatpush1.bf16.msra.mxu0 %v6089_v19  ;;  %5122 = vmatpush3.bf16.msra.mxu1 %v5548_v27 }
  0x54   :  { %261 = vmatprep.subr.bf16.mxu0 %v6093_v21  ;;  %5123 = vmatprep.subr.bf16.mxu1 %v5961_v0 }
  0x55   :  { %2849 = vperm.xlu0 %5504, %v4811_v56   ;;  %2297 = vperm.xlu1 %5505, %v2294_v55  }
  0x57   :  { %262 = vmatpush1.bf16.msra.mxu0 %v6096_v22  ;;  %5124 = vmatpush3.bf16.msra.mxu1 %v5552_v30  ;;  %v104_v30 = vlaneseq }
  0x58   :  { %506 = vmatprep.subr.bf16.mxu0 %v6100_v24  ;;  %5129 = vmatprep.subr.bf16.mxu1 %v5961_v0 }
  0x59   :  { %3408 = vperm.xlu0 %5504, %v4862_v61   ;;  %2856 = vperm.xlu1 %5505, %v2853_v60  }
  0x5a   :  { %280 = vmatmul.mubr.bf16.vlgmr.msra.gmra.mrb[0].mxu0 %v69_v26  ;;  %5126 = vmatmul.mubr.bf16.vlgmr.msra.gmra.mrb[0].mxu1 %v69_v26 }
  0x5b   :  { %507 = vmatpush1.bf16.msra.mxu0 %v6103_v25  ;;  %538 = vmatprep.mubr.bf16.mxu0 %v5962_v1 }
  0x5c   :  { %508 = vmatprep.subr.bf16.mxu0 %v6107_v28  ;;  %5130 = vmatpush3.bf16.msra.mxu1 %v5559_v34  ;;  %v102_v34 = vld [vmem:[%s6867_s3] sm:$0x7] }
  0x5d   :  { %5131 = vmatprep.subr.bf16.mxu1 %v5961_v0  ;;  %5145 = vmatprep.mubr.msk.bf16.mxu1 %vm5963_vm0, %v5961_v0 }
  0x5e   :  { %3967 = vperm.xlu0 %5504, %v4913_v12   ;;  %3415 = vperm.xlu1 %5505, %v3412_v9  }
  0x5f   :  { %509 = vmatpush1.bf16.msra.mxu0 %v6110_v29 }
  0x60   :  { %510 = vmatprep.subr.bf16.mxu0 %v6114_v31  ;;  %5132 = vmatpush3.bf16.msra.mxu1 %v5563_v40 }
  0x61   :  { %5133 = vmatprep.subr.bf16.mxu1 %v5961_v0 }
  0x62   :  { %4526 = vperm.xlu0 %5504, %v4964_v20   ;;  %3974 = vperm.xlu1 %5505, %v3971_v17  }
  0x63   :  { %511 = vmatpush1.bf16.msra.mxu0 %v6118_v32 }
  0x64   :  { %512 = vmatprep.subr.bf16.mxu0 %v6128_v35  ;;  %5134 = vmatpush3.bf16.msra.mxu1 %v5564_v47 }
  0x65   :  { %5135 = vmatprep.subr.bf16.mxu1 %v5961_v0 }
  0x66   :  { %4533 = vperm.xlu1 %5505, %v4530_v23  }
  0x67   :  { %513 = vmatpush1.bf16.msra.mxu0 %v6133_v37 }
  0x68   :  { %514 = vmatprep.subr.bf16.mxu0 %v6136_v39  ;;  %5136 = vmatpush3.bf16.msra.mxu1 %v5565_v50 }
  0x69   :  { %5137 = vmatprep.subr.bf16.mxu1 %v5961_v0 }
  0x6b   :  { %515 = vmatpush1.bf16.msra.mxu0 %v6146_v46 }
  0x6c   :  { %516 = vmatprep.subr.bf16.mxu0 %v6150_v48  ;;  %5138 = vmatpush3.bf16.msra.mxu1 %v5566_v53 }
  0x6d   :  { %5139 = vmatprep.subr.bf16.mxu1 %v5961_v0 }
  0x6f   :  { %517 = vmatpush1.bf16.msra.mxu0 %v6155_v49 }
  0x70   :  { %518 = vmatprep.subr.bf16.mxu0 %v6157_v51  ;;  %5140 = vmatpush3.bf16.msra.mxu1 %v5567_v59 }
  0x71   :  { %5141 = vmatprep.subr.bf16.mxu1 %v5961_v0 }
  0x73   :  { %519 = vmatpush1.bf16.msra.mxu0 %v6162_v52 }
  0x74   :  { %520 = vmatprep.subr.bf16.mxu0 %v6164_v54  ;;  %5142 = vmatpush3.bf16.msra.mxu1 %v5568_v62 }
  0x75   :  { %5143 = vmatprep.subr.bf16.mxu1 %v5961_v0 }
  0x77   :  { %521 = vmatpush1.bf16.msra.mxu0 %v6173_v57 }
  0x78   :  { %806 = vmatprep.subr.bf16.mxu0 %v6049_v2  ;;  %5144 = vmatpush3.bf16.msra.mxu1 %v5569_v14  ;;  %v5570_v2 = vld [vmem:[#allocation6 + $0x8] ss:$12 sps:$4 sm:$0xff]  }
  0x79   :  { %5149 = vmatprep.subr.bf16.mxu1 %v5961_v0 }
  0x7a   :  { %539 = vmatmul.mubr.bf16.vlgmr.msra.gmra.mrb[0].mxu0 %v328_v63 }
  0x7b   :  { %807 = vmatpush1.bf16.msra.mxu0 %v6051_v3  ;;  %838 = vmatprep.mubr.bf16.mxu0 %v5962_v1  ;;  %v5571_v3 = vld [vmem:[#allocation6 + $0x20] ss:$12 sps:$4 sm:$0xff]  }
  0x7c   :  { %808 = vmatprep.subr.bf16.mxu0 %v6054_v4  ;;  %5146 = vmatmul.mubr.bf16.vlgmr.msra.gmra.mrb[4].mxu1 %v328_v63  ;;  %v5572_v4 = vld [vmem:[#allocation6 + $0x38] ss:$12 sps:$4 sm:$0xff]  }
  0x7d   :  { %5165 = vmatprep.mubr.msk.bf16.mxu1 %vm5963_vm0, %v5961_v0  ;;  %5150 = vmatpush3.bf16.msra.mxu1 %v5570_v2 }
  0x7e   :  { %5151 = vmatprep.subr.bf16.mxu1 %v5961_v0 }
  0x7f   :  { %809 = vmatpush1.bf16.msra.mxu0 %v6057_v5  ;;  %v5573_v5 = vld [vmem:[#allocation6 + $0x50] ss:$12 sps:$4 sm:$0xff]  }
  0x80   :  { %810 = vmatprep.subr.bf16.mxu0 %v6060_v6  ;;  %v5574_v6 = vld [vmem:[#allocation6 + $0x68] ss:$12 sps:$4 sm:$0xff]  }
  0x81   :  { %5152 = vmatpush3.bf16.msra.mxu1 %v5571_v3 }
  0x82   :  { %5153 = vmatprep.subr.bf16.mxu1 %v5961_v0 }
  0x83   :  { %811 = vmatpush1.bf16.msra.mxu0 %v6063_v7  ;;  %v5575_v7 = vld [vmem:[#allocation6 + $0x80] ss:$12 sps:$4 sm:$0xff]  }
  0x84   :  { %812 = vmatprep.subr.bf16.mxu0 %v6066_v8  ;;  %v5576_v8 = vld [vmem:[#allocation6 + $0x98] ss:$12 sps:$4 sm:$0xff]  }
  0x85   :  { %5154 = vmatpush3.bf16.msra.mxu1 %v5572_v4 }
  0x86   :  { %5155 = vmatprep.subr.bf16.mxu1 %v5961_v0 }
  0x87   :  { %813 = vmatpush1.bf16.msra.mxu0 %v6069_v10  ;;  %v5577_v10 = vld [vmem:[#allocation6 + $0xb0] ss:$12 sps:$4 sm:$0xff]  }
  0x88   :  { %814 = vmatprep.subr.bf16.mxu0 %v6072_v11  ;;  %v5578_v11 = vld [vmem:[#allocation8 + $0x8] ss:$12 sps:$4 sm:$0xff]  }
  0x89   :  { %5156 = vmatpush3.bf16.msra.mxu1 %v5573_v5 }
  0x8a   :  { %5157 = vmatprep.subr.bf16.mxu1 %v5961_v0 }
  0x8b   :  { %815 = vmatpush1.bf16.msra.mxu0 %v6075_v13  ;;  %v628_v13 = vld [vmem:[#allocation3 + $0x1] sm:$0x1] }
  0x8c   :  { %816 = vmatprep.subr.bf16.mxu0 %v6079_v15  ;;  %v5579_v15 = vld [vmem:[#allocation8 + $0x20] ss:$12 sps:$4 sm:$0xff]  }
  0x8d   :  { %5158 = vmatpush3.bf16.msra.mxu1 %v5574_v6 }
  0x8e   :  { %5159 = vmatprep.subr.bf16.mxu1 %v5961_v0 }
  0x8f   :  { %817 = vmatpush1.bf16.msra.mxu0 %v6083_v16  ;;  %v5580_v16 = vld [vmem:[#allocation8 + $0x38] ss:$12 sps:$4 sm:$0xff]  }
  0x90   :  { %818 = vmatprep.subr.bf16.mxu0 %v6086_v18  ;;  %v5581_v18 = vld [vmem:[#allocation8 + $0x50] ss:$12 sps:$4 sm:$0xff]  }
  0x91   :  { %5160 = vmatpush3.bf16.msra.mxu1 %v5575_v7 }
  0x92   :  { %5161 = vmatprep.subr.bf16.mxu1 %v5961_v0 }
  0x93   :  { %819 = vmatpush1.bf16.msra.mxu0 %v6089_v19  ;;  %v5582_v19 = vld [vmem:[#allocation8 + $0x68] ss:$12 sps:$4 sm:$0xff]  }
  0x94   :  { %820 = vmatprep.subr.bf16.mxu0 %v6093_v21  ;;  %v5583_v21 = vld [vmem:[#allocation8 + $0x80] ss:$12 sps:$4 sm:$0xff]  }
  0x95   :  { %5162 = vmatpush3.bf16.msra.mxu1 %v5576_v8 }
  0x96   :  { %5163 = vmatprep.subr.bf16.mxu1 %v5961_v0 }
  0x97   :  { %821 = vmatpush1.bf16.msra.mxu0 %v6096_v22  ;;  %v5584_v22 = vld [vmem:[#allocation8 + $0x98] ss:$12 sps:$4 sm:$0xff]  }
  0x98   :  { %1065 = vmatprep.subr.bf16.mxu0 %v6100_v24  ;;  %v5585_v24 = vld [vmem:[#allocation8 + $0xb0] ss:$12 sps:$4 sm:$0xff]  }
  0x99   :  { %5164 = vmatpush3.bf16.msra.mxu1 %v5577_v10 }
  0x9a   :  { %5169 = vmatprep.subr.bf16.mxu1 %v5961_v0  ;;  %839 = vmatmul.mubr.bf16.vlgmr.msra.gmra.mrb[4].mxu0 %v628_v13 }
  0x9b   :  { %1066 = vmatpush1.bf16.msra.mxu0 %v6103_v25  ;;  %1097 = vmatprep.mubr.bf16.mxu0 %v5962_v1  ;;  %v5858_v25 = vld [vmem:[#allocation6 + $0x4] ss:$12 sps:$4 sm:$0xff]  }
  0x9c   :  { %5166 = vmatmul.mubr.bf16.vlgmr.msra.gmra.mrb[8].mxu1 %v628_v13  ;;  %1067 = vmatprep.subr.bf16.mxu0 %v6107_v28  ;;  %v5586_v13 = vld [vmem:[#allocation6 + $0x8] ss:$12 sps:$4 sm:$0xff]  }
  0x9d   :  { %5170 = vmatpush3.bf16.msra.mxu1 %v5578_v11  ;;  %5185 = vmatprep.mubr.msk.bf16.mxu1 %vm5963_vm0, %v5961_v0 }
  0x9e   :  { %5171 = vmatprep.subr.bf16.mxu1 %v5961_v0 }
  0x9f   :  { %1068 = vmatpush1.bf16.msra.mxu0 %v6110_v29 }
  0xa0   :  { %1069 = vmatprep.subr.bf16.mxu0 %v6114_v31  ;;  %v105_v31 = vshrl.u32 %v104_v30, 7  ;;  %v6291_v30 = vld [vmem:[#allocation6 + $0x48] ss:$12 sps:$4 sm:$0xff]  }
  0xa1   :  { %5172 = vmatpush3.bf16.msra.mxu1 %v5579_v15 }
  0xa2   :  { %5173 = vmatprep.subr.bf16.mxu1 %v5961_v0  ;;  %v6259_v56 = vsub.s32 2, %v105_v31 }
  0xa3   :  { %1070 = vmatpush1.bf16.msra.mxu0 %v6118_v32  ;;  %v6245_v32 = vsub.s32 0, %v105_v31 }
  0xa4   :  { %1071 = vmatprep.subr.bf16.mxu0 %v6128_v35  ;;  %v6253_v35 = vsub.s32 1, %v105_v31  ;;  %v115_v60 = vrot.slane %v102_v34, %v6259_v56  ;;  %v5598_v31 = vld [vmem:[#allocation6 + $0x50] ss:$12 sps:$4 sm:$0xff]  }
  0xa5   :  { %5174 = vmatpush3.bf16.msra.mxu1 %v5580_v16  ;;  %v107_v36 = vrot.slane %v102_v34, %v6245_v32  ;;  %v5859_v16 = vld [vmem:[#allocation6] ss:$12 sps:$4 sm:$0xff]  }
  0xa6   :  { %5175 = vmatprep.subr.bf16.mxu1 %v5961_v0  ;;  %v111_v38 = vrot.slane %v102_v34, %v6253_v35  ;;  %v6298_v34 = vld [vmem:[#allocation6 + $0x60] ss:$12 sps:$4 sm:$0xff]  }
  0xa7   :  { %1072 = vmatpush1.bf16.msra.mxu0 %v6133_v37  ;;  %v366_v37 = vrot.slane %v361_v33, %v6245_v32 }
  0xa8   :  { %1073 = vmatprep.subr.bf16.mxu0 %v6136_v39  ;;  %v370_v39 = vrot.slane %v361_v33, %v6253_v35 }
  0xa9   :  { %5176 = vmatpush3.bf16.msra.mxu1 %v5581_v18  ;;  %v5429_v40 = vadd.f32 %v366_v37, %v107_v36  ;;  %v5602_v36 = vld [vmem:[#allocation6 + $0x68] ss:$12 sps:$4 sm:$0xff]  }
  0xaa   :  { %5177 = vmatprep.subr.bf16.mxu1 %v5961_v0  ;;  %v5431_v42 = vadd.f32 %v370_v39, %v111_v38  ;;  %v6302_v37 = vld [vmem:[#allocation6 + $0x7c] ss:$12 sps:$4 sm:$0xff]   ;;  %v6305_v38 = vld [vmem:[#allocation6 + $0x78] ss:$12 sps:$4 sm:$0xff]   ;;  %v5606_v39 = vld [vmem:[#allocation6 + $0x80] ss:$12 sps:$4 sm:$0xff]  }
  0xab   :  { %1074 = vmatpush1.bf16.msra.mxu0 %v6146_v46 }
  0xac   :  { %1075 = vmatprep.subr.bf16.mxu0 %v6150_v48 }
  0xad   :  { %5178 = vmatpush3.bf16.msra.mxu1 %v5582_v19 }
  0xae   :  { %5179 = vmatprep.subr.bf16.mxu1 %v5961_v0 }
  0xaf   :  { %1076 = vmatpush1.bf16.msra.mxu0 %v6155_v49 }
  0xb0   :  { %1077 = vmatprep.subr.bf16.mxu0 %v6157_v51 }
  0xb1   :  { %5180 = vmatpush3.bf16.msra.mxu1 %v5583_v21 }
  0xb2   :  { %5181 = vmatprep.subr.bf16.mxu1 %v5961_v0 }
  0xb3   :  { %1078 = vmatpush1.bf16.msra.mxu0 %v6162_v52 }
  0xb4   :  { %1079 = vmatprep.subr.bf16.mxu0 %v6164_v54 }
  0xb5   :  { %5182 = vmatpush3.bf16.msra.mxu1 %v5584_v22  ;;  %v6275_v22 = vld [vmem:[#allocation6 + $0x1c] ss:$12 sps:$4 sm:$0xff]  }
  0xb6   :  { %5183 = vmatprep.subr.bf16.mxu1 %v5961_v0 }
  0xb7   :  { %1080 = vmatpush1.bf16.msra.mxu0 %v6173_v57  ;;  %v374_v57 = vrot.slane %v361_v33, %v6259_v56  ;;  %v6295_v33 = vld [vmem:[#allocation6 + $0x64] ss:$12 sps:$4 sm:$0xff]  }
  0xb8   :  { %1365 = vmatprep.subr.bf16.mxu0 %v5858_v25  ;;  %v5590_v25 = vld [vmem:[#allocation6 + $0x20] ss:$12 sps:$4 sm:$0xff]  }
  0xb9   :  { %5184 = vmatpush3.bf16.msra.mxu1 %v5585_v24  ;;  %v6277_v24 = vld [vmem:[#allocation6 + $0x18] ss:$12 sps:$4 sm:$0xff]  }
  0xba   :  { %5189 = vmatprep.subr.bf16.mxu1 %v5961_v0 }
  0xc4   :  { %v614_v20 = vpop.permute.xlu0 %613 }
  0xc8   :  { %v621_v6 = vpop.permute.xlu0 %620 }
  0xc9   :  { %v623_v7 = vmul.f32 %v621_v6, %v6175_v58  ;;  %v920_v6 = vld [vmem:[%s6869_s5] sm:$0x7] }
 0x12d   :  { %v322_v26 = vpop.f32.mrb[0].mxu1 }
 0x12e   :  { %v5127_v27 = vpop.f32.mrb[1].mxu1  ;;  %v323_v9 = vadd.f32 %v322_v26, %v115_v60  ;;  %v6281_v26 = vld [vmem:[#allocation6 + $0x34] ss:$12 sps:$4 sm:$0xff]   ;;  %v5630_v60 = vld [vmem:[#allocation8 + $0x50] ss:$12 sps:$4 sm:$0xff]  }
 0x12f   :  { %v325_v28 = vpop.f32.mrb[2].mxu1  ;;  %v6284_v27 = vld [vmem:[#allocation6 + $0x30] ss:$12 sps:$4 sm:$0xff]  }
 0x130   :  { %v5128_v29 = vpop.f32.mrb[3].mxu1  ;;  %v5594_v28 = vld [vmem:[#allocation6 + $0x38] ss:$12 sps:$4 sm:$0xff]  }
 0x131   :  { %v6288_v29 = vld [vmem:[#allocation6 + $0x4c] ss:$12 sps:$4 sm:$0xff]  }
 0x14d   :  { %v540_v41 = vpop.f32.mrb[0].mxu0 }
 0x14e   :  { %v5430_v43 = vadd.f32 %v5429_v40, %v540_v41  ;;  %v542_v44 = vpop.f32.mrb[1].mxu0  ;;  %v6309_v40 = vld [vmem:[#allocation6 + $0x94] ss:$12 sps:$4 sm:$0xff]   ;;  %v6312_v41 = vld [vmem:[#allocation6 + $0x90] ss:$12 sps:$4 sm:$0xff]  }
 0x14f   :  { %v544_v45 = vpop.f32.mrb[2].mxu0  ;;  %v5432_v48 = vadd.f32 %v5431_v42, %v542_v44  ;;  %v581_v50 = vpop.f32.mrb[4].mxu1  ;;  %v5610_v42 = vld [vmem:[#allocation6 + $0x98] ss:$12 sps:$4 sm:$0xff]   ;;  %v6319_v44 = vld [vmem:[#allocation6 + $0xa8] ss:$12 sps:$4 sm:$0xff]  }
 0x150   :  { %v4605_v46 = vmul.f32 -1.442695, %v5430_v43  ;;  %v545_v47 = vpop.f32.mrb[3].mxu0  ;;  %v5147_v51 = vpop.f32.mrb[5].mxu1  ;;  %v582_v62 = vadd.f32 %v581_v50, %v374_v57  ;;  %v6316_v43 = vld [vmem:[#allocation6 + $0xac] ss:$12 sps:$4 sm:$0xff]  }
 0x151   :  { %v4606_v49 = vmul.f32 -1.442695, %v5432_v48  ;;  %v584_v52 = vpop.f32.mrb[6].mxu1  ;;  %v5614_v45 = vld [vmem:[#allocation6 + $0xb0] ss:$12 sps:$4 sm:$0xff]  }
 0x152   :  { %5778 = vpow2.f32 %v4605_v46  ;;  %v5148_v53 = vpop.f32.mrb[7].mxu1  ;;  %v6323_v46 = vld [vmem:[#allocation8 + $0x4] ss:$12 sps:$4 sm:$0xff]   ;;  %v6326_v47 = vld [vmem:[#allocation8] ss:$12 sps:$4 sm:$0xff]  }
 0x153   :  { %5780 = vpow2.f32 %v4606_v49  ;;  %v5618_v48 = vld [vmem:[#allocation8 + $0x8] ss:$12 sps:$4 sm:$0xff]   ;;  %v1187_v49 = vld [vmem:[#allocation3 + $0x2] sm:$0x1]  ;;  %v5622_v52 = vld [vmem:[#allocation8 + $0x20] ss:$12 sps:$4 sm:$0xff]  }
 0x154   :  { %v6330_v50 = vld [vmem:[#allocation8 + $0x1c] ss:$12 sps:$4 sm:$0xff]   ;;  %v6332_v51 = vld [vmem:[#allocation8 + $0x18] ss:$12 sps:$4 sm:$0xff]   ;;  %v6340_v53 = vld [vmem:[#allocation8 + $0x34] ss:$12 sps:$4 sm:$0xff]  }
 0x155   :  { %v6347_v57 = vld [vmem:[#allocation8 + $0x4c] ss:$12 sps:$4 sm:$0xff]  }
 0x15c   :  { %v5779_v54 = vpop.eup %5778 }
 0x15d   :  { %v591_v55 = vadd.f32 1.0, %v5779_v54  ;;  %v5781_v59 = vpop.eup %5780  ;;  %v6342_v54 = vld [vmem:[#allocation8 + $0x30] ss:$12 sps:$4 sm:$0xff]  }
 0x15e   :  { %v598_v61 = vadd.f32 1.0, %v5781_v59  ;;  %v6349_v59 = vld [vmem:[#allocation8 + $0x48] ss:$12 sps:$4 sm:$0xff]  }
 0x15f   :  { %5782 = vrcp.f32 %v591_v55  ;;  %v5626_v55 = vld [vmem:[#allocation8 + $0x38] ss:$12 sps:$4 sm:$0xff]  }
 0x160   :  { %5784 = vrcp.f32 %v598_v61  ;;  %v6354_v61 = vld [vmem:[#allocation8 + $0x64] ss:$12 sps:$4 sm:$0xff]  }
 0x169   :  { %v5783_v63 = vpop.eup %5782 }
 0x16a   :  { %v601_v12 = vmul.f32 %v5783_v63, %v582_v62  ;;  %v5785_v17 = vpop.eup %5784  ;;  %v6356_v62 = vld [vmem:[#allocation8 + $0x60] ss:$12 sps:$4 sm:$0xff]   ;;  %v5634_v63 = vld [vmem:[#allocation8 + $0x68] ss:$12 sps:$4 sm:$0xff]  }
 0x16b   :  { %v604_v23 = vsub.f32 1.0, %v5785_v17  ;;  %v606_v3 = vmul.f32 %v5785_v17, %v6175_v58  ;;  %v6368_v17 = vld [vmem:[#allocation8 + $0x94] ss:$12 sps:$4 sm:$0xff]  }
 0x16c   :  { %v602_v14 = vadd.f32 %v601_v12, %v323_v9  ;;  %v6361_v9 = vld [vmem:[#allocation8 + $0x7c] ss:$12 sps:$4 sm:$0xff]   ;;  %v6363_v12 = vld [vmem:[#allocation8 + $0x78] ss:$12 sps:$4 sm:$0xff]  }
 0x16e   :  { %5786 = vtanh.f32 %v602_v14  ;;  %v5638_v14 = vld [vmem:[#allocation8 + $0x80] ss:$12 sps:$4 sm:$0xff]  }
 0x16f   :  { %v6273_v58 = vpop.f32.mrb[8].mxu1 }
 0x170   :  { %v5167_v18 = vpop.f32.mrb[9].mxu1 }
 0x171   :  { %v884_v19 = vpop.f32.mrb[10].mxu1 }
 0x172   :  { %v5168_v21 = vpop.f32.mrb[11].mxu1 }
 0x178   :  { %v5787_v2 = vpop.eup %5786 }
 0x179   :  { %v605_v4 = vmul.f32 %v5787_v2, %v604_v23  ;;  %v5642_v23 = vld [vmem:[#allocation8 + $0x98] ss:$12 sps:$4 sm:$0xff]  }
 0x17a   :  { %v6375_v2 = vld [vmem:[#allocation8 + $0xac] ss:$12 sps:$4 sm:$0xff]  }
 0x17b   :  { %v607_v5 = vadd.f32 %v606_v3, %v605_v4  ;;  %v6377_v3 = vld [vmem:[#allocation8 + $0xa8] ss:$12 sps:$4 sm:$0xff]   ;;  %v5646_v4 = vld [vmem:[#allocation8 + $0xb0] ss:$12 sps:$4 sm:$0xff]  }
 0x17d   :  { %v616_v8 = vmul.f32 %v614_v20, %v607_v5  ;;  %v6370_v20 = vld [vmem:[#allocation8 + $0x90] ss:$12 sps:$4 sm:$0xff]  }
 0x17e   :  { %v6383_v5 = vld [vmem:[#allocation6 + $0x4] ss:$12 sps:$4 sm:$0xff]  }
 0x17f   :  { %v624_v10 = vadd.f32 %v623_v7, %v616_v8  ;;  %v661_v7 = vld [vmem:[%s6867_s3] sm:$0x7] }
 0x180   :  { %v666_v8 = vrot.slane %v661_v7, %v6245_v32 }
 0x181   :  { %625 = vst [vmem:[#allocation2] sm:$0x3] %v624_v10  ;;  %v925_v10 = vrot.slane %v920_v6, %v6245_v32 }
 0x188   :  { %v6265_v11 = vld [vmem:[#allocation2] sm:$0x3] }
 0x189   :  { %v887_v15 = vpack.c.bf16 %v6265_v11, %v6265_v11 }
 0x18b   :  { %1098 = vmatmul.mubr.bf16.vlgmr.msra.gmra.mrb[4].mxu0 %v887_v15  ;;  %5186 = vmatmul.mubr.bf16.vlgmr.msra.gmra.mrb[12].mxu1 %v887_v15  ;;  %v929_v15 = vrot.slane %v920_v6, %v6253_v35 }
 0x18c   :  { %1366 = vmatpush1.bf16.msra.mxu0 %v5859_v16  ;;  %5190 = vmatpush3.bf16.msra.mxu1 %v5586_v13  ;;  %v670_v13 = vrot.slane %v661_v7, %v6253_v35  ;;  %v5433_v16 = vadd.f32 %v925_v10, %v666_v8 }
 0x18d   :  { %5191 = vmatprep.subr.bf16.mxu1 %v5961_v0  ;;  %1397 = vmatprep.mubr.bf16.mxu0 %v5962_v1 }
 0x18e   :  { %5205 = vmatprep.mubr.msk.bf16.mxu1 %vm5963_vm0, %v5961_v0  ;;  %1367 = vmatprep.subr.bf16.mxu0 %v6275_v22  ;;  %v5435_v21 = vadd.f32 %v929_v15, %v670_v13 }
 0x190   :  { %1368 = vmatpush1.bf16.msra.mxu0 %v6277_v24  ;;  %5192 = vmatpush3.bf16.msra.mxu1 %v5590_v25 }
 0x191   :  { %5193 = vmatprep.subr.bf16.mxu1 %v5961_v0  ;;  %1369 = vmatprep.subr.bf16.mxu0 %v6281_v26 }
 0x194   :  { %1370 = vmatpush1.bf16.msra.mxu0 %v6284_v27  ;;  %5194 = vmatpush3.bf16.msra.mxu1 %v5594_v28 }
 0x195   :  { %5195 = vmatprep.subr.bf16.mxu1 %v5961_v0  ;;  %1371 = vmatprep.subr.bf16.mxu0 %v6288_v29 }
 0x198   :  { %1372 = vmatpush1.bf16.msra.mxu0 %v6291_v30  ;;  %5196 = vmatpush3.bf16.msra.mxu1 %v5598_v31 }
 0x199   :  { %5197 = vmatprep.subr.bf16.mxu1 %v5961_v0  ;;  %1373 = vmatprep.subr.bf16.mxu0 %v6295_v33 }
 0x19c   :  { %1374 = vmatpush1.bf16.msra.mxu0 %v6298_v34  ;;  %5198 = vmatpush3.bf16.msra.mxu1 %v5602_v36 }
 0x19d   :  { %5199 = vmatprep.subr.bf16.mxu1 %v5961_v0  ;;  %1375 = vmatprep.subr.bf16.mxu0 %v6302_v37 }
 0x1a0   :  { %1376 = vmatpush1.bf16.msra.mxu0 %v6305_v38  ;;  %5200 = vmatpush3.bf16.msra.mxu1 %v5606_v39 }
 0x1a1   :  { %5201 = vmatprep.subr.bf16.mxu1 %v5961_v0  ;;  %1377 = vmatprep.subr.bf16.mxu0 %v6309_v40 }
 0x1a4   :  { %1378 = vmatpush1.bf16.msra.mxu0 %v6312_v41  ;;  %5202 = vmatpush3.bf16.msra.mxu1 %v5610_v42 }
 0x1a5   :  { %5203 = vmatprep.subr.bf16.mxu1 %v5961_v0  ;;  %1379 = vmatprep.subr.bf16.mxu0 %v6316_v43 }
 0x1a8   :  { %1380 = vmatpush1.bf16.msra.mxu0 %v6319_v44  ;;  %5204 = vmatpush3.bf16.msra.mxu1 %v5614_v45 }
 0x1a9   :  { %5209 = vmatprep.subr.bf16.mxu1 %v5961_v0  ;;  %1624 = vmatprep.subr.bf16.mxu0 %v6323_v46 }
 0x1ab   :  { %1398 = vmatmul.mubr.bf16.vlgmr.msra.gmra.mrb[8].mxu0 %v1187_v49  ;;  %5206 = vmatmul.mubr.bf16.vlgmr.msra.gmra.mrb[16].mxu1 %v1187_v49 }
 0x1ac   :  { %1625 = vmatpush1.bf16.msra.mxu0 %v6326_v47  ;;  %5210 = vmatpush3.bf16.msra.mxu1 %v5618_v48 }
 0x1ad   :  { %5211 = vmatprep.subr.bf16.mxu1 %v5961_v0  ;;  %1656 = vmatprep.mubr.bf16.mxu0 %v5962_v1 }
 0x1ae   :  { %1626 = vmatprep.subr.bf16.mxu0 %v6330_v50  ;;  %5225 = vmatprep.mubr.msk.bf16.mxu1 %vm5963_vm0, %v5961_v0 }
 0x1b0   :  { %1627 = vmatpush1.bf16.msra.mxu0 %v6332_v51  ;;  %5212 = vmatpush3.bf16.msra.mxu1 %v5622_v52 }
 0x1b1   :  { %5213 = vmatprep.subr.bf16.mxu1 %v5961_v0  ;;  %1628 = vmatprep.subr.bf16.mxu0 %v6340_v53 }
 0x1b4   :  { %1629 = vmatpush1.bf16.msra.mxu0 %v6342_v54  ;;  %5214 = vmatpush3.bf16.msra.mxu1 %v5626_v55 }
 0x1b5   :  { %5215 = vmatprep.subr.bf16.mxu1 %v5961_v0  ;;  %1630 = vmatprep.subr.bf16.mxu0 %v6347_v57 }
 0x1b8   :  { %1631 = vmatpush1.bf16.msra.mxu0 %v6349_v59  ;;  %5216 = vmatpush3.bf16.msra.mxu1 %v5630_v60 }
 0x1b9   :  { %5217 = vmatprep.subr.bf16.mxu1 %v5961_v0  ;;  %1632 = vmatprep.subr.bf16.mxu0 %v6354_v61 }
 0x1bc   :  { %1633 = vmatpush1.bf16.msra.mxu0 %v6356_v62  ;;  %5218 = vmatpush3.bf16.msra.mxu1 %v5634_v63 }
 0x1bd   :  { %5219 = vmatprep.subr.bf16.mxu1 %v5961_v0  ;;  %1634 = vmatprep.subr.bf16.mxu0 %v6361_v9 }
 0x1c0   :  { %1635 = vmatpush1.bf16.msra.mxu0 %v6363_v12  ;;  %5220 = vmatpush3.bf16.msra.mxu1 %v5638_v14  ;;  %v933_v14 = vrot.slane %v920_v6, %v6259_v56 }
 0x1c1   :  { %5221 = vmatprep.subr.bf16.mxu1 %v5961_v0  ;;  %1636 = vmatprep.subr.bf16.mxu0 %v6368_v17 }
 0x1c4   :  { %1637 = vmatpush1.bf16.msra.mxu0 %v6370_v20  ;;  %5222 = vmatpush3.bf16.msra.mxu1 %v5642_v23  ;;  %v674_v23 = vrot.slane %v661_v7, %v6259_v56 }
 0x1c5   :  { %5223 = vmatprep.subr.bf16.mxu1 %v5961_v0  ;;  %1638 = vmatprep.subr.bf16.mxu0 %v6375_v2 }
 0x1c6   :  { %v882_v13 = vadd.f32 %v6273_v58, %v674_v23  ;;  %v6403_v58 = vld [vmem:[#allocation6] ss:$12 sps:$4 sm:$0xff]   ;;  %v5653_v23 = vld [vmem:[#allocation6 + $0x50] ss:$12 sps:$4 sm:$0xff]  }
 0x1c8   :  { %1639 = vmatpush1.bf16.msra.mxu0 %v6377_v3  ;;  %5224 = vmatpush3.bf16.msra.mxu1 %v5646_v4 }
 0x1c9   :  { %5229 = vmatprep.subr.bf16.mxu1 %v5961_v0  ;;  %1924 = vmatprep.subr.bf16.mxu0 %v6383_v5 }
 0x25e   :  { %v1099_v18 = vpop.f32.mrb[4].mxu0  ;;  %v1140_v19 = vpop.f32.mrb[12].mxu1 }
 0x25f   :  { %v5434_v25 = vadd.f32 %v5433_v16, %v1099_v18  ;;  %v1101_v28 = vpop.f32.mrb[5].mxu0  ;;  %v5187_v31 = vpop.f32.mrb[13].mxu1  ;;  %v1141_v8 = vadd.f32 %v1140_v19, %v933_v14  ;;  %v5652_v14 = vld [vmem:[#allocation6 + $0x38] ss:$12 sps:$4 sm:$0xff]  }
 0x260   :  { %v1103_v36 = vpop.f32.mrb[6].mxu0  ;;  %v1143_v39 = vpop.f32.mrb[14].mxu1  ;;  %v5436_v49 = vadd.f32 %v5435_v21, %v1101_v28 }
 0x261   :  { %v4656_v42 = vmul.f32 -1.442695, %v5434_v25  ;;  %v1104_v45 = vpop.f32.mrb[7].mxu0  ;;  %v5188_v48 = vpop.f32.mrb[15].mxu1 }
 0x262   :  { %v4657_v52 = vmul.f32 -1.442695, %v5436_v49  ;;  %v1173_v21 = vpop.permute.xlu1 %1172  ;;  %v5650_v48 = vld [vmem:[#allocation6 + $0x8] ss:$12 sps:$4 sm:$0xff]  }
 0x263   :  { %5788 = vpow2.f32 %v4656_v42 }
 0x264   :  { %5790 = vpow2.f32 %v4657_v52 }
 0x266   :  { %v1180_v39 = vpop.permute.xlu1 %1179 }
 0x267   :  { %v1182_v7 = vmul.f32 %v1180_v39, %v6265_v11  ;;  %v5665_v39 = vld [vmem:[#allocation8 + $0xb0] ss:$12 sps:$4 sm:$0xff]  }
 0x26d   :  { %v5789_v55 = vpop.eup %5788 }
 0x26e   :  { %v1150_v60 = vadd.f32 1.0, %v5789_v55  ;;  %v5791_v63 = vpop.eup %5790 }
 0x26f   :  { %v1157_v4 = vadd.f32 1.0, %v5791_v63  ;;  %v5651_v63 = vld [vmem:[#allocation6 + $0x20] ss:$12 sps:$4 sm:$0xff]  }
 0x270   :  { %5792 = vrcp.f32 %v1150_v60 }
 0x271   :  { %5794 = vrcp.f32 %v1157_v4  ;;  %v5654_v4 = vld [vmem:[#allocation6 + $0x68] ss:$12 sps:$4 sm:$0xff]  }
 0x27a   :  { %v5793_v10 = vpop.eup %5792 }
 0x27b   :  { %v1160_v15 = vmul.f32 %v5793_v10, %v1141_v8  ;;  %v5795_v18 = vpop.eup %5794  ;;  %v5655_v8 = vld [vmem:[#allocation6 + $0x80] ss:$12 sps:$4 sm:$0xff]   ;;  %v5656_v10 = vld [vmem:[#allocation6 + $0x98] ss:$12 sps:$4 sm:$0xff]  }
 0x27c   :  { %v1163_v25 = vsub.f32 1.0, %v5795_v18  ;;  %v1165_v36 = vmul.f32 %v5795_v18, %v6265_v11  ;;  %v5659_v18 = vld [vmem:[#allocation8 + $0x20] ss:$12 sps:$4 sm:$0xff]  }
 0x27d   :  { %v1161_v16 = vadd.f32 %v1160_v15, %v882_v13  ;;  %v5657_v13 = vld [vmem:[#allocation6 + $0xb0] ss:$12 sps:$4 sm:$0xff]   ;;  %v5658_v15 = vld [vmem:[#allocation8 + $0x8] ss:$12 sps:$4 sm:$0xff]  }
 0x27e   :  { %v6427_v11 = vpop.f32.mrb[16].mxu1 }
 0x27f   :  { %5796 = vtanh.f32 %v1161_v16  ;;  %v5207_v52 = vpop.f32.mrb[17].mxu1  ;;  %v1746_v16 = vld [vmem:[#allocation3 + $0x3] sm:$0x1] }
 0x280   :  { %v1443_v55 = vpop.f32.mrb[18].mxu1 }
 0x281   :  { %v5208_v60 = vpop.f32.mrb[19].mxu1 }
 0x289   :  { %v5797_v28 = vpop.eup %5796 }
 0x28a   :  { %v1164_v31 = vmul.f32 %v5797_v28, %v1163_v25  ;;  %v5661_v25 = vld [vmem:[#allocation8 + $0x50] ss:$12 sps:$4 sm:$0xff]   ;;  %v5662_v28 = vld [vmem:[#allocation8 + $0x68] ss:$12 sps:$4 sm:$0xff]  }
 0x28c   :  { %v1166_v6 = vadd.f32 %v1165_v36, %v1164_v31  ;;  %v5663_v31 = vld [vmem:[#allocation8 + $0x80] ss:$12 sps:$4 sm:$0xff]   ;;  %v5664_v36 = vld [vmem:[#allocation8 + $0x98] ss:$12 sps:$4 sm:$0xff]  }
 0x28e   :  { %v1175_v42 = vmul.f32 %v1173_v21, %v1166_v6  ;;  %v5660_v21 = vld [vmem:[#allocation8 + $0x38] ss:$12 sps:$4 sm:$0xff]  }
 0x28f   :  { %v1479_v6 = vld [vmem:[%s6869_s5] sm:$0x7] }
 0x290   :  { %v1183_v19 = vadd.f32 %v1182_v7, %v1175_v42  ;;  %v1220_v7 = vld [vmem:[%s6867_s3] sm:$0x7] }
 0x291   :  { %v1225_v42 = vrot.slane %v1220_v7, %v6245_v32 }
 0x292   :  { %1184 = vst [vmem:[#allocation2] sm:$0x3] %v1183_v19  ;;  %v1484_v19 = vrot.slane %v1479_v6, %v6245_v32 }
 0x294   :  { %v5437_v52 = vadd.f32 %v1484_v19, %v1225_v42 }
 0x299   :  { %v6401_v45 = vld [vmem:[#allocation2] sm:$0x3] }
 0x29a   :  { %v1446_v49 = vpack.c.bf16 %v6401_v45, %v6401_v45 }
 0x29c   :  { %1657 = vmatmul.mubr.bf16.vlgmr.msra.gmra.mrb[8].mxu0 %v1446_v49  ;;  %5226 = vmatmul.mubr.bf16.vlgmr.msra.gmra.mrb[20].mxu1 %v1446_v49  ;;  %v1488_v49 = vrot.slane %v1479_v6, %v6253_v35 }
 0x29d   :  { %1925 = vmatpush1.bf16.msra.mxu0 %v6403_v58  ;;  %5230 = vmatpush3.bf16.msra.mxu1 %v5650_v48  ;;  %v1229_v48 = vrot.slane %v1220_v7, %v6253_v35 }
 0x29e   :  { %1926 = vmatprep.subr.bf16.mxu0 %v6275_v22  ;;  %5231 = vmatprep.subr.bf16.mxu1 %v5961_v0 }
 0x29f   :  { %1956 = vmatprep.mubr.bf16.mxu0 %v5962_v1  ;;  %5245 = vmatprep.mubr.msk.bf16.mxu1 %vm5963_vm0, %v5961_v0 }
 0x2a1   :  { %1927 = vmatpush1.bf16.msra.mxu0 %v6277_v24  ;;  %5232 = vmatpush3.bf16.msra.mxu1 %v5651_v63  ;;  %v5439_v63 = vadd.f32 %v1488_v49, %v1229_v48 }
 0x2a2   :  { %1928 = vmatprep.subr.bf16.mxu0 %v6281_v26  ;;  %5233 = vmatprep.subr.bf16.mxu1 %v5961_v0 }
 0x2a5   :  { %1929 = vmatpush1.bf16.msra.mxu0 %v6284_v27  ;;  %5234 = vmatpush3.bf16.msra.mxu1 %v5652_v14 }
 0x2a6   :  { %1930 = vmatprep.subr.bf16.mxu0 %v6288_v29  ;;  %5235 = vmatprep.subr.bf16.mxu1 %v5961_v0 }
 0x2a9   :  { %1931 = vmatpush1.bf16.msra.mxu0 %v6291_v30  ;;  %5236 = vmatpush3.bf16.msra.mxu1 %v5653_v23 }
 0x2aa   :  { %1932 = vmatprep.subr.bf16.mxu0 %v6295_v33  ;;  %5237 = vmatprep.subr.bf16.mxu1 %v5961_v0 }
 0x2ad   :  { %1933 = vmatpush1.bf16.msra.mxu0 %v6298_v34  ;;  %5238 = vmatpush3.bf16.msra.mxu1 %v5654_v4 }
 0x2ae   :  { %1934 = vmatprep.subr.bf16.mxu0 %v6302_v37  ;;  %5239 = vmatprep.subr.bf16.mxu1 %v5961_v0 }
 0x2b1   :  { %1935 = vmatpush1.bf16.msra.mxu0 %v6305_v38  ;;  %5240 = vmatpush3.bf16.msra.mxu1 %v5655_v8 }
 0x2b2   :  { %1936 = vmatprep.subr.bf16.mxu0 %v6309_v40  ;;  %5241 = vmatprep.subr.bf16.mxu1 %v5961_v0 }
 0x2b5   :  { %1937 = vmatpush1.bf16.msra.mxu0 %v6312_v41  ;;  %5242 = vmatpush3.bf16.msra.mxu1 %v5656_v10 }
 0x2b6   :  { %1938 = vmatprep.subr.bf16.mxu0 %v6316_v43  ;;  %5243 = vmatprep.subr.bf16.mxu1 %v5961_v0 }
 0x2b9   :  { %1939 = vmatpush1.bf16.msra.mxu0 %v6319_v44  ;;  %5244 = vmatpush3.bf16.msra.mxu1 %v5657_v13 }
 0x2ba   :  { %2183 = vmatprep.subr.bf16.mxu0 %v6323_v46  ;;  %5249 = vmatprep.subr.bf16.mxu1 %v5961_v0 }
 0x2bc   :  { %1957 = vmatmul.mubr.bf16.vlgmr.msra.gmra.mrb[12].mxu0 %v1746_v16  ;;  %5246 = vmatmul.mubr.bf16.vlgmr.msra.gmra.mrb[24].mxu1 %v1746_v16 }
 0x2bd   :  { %2184 = vmatpush1.bf16.msra.mxu0 %v6326_v47  ;;  %5250 = vmatpush3.bf16.msra.mxu1 %v5658_v15 }
 0x2be   :  { %2185 = vmatprep.subr.bf16.mxu0 %v6330_v50  ;;  %5251 = vmatprep.subr.bf16.mxu1 %v5961_v0 }
 0x2bf   :  { %2215 = vmatprep.mubr.bf16.mxu0 %v5962_v1  ;;  %5265 = vmatprep.mubr.msk.bf16.mxu1 %vm5963_vm0, %v5961_v0 }
 0x2c1   :  { %2186 = vmatpush1.bf16.msra.mxu0 %v6332_v51  ;;  %5252 = vmatpush3.bf16.msra.mxu1 %v5659_v18 }
 0x2c2   :  { %2187 = vmatprep.subr.bf16.mxu0 %v6340_v53  ;;  %5253 = vmatprep.subr.bf16.mxu1 %v5961_v0 }
 0x2c5   :  { %2188 = vmatpush1.bf16.msra.mxu0 %v6342_v54  ;;  %5254 = vmatpush3.bf16.msra.mxu1 %v5660_v21 }
 0x2c6   :  { %2189 = vmatprep.subr.bf16.mxu0 %v6347_v57  ;;  %5255 = vmatprep.subr.bf16.mxu1 %v5961_v0 }
 0x2c9   :  { %2190 = vmatpush1.bf16.msra.mxu0 %v6349_v59  ;;  %5256 = vmatpush3.bf16.msra.mxu1 %v5661_v25 }
 0x2ca   :  { %2191 = vmatprep.subr.bf16.mxu0 %v6354_v61  ;;  %5257 = vmatprep.subr.bf16.mxu1 %v5961_v0 }
 0x2cd   :  { %2192 = vmatpush1.bf16.msra.mxu0 %v6356_v62  ;;  %5258 = vmatpush3.bf16.msra.mxu1 %v5662_v28 }
 0x2ce   :  { %2193 = vmatprep.subr.bf16.mxu0 %v6361_v9  ;;  %5259 = vmatprep.subr.bf16.mxu1 %v5961_v0 }
 0x2d1   :  { %2194 = vmatpush1.bf16.msra.mxu0 %v6363_v12  ;;  %5260 = vmatpush3.bf16.msra.mxu1 %v5663_v31 }
 0x2d2   :  { %2195 = vmatprep.subr.bf16.mxu0 %v6368_v17  ;;  %5261 = vmatprep.subr.bf16.mxu1 %v5961_v0 }
 0x2d5   :  { %2196 = vmatpush1.bf16.msra.mxu0 %v6370_v20  ;;  %5262 = vmatpush3.bf16.msra.mxu1 %v5664_v36  ;;  %v1492_v36 = vrot.slane %v1479_v6, %v6259_v56  ;;  %v1739_v6 = vpop.permute.xlu1 %1738 }
 0x2d6   :  { %2197 = vmatprep.subr.bf16.mxu0 %v6375_v2  ;;  %5263 = vmatprep.subr.bf16.mxu1 %v5961_v0 }
 0x2d9   :  { %2198 = vmatpush1.bf16.msra.mxu0 %v6377_v3  ;;  %5264 = vmatpush3.bf16.msra.mxu1 %v5665_v39  ;;  %v1233_v39 = vrot.slane %v1220_v7, %v6259_v56  ;;  %v1741_v7 = vmul.f32 %v1739_v6, %v6401_v45 }
 0x2da   :  { %2483 = vmatprep.subr.bf16.mxu0 %v6383_v5  ;;  %5269 = vmatprep.subr.bf16.mxu1 %v5961_v0 }
 0x2db   :  { %v1441_v49 = vadd.f32 %v6427_v11, %v1233_v39  ;;  %v5666_v11 = vld [vmem:[#allocation6 + $0x8] ss:$12 sps:$4 sm:$0xff]  }
 0x36f   :  { %v1658_v55 = vpop.f32.mrb[8].mxu0  ;;  %v1699_v60 = vpop.f32.mrb[20].mxu1 }
 0x370   :  { %v5438_v14 = vadd.f32 %v5437_v52, %v1658_v55  ;;  %v1660_v23 = vpop.f32.mrb[9].mxu0  ;;  %v5227_v4 = vpop.f32.mrb[21].mxu1  ;;  %v1700_v19 = vadd.f32 %v1699_v60, %v1492_v36 }
 0x371   :  { %v1662_v8 = vpop.f32.mrb[10].mxu0  ;;  %v1702_v10 = vpop.f32.mrb[22].mxu1  ;;  %v5440_v18 = vadd.f32 %v5439_v63, %v1660_v23 }
 0x372   :  { %v4707_v13 = vmul.f32 -1.442695, %v5438_v14  ;;  %v1663_v15 = vpop.f32.mrb[11].mxu0  ;;  %v5228_v16 = vpop.f32.mrb[23].mxu1 }
 0x373   :  { %v4708_v21 = vmul.f32 -1.442695, %v5440_v18 }
 0x374   :  { %5798 = vpow2.f32 %v4707_v13  ;;  %v1732_v13 = vpop.permute.xlu0 %1731 }
 0x375   :  { %5800 = vpow2.f32 %v4708_v21 }
 0x37e   :  { %v5799_v25 = vpop.eup %5798 }
 0x37f   :  { %v1709_v28 = vadd.f32 1.0, %v5799_v25  ;;  %v5801_v31 = vpop.eup %5800 }
 0x380   :  { %v1716_v42 = vadd.f32 1.0, %v5801_v31 }
 0x381   :  { %5802 = vrcp.f32 %v1709_v28 }
 0x382   :  { %5804 = vrcp.f32 %v1716_v42 }
 0x38b   :  { %v5803_v48 = vpop.eup %5802 }
 0x38c   :  { %v1719_v52 = vmul.f32 %v5803_v48, %v1700_v19  ;;  %v5805_v63 = vpop.eup %5804 }
 0x38d   :  { %v1722_v14 = vsub.f32 1.0, %v5805_v63  ;;  %v1724_v8 = vmul.f32 %v5805_v63, %v6401_v45 }
 0x38e   :  { %v1720_v55 = vadd.f32 %v1719_v52, %v1441_v49 }
 0x390   :  { %5806 = vtanh.f32 %v1720_v55 }
 0x39a   :  { %v5807_v23 = vpop.eup %5806 }
 0x39b   :  { %v1723_v4 = vmul.f32 %v5807_v23, %v1722_v14 }
 0x39d   :  { %v1725_v10 = vadd.f32 %v1724_v8, %v1723_v4 }
 0x39f   :  { %v1734_v15 = vmul.f32 %v1732_v13, %v1725_v10 }
 0x3a1   :  { %v1742_v60 = vadd.f32 %v1741_v7, %v1734_v15 }
 0x3a3   :  { %1743 = vst [vmem:[#allocation2] sm:$0x3] %v1742_v60 }
 0x3aa   :  { %v6478_v16 = vld [vmem:[#allocation2] sm:$0x3] }
 0x3ab   :  { %v2005_v18 = vpack.c.bf16 %v6478_v16, %v6478_v16 }
 0x3ad   :  { %2216 = vmatmul.mubr.bf16.vlgmr.msra.gmra.mrb[12].mxu0 %v2005_v18  ;;  %5266 = vmatmul.mubr.bf16.vlgmr.msra.gmra.mrb[28].mxu1 %v2005_v18 }
 0x3ae   :  { %2484 = vmatpush1.bf16.msra.mxu0 %v6403_v58  ;;  %5270 = vmatpush3.bf16.msra.mxu1 %v5666_v11 }
 0x3af   :  { %2485 = vmatprep.subr.bf16.mxu0 %v6275_v22  ;;  %5271 = vmatprep.subr.bf16.mxu1 %v5961_v0  ;;  %v6502_v22 = vpop.f32.mrb[24].mxu1 }
 0x3b0   :  { %2515 = vmatprep.mubr.bf16.mxu0 %v5962_v1  ;;  %5285 = vmatprep.mubr.msk.bf16.mxu1 %vm5963_vm0, %v5961_v0 }
 0x3b2   :  { %2486 = vmatpush1.bf16.msra.mxu0 %v6277_v24  ;;  %v5247_v24 = vpop.f32.mrb[25].mxu1 }
 0x3b3   :  { %2487 = vmatprep.subr.bf16.mxu0 %v6281_v26  ;;  %v2002_v26 = vpop.f32.mrb[26].mxu1  ;;  %v2291_v24 = vpop.permute.xlu0 %2290 }
 0x3b4   :  { %v2298_v26 = vpop.permute.xlu1 %2297 }
 0x3b6   :  { %2488 = vmatpush1.bf16.msra.mxu0 %v6284_v27  ;;  %v5248_v27 = vpop.f32.mrb[27].mxu1 }
 0x3b7   :  { %2489 = vmatprep.subr.bf16.mxu0 %v6288_v29  ;;  %v5667_v29 = vld [vmem:[#allocation6 + $0x20] ss:$12 sps:$4 sm:$0xff]  }
 0x3b8   :  { %5272 = vmatpush3.bf16.msra.mxu1 %v5667_v29  ;;  %v2300_v29 = vmul.f32 %v2298_v26, %v6478_v16  ;;  %v2338_v26 = vld [vmem:[%s6867_s3] sm:$0x7] }
 0x3b9   :  { %5273 = vmatprep.subr.bf16.mxu1 %v5961_v0 }
 0x3ba   :  { %2490 = vmatpush1.bf16.msra.mxu0 %v6291_v30  ;;  %v5668_v30 = vld [vmem:[#allocation6 + $0x38] ss:$12 sps:$4 sm:$0xff]  }
 0x3bb   :  { %2491 = vmatprep.subr.bf16.mxu0 %v6295_v33  ;;  %v5669_v33 = vld [vmem:[#allocation6 + $0x50] ss:$12 sps:$4 sm:$0xff]  }
 0x3bc   :  { %5274 = vmatpush3.bf16.msra.mxu1 %v5668_v30 }
 0x3bd   :  { %5275 = vmatprep.subr.bf16.mxu1 %v5961_v0 }
 0x3be   :  { %2492 = vmatpush1.bf16.msra.mxu0 %v6298_v34  ;;  %v5670_v34 = vld [vmem:[#allocation6 + $0x68] ss:$12 sps:$4 sm:$0xff]  }
 0x3bf   :  { %2493 = vmatprep.subr.bf16.mxu0 %v6302_v37  ;;  %v5671_v37 = vld [vmem:[#allocation6 + $0x80] ss:$12 sps:$4 sm:$0xff]  }
 0x3c0   :  { %5276 = vmatpush3.bf16.msra.mxu1 %v5669_v33 }
 0x3c1   :  { %5277 = vmatprep.subr.bf16.mxu1 %v5961_v0 }
 0x3c2   :  { %2494 = vmatpush1.bf16.msra.mxu0 %v6305_v38  ;;  %v5672_v38 = vld [vmem:[#allocation6 + $0x98] ss:$12 sps:$4 sm:$0xff]  }
 0x3c3   :  { %2495 = vmatprep.subr.bf16.mxu0 %v6309_v40  ;;  %v5673_v40 = vld [vmem:[#allocation6 + $0xb0] ss:$12 sps:$4 sm:$0xff]  }
 0x3c4   :  { %5278 = vmatpush3.bf16.msra.mxu1 %v5670_v34 }
 0x3c5   :  { %5279 = vmatprep.subr.bf16.mxu1 %v5961_v0 }
 0x3c6   :  { %2496 = vmatpush1.bf16.msra.mxu0 %v6312_v41  ;;  %v5674_v41 = vld [vmem:[#allocation8 + $0x8] ss:$12 sps:$4 sm:$0xff]  }
 0x3c7   :  { %2497 = vmatprep.subr.bf16.mxu0 %v6316_v43  ;;  %v2305_v43 = vld [vmem:[#allocation3 + $0x4] sm:$0x1] }
 0x3c8   :  { %5280 = vmatpush3.bf16.msra.mxu1 %v5671_v37 }
 0x3c9   :  { %5281 = vmatprep.subr.bf16.mxu1 %v5961_v0 }
 0x3ca   :  { %2498 = vmatpush1.bf16.msra.mxu0 %v6319_v44  ;;  %v5675_v44 = vld [vmem:[#allocation8 + $0x20] ss:$12 sps:$4 sm:$0xff]  }
 0x3cb   :  { %2742 = vmatprep.subr.bf16.mxu0 %v6323_v46  ;;  %v5676_v46 = vld [vmem:[#allocation8 + $0x38] ss:$12 sps:$4 sm:$0xff]  }
 0x3cc   :  { %5282 = vmatpush3.bf16.msra.mxu1 %v5672_v38 }
 0x3cd   :  { %5283 = vmatprep.subr.bf16.mxu1 %v5961_v0  ;;  %2516 = vmatmul.mubr.bf16.vlgmr.msra.gmra.mrb[16].mxu0 %v2305_v43 }
 0x3ce   :  { %2743 = vmatpush1.bf16.msra.mxu0 %v6326_v47  ;;  %2774 = vmatprep.mubr.bf16.mxu0 %v5962_v1  ;;  %v5677_v47 = vld [vmem:[#allocation8 + $0x50] ss:$12 sps:$4 sm:$0xff]  }
 0x3cf   :  { %2744 = vmatprep.subr.bf16.mxu0 %v6330_v50  ;;  %v5678_v50 = vld [vmem:[#allocation8 + $0x68] ss:$12 sps:$4 sm:$0xff]  }
 0x3d0   :  { %5284 = vmatpush3.bf16.msra.mxu1 %v5673_v40 }
 0x3d1   :  { %5289 = vmatprep.subr.bf16.mxu1 %v5961_v0 }
 0x3d2   :  { %2745 = vmatpush1.bf16.msra.mxu0 %v6332_v51  ;;  %v5679_v51 = vld [vmem:[#allocation8 + $0x80] ss:$12 sps:$4 sm:$0xff]  }
 0x3d3   :  { %5286 = vmatmul.mubr.bf16.vlgmr.msra.gmra.mrb[32].mxu1 %v2305_v43  ;;  %2746 = vmatprep.subr.bf16.mxu0 %v6340_v53  ;;  %v5680_v53 = vld [vmem:[#allocation8 + $0x98] ss:$12 sps:$4 sm:$0xff]  }
 0x3d4   :  { %5290 = vmatpush3.bf16.msra.mxu1 %v5674_v41  ;;  %5305 = vmatprep.mubr.msk.bf16.mxu1 %vm5963_vm0, %v5961_v0  ;;  %v6564_v41 = vld [vmem:[#allocation6 + $0x1c] ss:$12 sps:$4 sm:$0xff]   ;;  %v6566_v43 = vld [vmem:[#allocation6 + $0x18] ss:$12 sps:$4 sm:$0xff]  }
 0x3d5   :  { %5291 = vmatprep.subr.bf16.mxu1 %v5961_v0 }
 0x3d6   :  { %2747 = vmatpush1.bf16.msra.mxu0 %v6342_v54  ;;  %v5681_v54 = vld [vmem:[#allocation8 + $0xb0] ss:$12 sps:$4 sm:$0xff]  }
 0x3d7   :  { %2748 = vmatprep.subr.bf16.mxu0 %v6347_v57  ;;  %v2038_v57 = vld [vmem:[%s6869_s5] sm:$0x7] }
 0x3d8   :  { %5292 = vmatpush3.bf16.msra.mxu1 %v5675_v44  ;;  %v2051_v55 = vrot.slane %v2038_v57, %v6259_v56  ;;  %v5686_v44 = vld [vmem:[#allocation6 + $0x20] ss:$12 sps:$4 sm:$0xff]  }
 0x3d9   :  { %5293 = vmatprep.subr.bf16.mxu1 %v5961_v0 }
 0x3da   :  { %2749 = vmatpush1.bf16.msra.mxu0 %v6349_v59  ;;  %v1779_v59 = vld [vmem:[%s6867_s3] sm:$0x7] }
 0x3db   :  { %2750 = vmatprep.subr.bf16.mxu0 %v6354_v61  ;;  %v1784_v61 = vrot.slane %v1779_v59, %v6245_v32  ;;  %v1792_v63 = vrot.slane %v1779_v59, %v6259_v56 }
 0x3dc   :  { %5294 = vmatpush3.bf16.msra.mxu1 %v5676_v46  ;;  %v6573_v46 = vld [vmem:[#allocation6 + $0x30] ss:$12 sps:$4 sm:$0xff]  }
 0x3dd   :  { %5295 = vmatprep.subr.bf16.mxu1 %v5961_v0  ;;  %v2000_v8 = vadd.f32 %v6502_v22, %v1792_v63  ;;  %v5682_v22 = vld [vmem:[#allocation6 + $0x8] ss:$12 sps:$4 sm:$0xff]   ;;  %v6643_v63 = vld [vmem:[#allocation8 + $0x64] ss:$12 sps:$4 sm:$0xff]  }
 0x3de   :  { %2751 = vmatpush1.bf16.msra.mxu0 %v6356_v62  ;;  %v2043_v62 = vrot.slane %v2038_v57, %v6245_v32 }
 0x3df   :  { %2752 = vmatprep.subr.bf16.mxu0 %v6361_v9  ;;  %v1788_v9 = vrot.slane %v1779_v59, %v6253_v35  ;;  %v5698_v59 = vld [vmem:[#allocation6 + $0x68] ss:$12 sps:$4 sm:$0xff]  }
 0x3e0   :  { %5296 = vmatpush3.bf16.msra.mxu1 %v5677_v47  ;;  %v5690_v47 = vld [vmem:[#allocation6 + $0x38] ss:$12 sps:$4 sm:$0xff]  }
 0x3e1   :  { %5297 = vmatprep.subr.bf16.mxu1 %v5961_v0 }
 0x3e2   :  { %2753 = vmatpush1.bf16.msra.mxu0 %v6363_v12  ;;  %v2047_v12 = vrot.slane %v2038_v57, %v6253_v35  ;;  %v6587_v57 = vld [vmem:[#allocation6 + $0x60] ss:$12 sps:$4 sm:$0xff]  }
 0x3e3   :  { %2754 = vmatprep.subr.bf16.mxu0 %v6368_v17  ;;  %v5441_v17 = vadd.f32 %v2043_v62, %v1784_v61  ;;  %v6591_v61 = vld [vmem:[#allocation6 + $0x7c] ss:$12 sps:$4 sm:$0xff]   ;;  %v6594_v62 = vld [vmem:[#allocation6 + $0x78] ss:$12 sps:$4 sm:$0xff]  }
 0x3e4   :  { %5298 = vmatpush3.bf16.msra.mxu1 %v5678_v50  ;;  %v6577_v50 = vld [vmem:[#allocation6 + $0x4c] ss:$12 sps:$4 sm:$0xff]  }
 0x3e5   :  { %5299 = vmatprep.subr.bf16.mxu1 %v5961_v0 }
 0x3e6   :  { %2755 = vmatpush1.bf16.msra.mxu0 %v6370_v20 }
 0x3e7   :  { %2756 = vmatprep.subr.bf16.mxu0 %v6375_v2 }
 0x3e8   :  { %5300 = vmatpush3.bf16.msra.mxu1 %v5679_v51  ;;  %v6580_v51 = vld [vmem:[#allocation6 + $0x48] ss:$12 sps:$4 sm:$0xff]  }
 0x3e9   :  { %5301 = vmatprep.subr.bf16.mxu1 %v5961_v0 }
 0x3ea   :  { %2757 = vmatpush1.bf16.msra.mxu0 %v6377_v3  ;;  %v5443_v3 = vadd.f32 %v2047_v12, %v1788_v9  ;;  %v5702_v9 = vld [vmem:[#allocation6 + $0x80] ss:$12 sps:$4 sm:$0xff]  }
 0x3eb   :  { %3042 = vmatprep.subr.bf16.mxu0 %v6383_v5  ;;  %v6598_v12 = vld [vmem:[#allocation6 + $0x94] ss:$12 sps:$4 sm:$0xff]  }
 0x3ec   :  { %5302 = vmatpush3.bf16.msra.mxu1 %v5680_v53  ;;  %v5694_v53 = vld [vmem:[#allocation6 + $0x50] ss:$12 sps:$4 sm:$0xff]  }
 0x3ed   :  { %5303 = vmatprep.subr.bf16.mxu1 %v5961_v0 }
 0x3f0   :  { %5304 = vmatpush3.bf16.msra.mxu1 %v5681_v54  ;;  %v6584_v54 = vld [vmem:[#allocation6 + $0x64] ss:$12 sps:$4 sm:$0xff]  }
 0x3f1   :  { %5309 = vmatprep.subr.bf16.mxu1 %v5961_v0 }
 0x480   :  { %v2217_v20 = vpop.f32.mrb[12].mxu0  ;;  %v2258_v2 = vpop.f32.mrb[28].mxu1 }
 0x481   :  { %v5442_v5 = vadd.f32 %v5441_v17, %v2217_v20  ;;  %v2219_v45 = vpop.f32.mrb[13].mxu0  ;;  %v5267_v21 = vpop.f32.mrb[29].mxu1  ;;  %v2259_v23 = vadd.f32 %v2258_v2, %v2051_v55  ;;  %v6601_v17 = vld [vmem:[#allocation6 + $0x90] ss:$12 sps:$4 sm:$0xff]   ;;  %v5706_v20 = vld [vmem:[#allocation6 + $0x98] ss:$12 sps:$4 sm:$0xff]  }
 0x482   :  { %v2221_v25 = vpop.f32.mrb[14].mxu0  ;;  %v2261_v28 = vpop.f32.mrb[30].mxu1  ;;  %v5444_v42 = vadd.f32 %v5443_v3, %v2219_v45  ;;  %v6605_v2 = vld [vmem:[#allocation6 + $0xac] ss:$12 sps:$4 sm:$0xff]   ;;  %v6608_v3 = vld [vmem:[#allocation6 + $0xa8] ss:$12 sps:$4 sm:$0xff]  }
 0x483   :  { %v4758_v31 = vmul.f32 -1.442695, %v5442_v5  ;;  %v2222_v36 = vpop.f32.mrb[15].mxu0  ;;  %v5268_v39 = vpop.f32.mrb[31].mxu1  ;;  %v5710_v5 = vld [vmem:[#allocation6 + $0xb0] ss:$12 sps:$4 sm:$0xff]  }
 0x484   :  { %v4759_v19 = vmul.f32 -1.442695, %v5444_v42  ;;  %v6612_v45 = vld [vmem:[#allocation8 + $0x4] ss:$12 sps:$4 sm:$0xff]   ;;  %v6615_v21 = vld [vmem:[#allocation8] ss:$12 sps:$4 sm:$0xff]  }
 0x485   :  { %5808 = vpow2.f32 %v4758_v31  ;;  %v5714_v25 = vld [vmem:[#allocation8 + $0x8] ss:$12 sps:$4 sm:$0xff]   ;;  %v2864_v28 = vld [vmem:[#allocation3 + $0x5] sm:$0x1]  ;;  %v6621_v36 = vld [vmem:[#allocation8 + $0x18] ss:$12 sps:$4 sm:$0xff]  }
 0x486   :  { %5810 = vpow2.f32 %v4759_v19  ;;  %v6619_v31 = vld [vmem:[#allocation8 + $0x1c] ss:$12 sps:$4 sm:$0xff]   ;;  %v5718_v39 = vld [vmem:[#allocation8 + $0x20] ss:$12 sps:$4 sm:$0xff]  }
 0x487   :  { %v6629_v42 = vld [vmem:[#allocation8 + $0x34] ss:$12 sps:$4 sm:$0xff]   ;;  %v6631_v19 = vld [vmem:[#allocation8 + $0x30] ss:$12 sps:$4 sm:$0xff]  }
 0x488   :  { %v5726_v55 = vld [vmem:[#allocation8 + $0x50] ss:$12 sps:$4 sm:$0xff]  }
 0x48f   :  { %v5809_v48 = vpop.eup %5808 }
 0x490   :  { %v2268_v49 = vadd.f32 1.0, %v5809_v48  ;;  %v5811_v52 = vpop.eup %5810  ;;  %v5722_v48 = vld [vmem:[#allocation8 + $0x38] ss:$12 sps:$4 sm:$0xff]  }
 0x491   :  { %v2275_v14 = vadd.f32 1.0, %v5811_v52  ;;  %v6638_v52 = vld [vmem:[#allocation8 + $0x48] ss:$12 sps:$4 sm:$0xff]  }
 0x492   :  { %5812 = vrcp.f32 %v2268_v49  ;;  %v6636_v49 = vld [vmem:[#allocation8 + $0x4c] ss:$12 sps:$4 sm:$0xff]  }
 0x493   :  { %5814 = vrcp.f32 %v2275_v14  ;;  %v6645_v14 = vld [vmem:[#allocation8 + $0x60] ss:$12 sps:$4 sm:$0xff]  }
 0x49c   :  { %v5813_v4 = vpop.eup %5812 }
 0x49d   :  { %v2278_v10 = vmul.f32 %v5813_v4, %v2259_v23  ;;  %v5815_v6 = vpop.eup %5814  ;;  %v5730_v23 = vld [vmem:[#allocation8 + $0x68] ss:$12 sps:$4 sm:$0xff]  }
 0x49e   :  { %v2281_v7 = vsub.f32 1.0, %v5815_v6  ;;  %v2283_v11 = vmul.f32 %v5815_v6, %v6478_v16  ;;  %v6650_v4 = vld [vmem:[#allocation8 + $0x7c] ss:$12 sps:$4 sm:$0xff]   ;;  %v6659_v6 = vld [vmem:[#allocation8 + $0x94] ss:$12 sps:$4 sm:$0xff]  }
 0x49f   :  { %v2279_v13 = vadd.f32 %v2278_v10, %v2000_v8  ;;  %v6652_v8 = vld [vmem:[#allocation8 + $0x78] ss:$12 sps:$4 sm:$0xff]   ;;  %v5734_v10 = vld [vmem:[#allocation8 + $0x80] ss:$12 sps:$4 sm:$0xff]  }
 0x4a1   :  { %5816 = vtanh.f32 %v2279_v13  ;;  %v6657_v13 = vld [vmem:[#allocation8 + $0x90] ss:$12 sps:$4 sm:$0xff]  }
 0x4a6   :  { %v6562_v16 = vpop.f32.mrb[32].mxu1 }
 0x4a7   :  { %v5287_v37 = vpop.f32.mrb[33].mxu1 }
 0x4a8   :  { %v2561_v38 = vpop.f32.mrb[34].mxu1 }
 0x4a9   :  { %v5288_v40 = vpop.f32.mrb[35].mxu1 }
 0x4ab   :  { %v5817_v15 = vpop.eup %5816 }
 0x4ac   :  { %v2282_v60 = vmul.f32 %v5817_v15, %v2281_v7  ;;  %v5738_v7 = vld [vmem:[#allocation8 + $0x98] ss:$12 sps:$4 sm:$0xff]  }
 0x4ad   :  { %v6662_v15 = vld [vmem:[#allocation8 + $0xac] ss:$12 sps:$4 sm:$0xff]  }
 0x4ae   :  { %v2284_v18 = vadd.f32 %v2283_v11, %v2282_v60  ;;  %v6666_v60 = vld [vmem:[#allocation8 + $0xa8] ss:$12 sps:$4 sm:$0xff]   ;;  %v5742_v11 = vld [vmem:[#allocation8 + $0xb0] ss:$12 sps:$4 sm:$0xff]  }
 0x4b0   :  { %v2293_v27 = vmul.f32 %v2291_v24, %v2284_v18  ;;  %v6672_v18 = vld [vmem:[#allocation6 + $0x4] ss:$12 sps:$4 sm:$0xff]   ;;  %v2597_v24 = vld [vmem:[%s6869_s5] sm:$0x7] }
 0x4b2   :  { %v2301_v30 = vadd.f32 %v2300_v29, %v2293_v27  ;;  %v2343_v27 = vrot.slane %v2338_v26, %v6245_v32  ;;  %v2602_v29 = vrot.slane %v2597_v24, %v6245_v32 }
 0x4b4   :  { %2302 = vst [vmem:[#allocation2] sm:$0x3] %v2301_v30  ;;  %v2347_v30 = vrot.slane %v2338_v26, %v6253_v35 }
 0x4bb   :  { %v6553_v33 = vld [vmem:[#allocation2] sm:$0x3] }
 0x4bc   :  { %v2564_v34 = vpack.c.bf16 %v6553_v33, %v6553_v33 }
 0x4be   :  { %2775 = vmatmul.mubr.bf16.vlgmr.msra.gmra.mrb[16].mxu0 %v2564_v34  ;;  %5306 = vmatmul.mubr.bf16.vlgmr.msra.gmra.mrb[36].mxu1 %v2564_v34  ;;  %v5445_v34 = vadd.f32 %v2602_v29, %v2343_v27 }
 0x4bf   :  { %3043 = vmatpush1.bf16.msra.mxu0 %v6403_v58  ;;  %5310 = vmatpush3.bf16.msra.mxu1 %v5682_v22  ;;  %v6570_v58 = vld [vmem:[#allocation6 + $0x34] ss:$12 sps:$4 sm:$0xff]   ;;  %v2606_v22 = vrot.slane %v2597_v24, %v6253_v35 }
 0x4c0   :  { %5311 = vmatprep.subr.bf16.mxu1 %v5961_v0  ;;  %3074 = vmatprep.mubr.bf16.mxu0 %v5962_v1 }
 0x4c1   :  { %5325 = vmatprep.mubr.msk.bf16.mxu1 %vm5963_vm0, %v5961_v0  ;;  %3044 = vmatprep.subr.bf16.mxu0 %v6564_v41  ;;  %v5447_v40 = vadd.f32 %v2606_v22, %v2347_v30 }
 0x4c3   :  { %3045 = vmatpush1.bf16.msra.mxu0 %v6566_v43  ;;  %5312 = vmatpush3.bf16.msra.mxu1 %v5686_v44 }
 0x4c4   :  { %5313 = vmatprep.subr.bf16.mxu1 %v5961_v0  ;;  %3046 = vmatprep.subr.bf16.mxu0 %v6570_v58 }
 0x4c7   :  { %3047 = vmatpush1.bf16.msra.mxu0 %v6573_v46  ;;  %5314 = vmatpush3.bf16.msra.mxu1 %v5690_v47 }
 0x4c8   :  { %5315 = vmatprep.subr.bf16.mxu1 %v5961_v0  ;;  %3048 = vmatprep.subr.bf16.mxu0 %v6577_v50 }
 0x4cb   :  { %3049 = vmatpush1.bf16.msra.mxu0 %v6580_v51  ;;  %5316 = vmatpush3.bf16.msra.mxu1 %v5694_v53 }
 0x4cc   :  { %5317 = vmatprep.subr.bf16.mxu1 %v5961_v0  ;;  %3050 = vmatprep.subr.bf16.mxu0 %v6584_v54 }
 0x4cf   :  { %3051 = vmatpush1.bf16.msra.mxu0 %v6587_v57  ;;  %5318 = vmatpush3.bf16.msra.mxu1 %v5698_v59 }
 0x4d0   :  { %5319 = vmatprep.subr.bf16.mxu1 %v5961_v0  ;;  %3052 = vmatprep.subr.bf16.mxu0 %v6591_v61 }
 0x4d3   :  { %3053 = vmatpush1.bf16.msra.mxu0 %v6594_v62  ;;  %5320 = vmatpush3.bf16.msra.mxu1 %v5702_v9 }
 0x4d4   :  { %5321 = vmatprep.subr.bf16.mxu1 %v5961_v0  ;;  %3054 = vmatprep.subr.bf16.mxu0 %v6598_v12 }
 0x4d7   :  { %3055 = vmatpush1.bf16.msra.mxu0 %v6601_v17  ;;  %5322 = vmatpush3.bf16.msra.mxu1 %v5706_v20 }
 0x4d8   :  { %5323 = vmatprep.subr.bf16.mxu1 %v5961_v0  ;;  %3056 = vmatprep.subr.bf16.mxu0 %v6605_v2 }
 0x4db   :  { %3057 = vmatpush1.bf16.msra.mxu0 %v6608_v3  ;;  %5324 = vmatpush3.bf16.msra.mxu1 %v5710_v5 }
 0x4dc   :  { %5329 = vmatprep.subr.bf16.mxu1 %v5961_v0  ;;  %3301 = vmatprep.subr.bf16.mxu0 %v6612_v45 }
 0x4de   :  { %3075 = vmatmul.mubr.bf16.vlgmr.msra.gmra.mrb[20].mxu0 %v2864_v28  ;;  %5326 = vmatmul.mubr.bf16.vlgmr.msra.gmra.mrb[40].mxu1 %v2864_v28 }
 0x4df   :  { %3302 = vmatpush1.bf16.msra.mxu0 %v6615_v21  ;;  %5330 = vmatpush3.bf16.msra.mxu1 %v5714_v25 }
 0x4e0   :  { %5331 = vmatprep.subr.bf16.mxu1 %v5961_v0  ;;  %3333 = vmatprep.mubr.bf16.mxu0 %v5962_v1 }
 0x4e1   :  { %3303 = vmatprep.subr.bf16.mxu0 %v6619_v31  ;;  %5345 = vmatprep.mubr.msk.bf16.mxu1 %vm5963_vm0, %v5961_v0 }
 0x4e3   :  { %3304 = vmatpush1.bf16.msra.mxu0 %v6621_v36  ;;  %5332 = vmatpush3.bf16.msra.mxu1 %v5718_v39 }
 0x4e4   :  { %5333 = vmatprep.subr.bf16.mxu1 %v5961_v0  ;;  %3305 = vmatprep.subr.bf16.mxu0 %v6629_v42 }
 0x4e7   :  { %3306 = vmatpush1.bf16.msra.mxu0 %v6631_v19  ;;  %5334 = vmatpush3.bf16.msra.mxu1 %v5722_v48 }
 0x4e8   :  { %5335 = vmatprep.subr.bf16.mxu1 %v5961_v0  ;;  %3307 = vmatprep.subr.bf16.mxu0 %v6636_v49 }
 0x4eb   :  { %3308 = vmatpush1.bf16.msra.mxu0 %v6638_v52  ;;  %5336 = vmatpush3.bf16.msra.mxu1 %v5726_v55 }
 0x4ec   :  { %5337 = vmatprep.subr.bf16.mxu1 %v5961_v0  ;;  %3309 = vmatprep.subr.bf16.mxu0 %v6643_v63 }
 0x4ef   :  { %3310 = vmatpush1.bf16.msra.mxu0 %v6645_v14  ;;  %5338 = vmatpush3.bf16.msra.mxu1 %v5730_v23 }
 0x4f0   :  { %5339 = vmatprep.subr.bf16.mxu1 %v5961_v0  ;;  %3311 = vmatprep.subr.bf16.mxu0 %v6650_v4 }
 0x4f3   :  { %3312 = vmatpush1.bf16.msra.mxu0 %v6652_v8  ;;  %5340 = vmatpush3.bf16.msra.mxu1 %v5734_v10  ;;  %v2610_v10 = vrot.slane %v2597_v24, %v6259_v56  ;;  %v2857_v24 = vpop.permute.xlu1 %2856 }
 0x4f4   :  { %5341 = vmatprep.subr.bf16.mxu1 %v5961_v0  ;;  %3313 = vmatprep.subr.bf16.mxu0 %v6659_v6 }
 0x4f7   :  { %3314 = vmatpush1.bf16.msra.mxu0 %v6657_v13  ;;  %5342 = vmatpush3.bf16.msra.mxu1 %v5738_v7  ;;  %v2351_v7 = vrot.slane %v2338_v26, %v6259_v56  ;;  %v2859_v26 = vmul.f32 %v2857_v24, %v6553_v33  ;;  %v3156_v24 = vld [vmem:[%s6869_s5] sm:$0x7] }
 0x4f8   :  { %3315 = vmatprep.subr.bf16.mxu0 %v6662_v15  ;;  %5343 = vmatprep.subr.bf16.mxu1 %v5961_v0 }
 0x4f9   :  { %v2559_v30 = vadd.f32 %v6562_v16, %v2351_v7  ;;  %v6692_v16 = vld [vmem:[#allocation6] ss:$12 sps:$4 sm:$0xff]   ;;  %v5749_v7 = vld [vmem:[#allocation6 + $0x50] ss:$12 sps:$4 sm:$0xff]  }
 0x4fb   :  { %3316 = vmatpush1.bf16.msra.mxu0 %v6666_v60  ;;  %5344 = vmatpush3.bf16.msra.mxu1 %v5742_v11 }
 0x4fc   :  { %5349 = vmatprep.subr.bf16.mxu1 %v5961_v0  ;;  %3601 = vmatprep.subr.bf16.mxu0 %v6672_v18 }
 0x591   :  { %v2776_v37 = vpop.f32.mrb[16].mxu0  ;;  %v2817_v38 = vpop.f32.mrb[36].mxu1 }
 0x592   :  { %v5446_v44 = vadd.f32 %v5445_v34, %v2776_v37  ;;  %v2778_v47 = vpop.f32.mrb[17].mxu0  ;;  %v5307_v53 = vpop.f32.mrb[37].mxu1  ;;  %v2818_v27 = vadd.f32 %v2817_v38, %v2610_v10  ;;  %v5748_v10 = vld [vmem:[#allocation6 + $0x38] ss:$12 sps:$4 sm:$0xff]  }
 0x593   :  { %v2780_v59 = vpop.f32.mrb[18].mxu0  ;;  %v2820_v9 = vpop.f32.mrb[38].mxu1  ;;  %v5448_v28 = vadd.f32 %v5447_v40, %v2778_v47 }
 0x594   :  { %v4809_v20 = vmul.f32 -1.442695, %v5446_v44  ;;  %v2781_v5 = vpop.f32.mrb[19].mxu0  ;;  %v5308_v25 = vpop.f32.mrb[39].mxu1 }
 0x595   :  { %v4810_v39 = vmul.f32 -1.442695, %v5448_v28  ;;  %v2850_v9 = vpop.permute.xlu0 %2849  ;;  %v5746_v25 = vld [vmem:[#allocation6 + $0x8] ss:$12 sps:$4 sm:$0xff]  }
 0x596   :  { %5818 = vpow2.f32 %v4809_v20 }
 0x597   :  { %5820 = vpow2.f32 %v4810_v39 }
 0x5a0   :  { %v5819_v48 = vpop.eup %5818 }
 0x5a1   :  { %v2827_v55 = vadd.f32 1.0, %v5819_v48  ;;  %v5821_v23 = vpop.eup %5820 }
 0x5a2   :  { %v2834_v11 = vadd.f32 1.0, %v5821_v23  ;;  %v5747_v23 = vld [vmem:[#allocation6 + $0x20] ss:$12 sps:$4 sm:$0xff]  }
 0x5a3   :  { %5822 = vrcp.f32 %v2827_v55 }
 0x5a4   :  { %5824 = vrcp.f32 %v2834_v11  ;;  %v5750_v11 = vld [vmem:[#allocation6 + $0x68] ss:$12 sps:$4 sm:$0xff]  }
 0x5ad   :  { %v5823_v29 = vpop.eup %5822 }
 0x5ae   :  { %v2837_v22 = vmul.f32 %v5823_v29, %v2818_v27  ;;  %v5825_v37 = vpop.eup %5824  ;;  %v5751_v27 = vld [vmem:[#allocation6 + $0x80] ss:$12 sps:$4 sm:$0xff]   ;;  %v5752_v29 = vld [vmem:[#allocation6 + $0x98] ss:$12 sps:$4 sm:$0xff]  }
 0x5af   :  { %v2840_v40 = vsub.f32 1.0, %v5825_v37  ;;  %v2842_v53 = vmul.f32 %v5825_v37, %v6553_v33  ;;  %v5755_v37 = vld [vmem:[#allocation8 + $0x20] ss:$12 sps:$4 sm:$0xff]  }
 0x5b0   :  { %v2838_v34 = vadd.f32 %v2837_v22, %v2559_v30  ;;  %v5753_v30 = vld [vmem:[#allocation6 + $0xb0] ss:$12 sps:$4 sm:$0xff]   ;;  %v5754_v22 = vld [vmem:[#allocation8 + $0x8] ss:$12 sps:$4 sm:$0xff]  }
 0x5b1   :  { %v6716_v33 = vpop.f32.mrb[40].mxu1 }
 0x5b2   :  { %5826 = vtanh.f32 %v2838_v34  ;;  %v5327_v39 = vpop.f32.mrb[41].mxu1  ;;  %v3423_v34 = vld [vmem:[#allocation3 + $0x6] sm:$0x1] }
 0x5b3   :  { %v3120_v48 = vpop.f32.mrb[42].mxu1 }
 0x5b4   :  { %v5328_v55 = vpop.f32.mrb[43].mxu1 }
 0x5bc   :  { %v5827_v44 = vpop.eup %5826 }
 0x5bd   :  { %v2841_v47 = vmul.f32 %v5827_v44, %v2840_v40  ;;  %v5756_v40 = vld [vmem:[#allocation8 + $0x38] ss:$12 sps:$4 sm:$0xff]   ;;  %v5757_v44 = vld [vmem:[#allocation8 + $0x50] ss:$12 sps:$4 sm:$0xff]  }
 0x5bf   :  { %v2843_v59 = vadd.f32 %v2842_v53, %v2841_v47  ;;  %v5758_v47 = vld [vmem:[#allocation8 + $0x68] ss:$12 sps:$4 sm:$0xff]   ;;  %v5759_v53 = vld [vmem:[#allocation8 + $0x80] ss:$12 sps:$4 sm:$0xff]  }
 0x5c1   :  { %v2852_v20 = vmul.f32 %v2850_v9, %v2843_v59  ;;  %v5760_v59 = vld [vmem:[#allocation8 + $0x98] ss:$12 sps:$4 sm:$0xff]   ;;  %v5761_v9 = vld [vmem:[#allocation8 + $0xb0] ss:$12 sps:$4 sm:$0xff]  }
 0x5c3   :  { %v2860_v38 = vadd.f32 %v2859_v26, %v2852_v20  ;;  %v2897_v20 = vld [vmem:[%s6867_s3] sm:$0x7] }
 0x5c4   :  { %v2902_v26 = vrot.slane %v2897_v20, %v6245_v32 }
 0x5c5   :  { %2861 = vst [vmem:[#allocation2] sm:$0x3] %v2860_v38  ;;  %v3161_v38 = vrot.slane %v3156_v24, %v6245_v32 }
 0x5c7   :  { %v5449_v39 = vadd.f32 %v3161_v38, %v2902_v26 }
 0x5cc   :  { %v6690_v5 = vld [vmem:[#allocation2] sm:$0x3] }
 0x5cd   :  { %v3123_v28 = vpack.c.bf16 %v6690_v5, %v6690_v5 }
 0x5cf   :  { %3334 = vmatmul.mubr.bf16.vlgmr.msra.gmra.mrb[20].mxu0 %v3123_v28  ;;  %5346 = vmatmul.mubr.bf16.vlgmr.msra.gmra.mrb[44].mxu1 %v3123_v28  ;;  %v3165_v28 = vrot.slane %v3156_v24, %v6253_v35 }
 0x5d0   :  { %3602 = vmatpush1.bf16.msra.mxu0 %v6692_v16  ;;  %5350 = vmatpush3.bf16.msra.mxu1 %v5746_v25  ;;  %v2906_v25 = vrot.slane %v2897_v20, %v6253_v35 }
 0x5d1   :  { %3603 = vmatprep.subr.bf16.mxu0 %v6564_v41  ;;  %5351 = vmatprep.subr.bf16.mxu1 %v5961_v0 }
 0x5d2   :  { %3633 = vmatprep.mubr.bf16.mxu0 %v5962_v1  ;;  %5365 = vmatprep.mubr.msk.bf16.mxu1 %vm5963_vm0, %v5961_v0  ;;  %v5451_v55 = vadd.f32 %v3165_v28, %v2906_v25 }
 0x5d4   :  { %3604 = vmatpush1.bf16.msra.mxu0 %v6566_v43  ;;  %5352 = vmatpush3.bf16.msra.mxu1 %v5747_v23 }
 0x5d5   :  { %3605 = vmatprep.subr.bf16.mxu0 %v6570_v58  ;;  %5353 = vmatprep.subr.bf16.mxu1 %v5961_v0 }
 0x5d8   :  { %3606 = vmatpush1.bf16.msra.mxu0 %v6573_v46  ;;  %5354 = vmatpush3.bf16.msra.mxu1 %v5748_v10 }
 0x5d9   :  { %3607 = vmatprep.subr.bf16.mxu0 %v6577_v50  ;;  %5355 = vmatprep.subr.bf16.mxu1 %v5961_v0 }
 0x5dc   :  { %3608 = vmatpush1.bf16.msra.mxu0 %v6580_v51  ;;  %5356 = vmatpush3.bf16.msra.mxu1 %v5749_v7 }
 0x5dd   :  { %3609 = vmatprep.subr.bf16.mxu0 %v6584_v54  ;;  %5357 = vmatprep.subr.bf16.mxu1 %v5961_v0 }
 0x5e0   :  { %3610 = vmatpush1.bf16.msra.mxu0 %v6587_v57  ;;  %5358 = vmatpush3.bf16.msra.mxu1 %v5750_v11 }
 0x5e1   :  { %3611 = vmatprep.subr.bf16.mxu0 %v6591_v61  ;;  %5359 = vmatprep.subr.bf16.mxu1 %v5961_v0 }
 0x5e4   :  { %3612 = vmatpush1.bf16.msra.mxu0 %v6594_v62  ;;  %5360 = vmatpush3.bf16.msra.mxu1 %v5751_v27 }
 0x5e5   :  { %3613 = vmatprep.subr.bf16.mxu0 %v6598_v12  ;;  %5361 = vmatprep.subr.bf16.mxu1 %v5961_v0 }
 0x5e8   :  { %3614 = vmatpush1.bf16.msra.mxu0 %v6601_v17  ;;  %5362 = vmatpush3.bf16.msra.mxu1 %v5752_v29 }
 0x5e9   :  { %3615 = vmatprep.subr.bf16.mxu0 %v6605_v2  ;;  %5363 = vmatprep.subr.bf16.mxu1 %v5961_v0 }
 0x5ec   :  { %3616 = vmatpush1.bf16.msra.mxu0 %v6608_v3  ;;  %5364 = vmatpush3.bf16.msra.mxu1 %v5753_v30 }
 0x5ed   :  { %3860 = vmatprep.subr.bf16.mxu0 %v6612_v45  ;;  %5369 = vmatprep.subr.bf16.mxu1 %v5961_v0 }
 0x5ef   :  { %3634 = vmatmul.mubr.bf16.vlgmr.msra.gmra.mrb[24].mxu0 %v3423_v34  ;;  %5366 = vmatmul.mubr.bf16.vlgmr.msra.gmra.mrb[48].mxu1 %v3423_v34 }
 0x5f0   :  { %3861 = vmatpush1.bf16.msra.mxu0 %v6615_v21  ;;  %5370 = vmatpush3.bf16.msra.mxu1 %v5754_v22 }
 0x5f1   :  { %3862 = vmatprep.subr.bf16.mxu0 %v6619_v31  ;;  %5371 = vmatprep.subr.bf16.mxu1 %v5961_v0 }
 0x5f2   :  { %3892 = vmatprep.mubr.bf16.mxu0 %v5962_v1  ;;  %5385 = vmatprep.mubr.msk.bf16.mxu1 %vm5963_vm0, %v5961_v0 }
 0x5f4   :  { %3863 = vmatpush1.bf16.msra.mxu0 %v6621_v36  ;;  %5372 = vmatpush3.bf16.msra.mxu1 %v5755_v37 }
 0x5f5   :  { %3864 = vmatprep.subr.bf16.mxu0 %v6629_v42  ;;  %5373 = vmatprep.subr.bf16.mxu1 %v5961_v0 }
 0x5f8   :  { %3865 = vmatpush1.bf16.msra.mxu0 %v6631_v19  ;;  %5374 = vmatpush3.bf16.msra.mxu1 %v5756_v40 }
 0x5f9   :  { %3866 = vmatprep.subr.bf16.mxu0 %v6636_v49  ;;  %5375 = vmatprep.subr.bf16.mxu1 %v5961_v0 }
 0x5fc   :  { %3867 = vmatpush1.bf16.msra.mxu0 %v6638_v52  ;;  %5376 = vmatpush3.bf16.msra.mxu1 %v5757_v44 }
 0x5fd   :  { %3868 = vmatprep.subr.bf16.mxu0 %v6643_v63  ;;  %5377 = vmatprep.subr.bf16.mxu1 %v5961_v0 }
 0x600   :  { %3869 = vmatpush1.bf16.msra.mxu0 %v6645_v14  ;;  %5378 = vmatpush3.bf16.msra.mxu1 %v5758_v47 }
 0x601   :  { %3870 = vmatprep.subr.bf16.mxu0 %v6650_v4  ;;  %5379 = vmatprep.subr.bf16.mxu1 %v5961_v0 }
 0x604   :  { %3871 = vmatpush1.bf16.msra.mxu0 %v6652_v8  ;;  %5380 = vmatpush3.bf16.msra.mxu1 %v5759_v53  ;;  %v3169_v53 = vrot.slane %v3156_v24, %v6259_v56  ;;  %v3416_v24 = vpop.permute.xlu1 %3415 }
 0x605   :  { %3872 = vmatprep.subr.bf16.mxu0 %v6659_v6  ;;  %5381 = vmatprep.subr.bf16.mxu1 %v5961_v0 }
 0x608   :  { %3873 = vmatpush1.bf16.msra.mxu0 %v6657_v13  ;;  %5382 = vmatpush3.bf16.msra.mxu1 %v5760_v59  ;;  %v2910_v59 = vrot.slane %v2897_v20, %v6259_v56  ;;  %v3418_v20 = vmul.f32 %v3416_v24, %v6690_v5 }
 0x609   :  { %3874 = vmatprep.subr.bf16.mxu0 %v6662_v15  ;;  %5383 = vmatprep.subr.bf16.mxu1 %v5961_v0 }
 0x60a   :  { %v3118_v25 = vadd.f32 %v6716_v33, %v2910_v59  ;;  %v5762_v33 = vld [vmem:[#allocation6 + $0x8] ss:$12 sps:$4 sm:$0xff]  }
 0x60c   :  { %3875 = vmatpush1.bf16.msra.mxu0 %v6666_v60  ;;  %5384 = vmatpush3.bf16.msra.mxu1 %v5761_v9 }
 0x60d   :  { %4160 = vmatprep.subr.bf16.mxu0 %v6672_v18  ;;  %5389 = vmatprep.subr.bf16.mxu1 %v5961_v0 }
 0x6a2   :  { %v3335_v18 = vpop.f32.mrb[20].mxu0  ;;  %v3376_v48 = vpop.f32.mrb[44].mxu1 }
 0x6a3   :  { %v5450_v23 = vadd.f32 %v5449_v39, %v3335_v18  ;;  %v3337_v10 = vpop.f32.mrb[21].mxu0  ;;  %v5347_v7 = vpop.f32.mrb[45].mxu1  ;;  %v3377_v26 = vadd.f32 %v3376_v48, %v3169_v53 }
 0x6a4   :  { %v3339_v11 = vpop.f32.mrb[22].mxu0  ;;  %v3379_v27 = vpop.f32.mrb[46].mxu1  ;;  %v5452_v34 = vadd.f32 %v5451_v55, %v3337_v10 }
 0x6a5   :  { %v4860_v29 = vmul.f32 -1.442695, %v5450_v23  ;;  %v3340_v30 = vpop.f32.mrb[23].mxu0  ;;  %v5348_v22 = vpop.f32.mrb[47].mxu1 }
 0x6a6   :  { %v4861_v37 = vmul.f32 -1.442695, %v5452_v34  ;;  %v3409_v27 = vpop.permute.xlu0 %3408 }
 0x6a7   :  { %5828 = vpow2.f32 %v4860_v29 }
 0x6a8   :  { %5830 = vpow2.f32 %v4861_v37 }
 0x6b1   :  { %v5829_v40 = vpop.eup %5828 }
 0x6b2   :  { %v3386_v44 = vadd.f32 1.0, %v5829_v40  ;;  %v5831_v47 = vpop.eup %5830 }
 0x6b3   :  { %v3393_v9 = vadd.f32 1.0, %v5831_v47 }
 0x6b4   :  { %5832 = vrcp.f32 %v3386_v44 }
 0x6b5   :  { %5834 = vrcp.f32 %v3393_v9 }
 0x6be   :  { %v5833_v38 = vpop.eup %5832 }
 0x6bf   :  { %v3396_v28 = vmul.f32 %v5833_v38, %v3377_v26  ;;  %v5835_v18 = vpop.eup %5834 }
 0x6c0   :  { %v3399_v55 = vsub.f32 1.0, %v5835_v18  ;;  %v3401_v7 = vmul.f32 %v5835_v18, %v6690_v5 }
 0x6c1   :  { %v3397_v39 = vadd.f32 %v3396_v28, %v3118_v25 }
 0x6c3   :  { %5836 = vtanh.f32 %v3397_v39 }
 0x6cd   :  { %v5837_v23 = vpop.eup %5836 }
 0x6ce   :  { %v3400_v10 = vmul.f32 %v5837_v23, %v3399_v55 }
 0x6d0   :  { %v3402_v11 = vadd.f32 %v3401_v7, %v3400_v10 }
 0x6d2   :  { %v3411_v29 = vmul.f32 %v3409_v27, %v3402_v11 }
 0x6d4   :  { %v3419_v48 = vadd.f32 %v3418_v20, %v3411_v29 }
 0x6d6   :  { %3420 = vst [vmem:[#allocation2] sm:$0x3] %v3419_v48  ;;  %v3968_v48 = vpop.permute.xlu0 %3967 }
 0x6dd   :  { %v6767_v30 = vld [vmem:[#allocation2] sm:$0x3] }
 0x6de   :  { %v3682_v22 = vpack.c.bf16 %v6767_v30, %v6767_v30 }
 0x6e0   :  { %3893 = vmatmul.mubr.bf16.vlgmr.msra.gmra.mrb[24].mxu0 %v3682_v22  ;;  %5386 = vmatmul.mubr.bf16.vlgmr.msra.gmra.mrb[52].mxu1 %v3682_v22 }
 0x6e1   :  { %4161 = vmatpush1.bf16.msra.mxu0 %v6692_v16  ;;  %5390 = vmatpush3.bf16.msra.mxu1 %v5762_v33  ;;  %v3975_v33 = vpop.permute.xlu1 %3974 }
 0x6e2   :  { %4162 = vmatprep.subr.bf16.mxu0 %v6564_v41  ;;  %5391 = vmatprep.subr.bf16.mxu1 %v5961_v0  ;;  %v6791_v41 = vpop.f32.mrb[48].mxu1  ;;  %v3977_v22 = vmul.f32 %v3975_v33, %v6767_v30 }
 0x6e3   :  { %4192 = vmatprep.mubr.bf16.mxu0 %v5962_v1  ;;  %5405 = vmatprep.mubr.msk.bf16.mxu1 %vm5963_vm0, %v5961_v0 }
 0x6e5   :  { %4163 = vmatpush1.bf16.msra.mxu0 %v6566_v43  ;;  %v5367_v43 = vpop.f32.mrb[49].mxu1 }
 0x6e6   :  { %4164 = vmatprep.subr.bf16.mxu0 %v6570_v58  ;;  %v3679_v58 = vpop.f32.mrb[50].mxu1 }
 0x6e9   :  { %4165 = vmatpush1.bf16.msra.mxu0 %v6573_v46  ;;  %v5368_v46 = vpop.f32.mrb[51].mxu1 }
 0x6ea   :  { %4166 = vmatprep.subr.bf16.mxu0 %v6577_v50  ;;  %v5763_v50 = vld [vmem:[#allocation6 + $0x20] ss:$12 sps:$4 sm:$0xff]  }
 0x6eb   :  { %5392 = vmatpush3.bf16.msra.mxu1 %v5763_v50 }
 0x6ec   :  { %5393 = vmatprep.subr.bf16.mxu1 %v5961_v0 }
 0x6ed   :  { %4167 = vmatpush1.bf16.msra.mxu0 %v6580_v51  ;;  %v5764_v51 = vld [vmem:[#allocation6 + $0x38] ss:$12 sps:$4 sm:$0xff]  }
 0x6ee   :  { %4168 = vmatprep.subr.bf16.mxu0 %v6584_v54  ;;  %v5765_v54 = vld [vmem:[#allocation6 + $0x50] ss:$12 sps:$4 sm:$0xff]  }
 0x6ef   :  { %5394 = vmatpush3.bf16.msra.mxu1 %v5764_v51 }
 0x6f0   :  { %5395 = vmatprep.subr.bf16.mxu1 %v5961_v0 }
 0x6f1   :  { %4169 = vmatpush1.bf16.msra.mxu0 %v6587_v57  ;;  %v5766_v57 = vld [vmem:[#allocation6 + $0x68] ss:$12 sps:$4 sm:$0xff]  }
 0x6f2   :  { %4170 = vmatprep.subr.bf16.mxu0 %v6591_v61  ;;  %v5767_v61 = vld [vmem:[#allocation6 + $0x80] ss:$12 sps:$4 sm:$0xff]  }
 0x6f3   :  { %5396 = vmatpush3.bf16.msra.mxu1 %v5765_v54 }
 0x6f4   :  { %5397 = vmatprep.subr.bf16.mxu1 %v5961_v0 }
 0x6f5   :  { %4171 = vmatpush1.bf16.msra.mxu0 %v6594_v62  ;;  %v5768_v62 = vld [vmem:[#allocation6 + $0x98] ss:$12 sps:$4 sm:$0xff]  }
 0x6f6   :  { %4172 = vmatprep.subr.bf16.mxu0 %v6598_v12  ;;  %v5769_v12 = vld [vmem:[#allocation6 + $0xb0] ss:$12 sps:$4 sm:$0xff]  }
 0x6f7   :  { %5398 = vmatpush3.bf16.msra.mxu1 %v5766_v57 }
 0x6f8   :  { %5399 = vmatprep.subr.bf16.mxu1 %v5961_v0 }
 0x6f9   :  { %4173 = vmatpush1.bf16.msra.mxu0 %v6601_v17  ;;  %v5770_v17 = vld [vmem:[#allocation8 + $0x8] ss:$12 sps:$4 sm:$0xff]  }
 0x6fa   :  { %4174 = vmatprep.subr.bf16.mxu0 %v6605_v2  ;;  %v3982_v2 = vld [vmem:[#allocation3 + $0x7] sm:$0x1] }
 0x6fb   :  { %5400 = vmatpush3.bf16.msra.mxu1 %v5767_v61  ;;  %v4274_v61 = vld [vmem:[%s6869_s5] sm:$0x7] }
 0x6fc   :  { %5401 = vmatprep.subr.bf16.mxu1 %v5961_v0 }
 0x6fd   :  { %4175 = vmatpush1.bf16.msra.mxu0 %v6608_v3  ;;  %v5771_v3 = vld [vmem:[#allocation8 + $0x20] ss:$12 sps:$4 sm:$0xff]  }
 0x6fe   :  { %4419 = vmatprep.subr.bf16.mxu0 %v6612_v45  ;;  %v5772_v45 = vld [vmem:[#allocation8 + $0x38] ss:$12 sps:$4 sm:$0xff]  }
 0x6ff   :  { %5402 = vmatpush3.bf16.msra.mxu1 %v5768_v62  ;;  %v4015_v62 = vld [vmem:[%s6867_s3] sm:$0x7] }
 0x700   :  { %5403 = vmatprep.subr.bf16.mxu1 %v5961_v0  ;;  %4193 = vmatmul.mubr.bf16.vlgmr.msra.gmra.mrb[28].mxu0 %v3982_v2 }
 0x701   :  { %4420 = vmatpush1.bf16.msra.mxu0 %v6615_v21  ;;  %4451 = vmatprep.mubr.bf16.mxu0 %v5962_v1  ;;  %v5773_v21 = vld [vmem:[#allocation8 + $0x50] ss:$12 sps:$4 sm:$0xff]   ;;  %v5774_v1 = vld [vmem:[#allocation8 + $0x68] ss:$12 sps:$4 sm:$0xff]  }
 0x702   :  { %4421 = vmatprep.subr.bf16.mxu0 %v6619_v31  ;;  %v5775_v31 = vld [vmem:[#allocation8 + $0x80] ss:$12 sps:$4 sm:$0xff]  }
 0x703   :  { %5404 = vmatpush3.bf16.msra.mxu1 %v5769_v12  ;;  %v4279_v12 = vrot.slane %v4274_v61, %v6245_v32 }
 0x704   :  { %5409 = vmatprep.subr.bf16.mxu1 %v5961_v0 }
 0x705   :  { %4422 = vmatpush1.bf16.msra.mxu0 %v6621_v36  ;;  %v5776_v36 = vld [vmem:[#allocation8 + $0x98] ss:$12 sps:$4 sm:$0xff]  }
 0x706   :  { %5406 = vmatmul.mubr.bf16.vlgmr.msra.gmra.mrb[56].mxu1 %v3982_v2  ;;  %4423 = vmatprep.subr.bf16.mxu0 %v6629_v42  ;;  %v5777_v42 = vld [vmem:[#allocation8 + $0xb0] ss:$12 sps:$4 sm:$0xff]   ;;  %v4283_v2 = vrot.slane %v4274_v61, %v6253_v35 }
 0x707   :  { %5410 = vmatpush3.bf16.msra.mxu1 %v5770_v17  ;;  %5425 = vmatprep.mubr.msk.bf16.mxu1 %vm5963_vm0, %v5961_v0  ;;  %v4024_v17 = vrot.slane %v4015_v62, %v6253_v35 }
 0x708   :  { %5411 = vmatprep.subr.bf16.mxu1 %v5961_v0 }
 0x709   :  { %4424 = vmatpush1.bf16.msra.mxu0 %v6631_v19  ;;  %v3715_v19 = vld [vmem:[%s6869_s5] sm:$0x7] }
 0x70a   :  { %4425 = vmatprep.subr.bf16.mxu0 %v6636_v49  ;;  %v3456_v49 = vld [vmem:[%s6867_s3] sm:$0x7]  ;;  %v3728_v38 = vrot.slane %v3715_v19, %v6259_v56  ;;  %s5964_s3 = smov [#allocation9]  }
 0x70b   :  { %5412 = vmatpush3.bf16.msra.mxu1 %v5771_v3  ;;  %v3469_v25 = vrot.slane %v3456_v49, %v6259_v56  ;;  %s4547_s5 = sshll.u32 %s5964_s3, 4  ;;  %s4548_s5 = int_to_ptr.vmem [resolvable:$true] %s4547_s5 }
 0x70c   :  { %5413 = vmatprep.subr.bf16.mxu1 %v5961_v0  ;;  %s5926_s15 = scalar_lea.vmem %s4548_s5, 32  ;;  %p5931_p11 = scmp.lt.s32.totalorder %s4548_s5, %s4548_s5 }
 0x70d   :  { %4426 = vmatpush1.bf16.msra.mxu0 %v6638_v52  ;;  %v3461_v52 = vrot.slane %v3456_v49, %v6245_v32  ;;  %v3677_v55 = vadd.f32 %v6791_v41, %v3469_v25  ;;  %p5927_p10 = scmp.ne.s32.totalorder %s4548_s5, %s5926_s15  ;;  %p5932_p12 = scmp.lt.s32.totalorder %s5926_s15, %s5926_s15 }
 0x70e   :  { %4427 = vmatprep.subr.bf16.mxu0 %v6643_v63  ;;  %v3720_v63 = vrot.slane %v3715_v19, %v6245_v32 }
 0x70f   :  { %5414 = vmatpush3.bf16.msra.mxu1 %v5772_v45  ;;  %p5933_p13 = por %p5932_p12, %p5931_p11 }
 0x710   :  { %5415 = vmatprep.subr.bf16.mxu1 %v5961_v0 }
 0x711   :  { %4428 = vmatpush1.bf16.msra.mxu0 %v6645_v14  ;;  %v3465_v14 = vrot.slane %v3456_v49, %v6253_v35  ;;  %p5934_p0 = pnand %p5933_p13, %p5927_p10 }
 0x712   :  { %4429 = vmatprep.subr.bf16.mxu0 %v6650_v4  ;;  %v3724_v4 = vrot.slane %v3715_v19, %v6253_v35 }
 0x713   :  { %5416 = vmatpush3.bf16.msra.mxu1 %v5773_v21 }
 0x714   :  { %5417 = vmatprep.subr.bf16.mxu1 %v5961_v0 }
 0x715   :  { %4430 = vmatpush1.bf16.msra.mxu0 %v6652_v8 }
 0x716   :  { %4431 = vmatprep.subr.bf16.mxu0 %v6659_v6  ;;  %v5455_v6 = vadd.f32 %v3724_v4, %v3465_v14 }
 0x717   :  { %5418 = vmatpush3.bf16.msra.mxu1 %v5774_v1  ;;  %v5459_v1 = vadd.f32 %v4283_v2, %v4024_v17 }
 0x718   :  { %5419 = vmatprep.subr.bf16.mxu1 %v5961_v0 }
 0x719   :  { %4432 = vmatpush1.bf16.msra.mxu0 %v6657_v13 }
 0x71a   :  { %4433 = vmatprep.subr.bf16.mxu0 %v6662_v15 }
 0x71b   :  { %5420 = vmatpush3.bf16.msra.mxu1 %v5775_v31 }
 0x71c   :  { %5421 = vmatprep.subr.bf16.mxu1 %v5961_v0 }
 0x71d   :  { %4434 = vmatpush1.bf16.msra.mxu0 %v6666_v60 }
 0x71f   :  { %5422 = vmatpush3.bf16.msra.mxu1 %v5776_v36 }
 0x720   :  { %5423 = vmatprep.subr.bf16.mxu1 %v5961_v0  ;;  %v5453_v0 = vadd.f32 %v3720_v63, %v3461_v52 }
 0x723   :  { %5424 = vmatpush3.bf16.msra.mxu1 %v5777_v42 }
 0x7b3   :  { %v3894_v8 = vpop.f32.mrb[24].mxu0  ;;  %v3935_v13 = vpop.f32.mrb[52].mxu1 }
 0x7b4   :  { %v5454_v15 = vadd.f32 %v5453_v0, %v3894_v8  ;;  %v3896_v60 = vpop.f32.mrb[25].mxu0  ;;  %v5387_v5 = vpop.f32.mrb[53].mxu1  ;;  %v3936_v39 = vadd.f32 %v3935_v13, %v3728_v38  ;;  %v4287_v13 = vrot.slane %v4274_v61, %v6259_v56 }
 0x7b5   :  { %v3898_v16 = vpop.f32.mrb[26].mxu0  ;;  %v3938_v34 = vpop.f32.mrb[54].mxu1  ;;  %v5456_v47 = vadd.f32 %v5455_v6, %v3896_v60  ;;  %v4028_v6 = vrot.slane %v4015_v62, %v6259_v56 }
 0x7b6   :  { %v4911_v37 = vmul.f32 -1.442695, %v5454_v15  ;;  %v3899_v40 = vpop.f32.mrb[27].mxu0  ;;  %v5388_v44 = vpop.f32.mrb[55].mxu1 }
 0x7b7   :  { %v4912_v53 = vmul.f32 -1.442695, %v5456_v47  ;;  %v4534_v38 = vpop.permute.xlu1 %4533 }
 0x7b8   :  { %5838 = vpow2.f32 %v4911_v37 }
 0x7b9   :  { %5840 = vpow2.f32 %v4912_v53 }
 0x7c2   :  { %v5839_v59 = vpop.eup %5838 }
 0x7c3   :  { %v3945_v9 = vadd.f32 1.0, %v5839_v59  ;;  %v5841_v26 = vpop.eup %5840 }
 0x7c4   :  { %v3952_v28 = vadd.f32 1.0, %v5841_v26  ;;  %v4527_v26 = vpop.permute.xlu0 %4526 }
 0x7c5   :  { %5842 = vrcp.f32 %v3945_v9 }
 0x7c6   :  { %5844 = vrcp.f32 %v3952_v28 }
 0x7cf   :  { %v5843_v18 = vpop.eup %5842 }
 0x7d0   :  { %v3955_v23 = vmul.f32 %v5843_v18, %v3936_v39  ;;  %v5845_v7 = vpop.eup %5844 }
 0x7d1   :  { %v3958_v11 = vsub.f32 1.0, %v5845_v7  ;;  %v3960_v29 = vmul.f32 %v5845_v7, %v6767_v30  ;;  %v4020_v30 = vrot.slane %v4015_v62, %v6245_v32 }
 0x7d2   :  { %v3956_v10 = vadd.f32 %v3955_v23, %v3677_v55 }
 0x7d3   :  { %v5457_v3 = vadd.f32 %v4279_v12, %v4020_v30 }
 0x7d4   :  { %5846 = vtanh.f32 %v3956_v10 }
 0x7d9   :  { %v4235_v50 = vpop.f32.mrb[56].mxu1 }
 0x7da   :  { %v5407_v51 = vpop.f32.mrb[57].mxu1  ;;  %v4236_v16 = vadd.f32 %v4235_v50, %v4028_v6 }
 0x7db   :  { %v4238_v54 = vpop.f32.mrb[58].mxu1 }
 0x7dc   :  { %v5408_v57 = vpop.f32.mrb[59].mxu1 }
 0x7de   :  { %v5847_v27 = vpop.eup %5846 }
 0x7df   :  { %v3959_v24 = vmul.f32 %v5847_v27, %v3958_v11 }
 0x7e1   :  { %v3961_v20 = vadd.f32 %v3960_v29, %v3959_v24 }
 0x7e3   :  { %v3970_v43 = vmul.f32 %v3968_v48, %v3961_v20 }
 0x7e5   :  { %v3978_v58 = vadd.f32 %v3977_v22, %v3970_v43 }
 0x7e7   :  { %3979 = vst [vmem:[#allocation2] sm:$0x3] %v3978_v58 }
 0x7ee   :  { %v3980_v46 = vld [vmem:[#allocation2] sm:$0x3] }
 0x7ef   :  { %v4241_v41 = vpack.c.bf16 %v3980_v46, %v3980_v46  ;;  %v4536_v25 = vmul.f32 %v4534_v38, %v3980_v46 }
 0x7f1   :  { %4452 = vmatmul.mubr.bf16.vlgmr.msra.gmra.mrb[28].mxu0 %v4241_v41  ;;  %5426 = vmatmul.mubr.bf16.vlgmr.msra.gmra.mrb[60].mxu1 %v4241_v41 }
 0x8c4   :  { %v4453_v45 = vpop.f32.mrb[28].mxu0  ;;  %v4494_v21 = vpop.f32.mrb[60].mxu1 }
 0x8c5   :  { %v5458_v31 = vadd.f32 %v5457_v3, %v4453_v45  ;;  %v4455_v36 = vpop.f32.mrb[29].mxu0  ;;  %v5427_v42 = vpop.f32.mrb[61].mxu1  ;;  %v4495_v60 = vadd.f32 %v4494_v21, %v4287_v13 }
 0x8c6   :  { %v4457_v19 = vpop.f32.mrb[30].mxu0  ;;  %v4497_v49 = vpop.f32.mrb[62].mxu1  ;;  %v5460_v4 = vadd.f32 %v5459_v1, %v4455_v36 }
 0x8c7   :  { %v4962_v52 = vmul.f32 -1.442695, %v5458_v31  ;;  %v4458_v63 = vpop.f32.mrb[31].mxu0  ;;  %v5428_v14 = vpop.f32.mrb[63].mxu1 }
 0x8c8   :  { %v4963_v0 = vmul.f32 -1.442695, %v5460_v4 }
 0x8c9   :  { %5848 = vpow2.f32 %v4962_v52 }
 0x8ca   :  { %5850 = vpow2.f32 %v4963_v0 }
 0x8d3   :  { %v5849_v32 = vpop.eup %5848 }
 0x8d4   :  { %v4504_v8 = vadd.f32 1.0, %v5849_v32  ;;  %v5851_v35 = vpop.eup %5850 }
 0x8d5   :  { %v4511_v15 = vadd.f32 1.0, %v5851_v35 }
 0x8d6   :  { %5852 = vrcp.f32 %v4504_v8 }
 0x8d7   :  { %5854 = vrcp.f32 %v4511_v15 }
 0x8e0   :  { %v5853_v5 = vpop.eup %5852 }
 0x8e1   :  { %v4514_v34 = vmul.f32 %v5853_v5, %v4495_v60  ;;  %v5855_v40 = vpop.eup %5854 }
 0x8e2   :  { %v4517_v44 = vsub.f32 1.0, %v5855_v40  ;;  %v4519_v59 = vmul.f32 %v5855_v40, %v3980_v46 }
 0x8e3   :  { %v4515_v37 = vadd.f32 %v4514_v34, %v4236_v16 }
 0x8e5   :  { %5856 = vtanh.f32 %v4515_v37 }
 0x8ef   :  { %v5857_v47 = vpop.eup %5856 }
 0x8f0   :  { %v4518_v53 = vmul.f32 %v5857_v47, %v4517_v44 }
 0x8f2   :  { %v4520_v9 = vadd.f32 %v4519_v59, %v4518_v53 }
 0x8f4   :  { %v4529_v28 = vmul.f32 %v4527_v26, %v4520_v9 }
 0x8f6   :  { %v4537_v39 = vadd.f32 %v4536_v25, %v4529_v28 }
 0x8f8   :  { %4538 = vst [vmem:[#allocation2] sm:$0x3] %v4537_v39 }
 0x8ff   :  { %v4539_v56 = vld [vmem:[#allocation2] sm:$0x3] }
 0x900   :  { %4540 = vst [vmem:[#allocation9] sm:$0x3] %v4539_v56 }
 0x901   :  { %5937 = shalt.err (!%p5934_p0)
}
 0x902   :  { %s5938_s18 = scalar_lea.hbm %s6870_s6, 32 }
 0x903   :  { %p5939_p1 = scmp.ne.s32.totalorder %s6870_s6, %s5938_s18  ;;  %p5942_p2 = scmp.lt.u32.totalorder %s5938_s18, %s6870_s6 }
 0x905   :  { %p5944_p3 = pnand %p5942_p2, %p5939_p1 }
 0x907   :  { %5947 = shalt.err (!%p5944_p3)
}
 0x908   :  { %4550 = dma.vmem_to_hbm [thread:$0]  %s4548_s5, 32, %s6870_s6, [#allocation5]  }
 0x909   :  { %5952 = dma.done.wait [#allocation5], 32  }
 0x90a   :  { %5953 = vsyncadd [#allocation5], 4294967264 }
 0x90b   :  { %4554 = vsyncpa [#allocation4], 1 }
 0x90c   :  { %4555 = vsyncpa [#allocation7], 1 }
 0x90d   :  { %4556 = vsyncpa [#allocation5], 1 }

</bundles_post_ra>
